<compile_context>
chip_gen: v7x
topology: tpu7x:2x2x1
jax: 0.10.0
libtpu: 0.0.40
codegen_flags: <defaults>
</compile_context>

<pallas_src>
import functools

import jax
import jax.numpy as jnp
from jax.experimental import pallas as pl
from jax.experimental.pallas import tpu as pltpu


def _round_up(x, m):
    return (x + m - 1) // m * m


def _pad_axis(x, axis, new_size):
    pad = new_size - x.shape[axis]
    if pad <= 0:
        return x
    widths = [(0, 0)] * x.ndim
    widths[axis] = (0, pad)
    return jnp.pad(x, widths)


def _group_cfg(c, k, target_k=256):
    """Tap-group size so each MXU dot has contraction dim ~target_k."""
    g = max(1, min(k ** 3, target_k // max(c, 1)))
    n = -(-(k ** 3) // g)
    return g, n


def _vmem_limit(estimate_bytes):
    # Raise the default scoped VMEM limit but stay below v7x's 64 MiB physical.
    return int(min(max(2 * estimate_bytes, 16 * 2 ** 20), 48 * 2 ** 20))


# ---------------------------------------------------------------------------
# Kernel 1: fused voxel branch
#   [Conv3d(k) + BN(eps=1e-4) + LeakyReLU(0.1)] x 2 on a padded-flat spatial
#   layout. Taps are staged in groups into VMEM and fed to the MXU with a
#   large contraction dim; h1 lives in a VMEM scratch whose halo strips act
#   as the zero "same" padding ring for the second conv.
# ---------------------------------------------------------------------------
def _make_voxel_conv2_kernel(c_in, c_out, sc, a_off, L,
                             offs1, offs2, g1, n_g1, g2, n_g2):
    def kernel(w1_ref, b1_ref, w2_ref, b2_ref, mask_ref, x_ref, o_ref,
               h1_ref, s1_ref, s2_ref):
        # Zero ONLY the halo strips; the interior [a_off, a_off+sc) is fully
        # overwritten every grid step (must re-zero each step: batch axis is
        # "parallel" and the scratch persists across iterations).
        if a_off > 0:
            h1_ref[:, :a_off] = jnp.zeros((c_out, a_off), h1_ref.dtype)
        if L > a_off + sc:
            h1_ref[:, a_off + sc:] = jnp.zeros((c_out, L - a_off - sc),
                                               h1_ref.dtype)

        # ---- layer 1: Conv3d (grouped taps) + folded BN + LeakyReLU(0.1) ----
        acc = None
        for gi in range(n_g1):
            for j in range(g1):
                off = offs1[gi * g1 + j]
                s1_ref[j * c_in:(j + 1) * c_in, :] = x_ref[:, off:off + sc]
            d = jnp.dot(w1_ref[gi], s1_ref[...],
                        preferred_element_type=jnp.float32)
            acc = d if acc is None else acc + d
        h1 = acc + b1_ref[...]
        h1 = jnp.where(h1 > 0.0, h1, 0.1 * h1)
        h1 = h1 * mask_ref[...]                       # zero invalid lanes
        h1_ref[:, a_off:a_off + sc] = h1.astype(h1_ref.dtype)   # lane-aligned

        # ---- layer 2: Conv3d on VMEM-resident h1 + folded BN + LeakyReLU ----
        acc2 = None
        for gi in range(n_g2):
            for j in range(g2):
                off = offs2[gi * g2 + j]
                s2_ref[j * c_out:(j + 1) * c_out, :] = h1_ref[:, off:off + sc]
            d = jnp.dot(w2_ref[gi], s2_ref[...],
                        preferred_element_type=jnp.float32)
            acc2 = d if acc2 is None else acc2 + d
        h2 = acc2 + b2_ref[...]
        h2 = jnp.where(h2 > 0.0, h2, 0.1 * h2)
        o_ref[...] = h2.astype(o_ref.dtype)

    return kernel


def voxel_branch_pallas(w1, b1, w2, b2, mask, xflat, *, r, k):
    """xflat: [B, c_in_p, L] bf16 padded-flat voxels; returns [B,c_out_p,sc] bf16."""
    B, c_in, L = xflat.shape
    n_g1, c_out, K1 = w1.shape
    g1 = K1 // c_in
    n_g2 = w2.shape[0]
    g2 = w2.shape[2] // c_out
    k3 = k ** 3
    pad = k // 2
    rp = r + 2 * pad
    sc = mask.shape[1]
    padoff = pad * (rp * rp + rp + 1)
    a_off = _round_up(padoff, 128)                 # lane-aligned h1 store offset

    offs1 = [dx * rp * rp + dy * rp + dz
             for dx in range(k) for dy in range(k) for dz in range(k)]
    offs2 = [a_off - padoff + o for o in offs1]
    offs1 = offs1 + [0] * (n_g1 * g1 - k3)         # zero-weight padding taps
    offs2 = offs2 + [0] * (n_g2 * g2 - k3)

    kernel = _make_voxel_conv2_kernel(c_in, c_out, sc, a_off, L,
                                      offs1, offs2, g1, n_g1, g2, n_g2)

    flops = int(2 * B * sc * k3 * (c_in * c_out + c_out * c_out))
    bytes_accessed = int(xflat.size * 2 + B * c_out * sc * 2 + w1.size * 2
                         + w2.size * 2 + mask.size * 4 + 2 * c_out * 4)

    vmem_est = (2 * c_in * L * 2 + 2 * c_out * sc * 2 + c_out * L * 2
                + (g1 * c_in + g2 * c_out) * sc * 2
                + (w1.size + w2.size) * 2 * 2 + sc * 4)

    # TODO(synk): for large resolutions (r>=32, c>=64) add an sc-tile grid
    # axis (layer-1 full slab under pl.when at tile 0, layer-2 per tile) so
    # the working set fits v7x's 64 MiB VMEM.
    return pl.pallas_call(
        kernel,
        out_shape=jax.ShapeDtypeStruct((B, c_out, sc), jnp.bfloat16),
        grid=(B,),
        in_specs=[
            pl.BlockSpec((n_g1, c_out, g1 * c_in), lambda i: (0, 0, 0)),
            pl.BlockSpec((c_out, 1), lambda i: (0, 0)),
            pl.BlockSpec((n_g2, c_out, g2 * c_out), lambda i: (0, 0, 0)),
            pl.BlockSpec((c_out, 1), lambda i: (0, 0)),
            pl.BlockSpec((1, sc), lambda i: (0, 0)),
            pl.BlockSpec((None, c_in, L), lambda i: (i, 0, 0)),
        ],
        out_specs=pl.BlockSpec((None, c_out, sc), lambda i: (i, 0, 0)),
        scratch_shapes=[
            pltpu.VMEM((c_out, L), jnp.bfloat16),        # h1 (+ zero halo ring)
            pltpu.VMEM((g1 * c_in, sc), jnp.bfloat16),   # layer-1 tap staging
            pltpu.VMEM((g2 * c_out, sc), jnp.bfloat16),  # layer-2 tap staging
        ],
        compiler_params=pltpu.CompilerParams(
            dimension_semantics=("parallel",),
            vmem_limit_bytes=_vmem_limit(vmem_est)),
        cost_estimate=pl.CostEstimate(flops=flops, transcendentals=0,
                                      bytes_accessed=bytes_accessed),
    )(w1, b1, w2, b2, mask, xflat)


# ---------------------------------------------------------------------------
# Kernel 2: trilinear devoxelization (matmul against a precomputed bf16
# interpolation matrix) fused with the point SharedMLP and the final add,
# tiled over N with the voxel slab VMEM-resident across N tiles.
# ---------------------------------------------------------------------------
def _devox_point_kernel(wp_ref, bp_ref, x_ref, v_ref, wm_ref, o_ref):
    # point MLP: 1x1 conv + folded BN + LeakyReLU(0.1)
    y = jnp.dot(wp_ref[...], x_ref[...], preferred_element_type=jnp.float32)
    y = y + bp_ref[...]
    y = jnp.where(y > 0.0, y, 0.1 * y)
    # devoxelize: (c_out, sc) @ (sc, TN); h2 slab is resident across N tiles
    devox = jnp.dot(v_ref[...], wm_ref[...], preferred_element_type=jnp.float32)
    o_ref[...] = (y + devox).astype(o_ref.dtype)


def devox_point_fuse_pallas(wp, bp, feat, h2flat, wmat, *, n_tile):
    """feat: [B,c_in_p,Np] bf16; h2flat: [B,c_out_p,sc] bf16; wmat: [B,sc,Np] bf16."""
    B, c_in, Np = feat.shape
    c_out = wp.shape[0]
    sc = h2flat.shape[2]
    nt = Np // n_tile

    flops = int(2 * B * (c_out * sc * Np + c_out * c_in * Np))
    bytes_accessed = int(feat.size * 2 + h2flat.size * 2 + wmat.size * 2
                         + B * c_out * Np * 4 + wp.size * 2 + c_out * 4)

    vmem_est = (2 * (c_in * n_tile * 2 + sc * n_tile * 2 + c_out * n_tile * 4)
                + 2 * c_out * sc * 2 + wp.size * 2)

    # TODO(synk): an 8-tap scalar-prefetch gather over the VMEM-resident h2
    # slab would avoid streaming the dense (sc, N) matrix entirely at large r.
    return pl.pallas_call(
        _devox_point_kernel,
        out_shape=jax.ShapeDtypeStruct((B, c_out, Np), jnp.float32),
        grid=(B, nt),
        in_specs=[
            pl.BlockSpec((c_out, c_in), lambda b, n: (0, 0)),
            pl.BlockSpec((c_out, 1), lambda b, n: (0, 0)),
            pl.BlockSpec((None, c_in, n_tile), lambda b, n: (b, 0, n)),
            pl.BlockSpec((None, c_out, sc), lambda b, n: (b, 0, 0)),  # resident
            pl.BlockSpec((None, sc, n_tile), lambda b, n: (b, 0, n)),
        ],
        out_specs=pl.BlockSpec((None, c_out, n_tile), lambda b, n: (b, 0, n)),
        compiler_params=pltpu.CompilerParams(
            dimension_semantics=("parallel", "parallel"),
            vmem_limit_bytes=_vmem_limit(vmem_est)),
        cost_estimate=pl.CostEstimate(flops=flops, transcendentals=0,
                                      bytes_accessed=bytes_accessed),
    )(wp, bp, feat, h2flat, wmat)


# ---------------------------------------------------------------------------
# Glue (plain JAX): voxelization scatter-mean and trilinear matrix build.
# ---------------------------------------------------------------------------
def voxelize(features, coords, r, normalize=True, eps=0.0):
    """Voxelization.forward: ([B,C,r,r,r] avg voxels, [B,3,N] norm coords)."""
    norm_coords = coords - jnp.mean(coords, axis=2, keepdims=True)
    if normalize:
        nrm = jnp.linalg.norm(norm_coords, axis=1, keepdims=True)       # [B,1,N]
        denom = jnp.max(nrm, axis=2, keepdims=True) * 2.0 + eps
        norm_coords = norm_coords / denom + 0.5
    else:
        norm_coords = (norm_coords + 1.0) / 2.0
    norm_coords = jnp.clip(norm_coords * r, 0.0, r - 1)
    vox_coords = jnp.round(norm_coords).astype(jnp.int32)

    # TODO(synk): avg_voxelize is a data-dependent scatter-mean; kept as
    # jax.ops.segment_sum glue rather than a Pallas kernel.
    B, C, N = features.shape
    flat_idx = vox_coords[:, 0] * (r * r) + vox_coords[:, 1] * r + vox_coords[:, 2]

    def _one(feat_b, idx_b):
        summed = jax.ops.segment_sum(feat_b.T, idx_b, num_segments=r ** 3)  # [r^3,C]
        cnt = jax.ops.segment_sum(jnp.ones((N,), feat_b.dtype), idx_b,
                                  num_segments=r ** 3)
        return (summed / jnp.maximum(cnt, 1.0)[:, None]).T                  # [C,r^3]

    vox = jax.vmap(_one)(features, flat_idx).reshape(B, C, r, r, r)
    return vox, norm_coords


def build_trilinear_matrix(norm_coords, r, rp, sc):
    """Scatter the 8 trilinear corner weights into a bf16 [B, sc, N] matrix whose
    rows are padded-flat voxel indices (matching the conv kernel's layout)."""
    # TODO(synk): data-dependent scatter kept in plain JAX.
    B, _, N = norm_coords.shape
    x, y, z = norm_coords[:, 0], norm_coords[:, 1], norm_coords[:, 2]
    x0, y0, z0 = jnp.floor(x), jnp.floor(y), jnp.floor(z)
    xd, yd, zd = x - x0, y - y0, z - z0
    x0i, y0i, z0i = x0.astype(jnp.int32), y0.astype(jnp.int32), z0.astype(jnp.int32)
    x1i = jnp.minimum(x0i + 1, r - 1)
    y1i = jnp.minimum(y0i + 1, r - 1)
    z1i = jnp.minimum(z0i + 1, r - 1)

    idx_list, w_list = [], []
    for xi, wx in ((x0i, 1.0 - xd), (x1i, xd)):
        for yi, wy in ((y0i, 1.0 - yd), (y1i, yd)):
            for zi, wz in ((z0i, 1.0 - zd), (z1i, zd)):
                idx_list.append(xi * (rp * rp) + yi * rp + zi)   # padded-flat index
                w_list.append(wx * wy * wz)
    idx = jnp.stack(idx_list, axis=1)                            # [B, 8, N]
    wts = jnp.stack(w_list, axis=1).astype(jnp.bfloat16)         # [B, 8, N]
    cols = jnp.broadcast_to(jnp.arange(N, dtype=jnp.int32)[None, :], (8, N))

    def scatter_one(idx_b, w_b):
        return jnp.zeros((sc, N), jnp.bfloat16).at[idx_b, cols].add(w_b)

    return jax.vmap(scatter_one)(idx, wts)                       # [B, sc, N] bf16


# ---------------------------------------------------------------------------
# Parameters (deterministic synthetic init), eval-mode BN folded (eps=1e-4),
# channels padded to sublane multiples, conv weights grouped tap-major.
# ---------------------------------------------------------------------------
def fold_bn(w, b, gamma, beta, mean, var, eps=1e-4):
    scale = gamma / jnp.sqrt(var + eps)
    w_f = w * scale.reshape((-1,) + (1,) * (w.ndim - 1))
    b_f = (b - mean) * scale + beta
    return w_f, b_f


def _group_weight(w, k, group, n_groups):
    """(c_out_p, c_p, k, k, k) -> (n_groups, c_out_p, group * c_p), tap-major,
    padded with zero-weight taps so all groups are the same size."""
    c_out_p, c_p = w.shape[0], w.shape[1]
    wt = w.transpose(2, 3, 4, 0, 1).reshape(k ** 3, c_out_p, c_p)
    extra = n_groups * group - k ** 3
    if extra:
        wt = jnp.concatenate(
            [wt, jnp.zeros((extra, c_out_p, c_p), wt.dtype)], axis=0)
    wt = wt.reshape(n_groups, group, c_out_p, c_p)
    wt = wt.transpose(0, 2, 1, 3).reshape(n_groups, c_out_p, group * c_p)
    return wt


def init_params(key, c_in, c_out, k):
    c_in_p = _round_up(max(c_in, 8), 8)
    c_out_p = _round_up(max(c_out, 8), 8)
    g1, n_g1 = _group_cfg(c_in_p, k)
    g2, n_g2 = _group_cfg(c_out_p, k)

    ks = jax.random.split(key, 8)

    def conv_w(kk, shape):
        fan_in = 1
        for s in shape[1:]:
            fan_in *= s
        return jax.random.normal(kk, shape, jnp.float32) / jnp.sqrt(float(fan_in))

    w1 = conv_w(ks[0], (c_out, c_in, k, k, k))
    b1 = 0.01 * jax.random.normal(ks[1], (c_out,), jnp.float32)
    w2 = conv_w(ks[2], (c_out, c_out, k, k, k))
    b2 = 0.01 * jax.random.normal(ks[3], (c_out,), jnp.float32)
    wp = conv_w(ks[4], (c_out, c_in))
    bp = 0.01 * jax.random.normal(ks[5], (c_out,), jnp.float32)

    # BatchNorm (eval mode: running_mean=0, running_var=1), eps=1e-4.
    gamma1 = 1.0 + 0.1 * jax.random.normal(ks[6], (c_out,), jnp.float32)
    gamma2 = 1.0 + 0.1 * jax.random.normal(ks[7], (c_out,), jnp.float32)
    zero = jnp.zeros((c_out,), jnp.float32)
    one = jnp.ones((c_out,), jnp.float32)

    w1f, b1f = fold_bn(w1, b1, gamma1, zero, zero, one)
    w2f, b2f = fold_bn(w2, b2, gamma2, zero, zero, one)
    wpf, bpf = fold_bn(wp, bp, one, zero, zero, one)

    # Zero-pad channel dims to sublane multiples.
    w1f = _pad_axis(_pad_axis(w1f, 0, c_out_p), 1, c_in_p)
    w2f = _pad_axis(_pad_axis(w2f, 0, c_out_p), 1, c_out_p)
    wpf = _pad_axis(_pad_axis(wpf, 0, c_out_p), 1, c_in_p)
    b1f = _pad_axis(b1f, 0, c_out_p)
    b2f = _pad_axis(b2f, 0, c_out_p)
    bpf = _pad_axis(bpf, 0, c_out_p)

    return {
        "w1": _group_weight(w1f, k, g1, n_g1).astype(jnp.bfloat16),
        "b1": b1f.reshape(c_out_p, 1),
        "w2": _group_weight(w2f, k, g2, n_g2).astype(jnp.bfloat16),
        "b2": b2f.reshape(c_out_p, 1),
        "wp": wpf.astype(jnp.bfloat16),
        "bp": bpf.reshape(c_out_p, 1),
    }


# ---------------------------------------------------------------------------
# PVConv forward.
# ---------------------------------------------------------------------------
def pvconv_forward(features, coords, params, *, resolution, kernel_size,
                   out_channels):
    r, k = resolution, kernel_size
    pad = k // 2
    rp = r + 2 * pad
    B, c_in, N = features.shape
    c_out_p, c_in_p = params["wp"].shape

    vox, norm_coords = voxelize(features, coords, r, normalize=True, eps=0.0)
    vox = _pad_axis(vox, 1, c_in_p)

    # Padded-flat spatial layout geometry.
    sc = _round_up(rp ** 3, 128)                       # lane-dense compute width
    maxoff = (k - 1) * (rp * rp + rp + 1)
    padoff = pad * (rp * rp + rp + 1)
    a_off = _round_up(padoff, 128)
    L = _round_up(a_off - padoff + maxoff + sc, 128)   # covers all tap windows

    # Zero-pad the voxel grid once, flatten spatial onto lanes, bf16 for MXU.
    voxp = jnp.pad(vox, ((0, 0), (0, 0), (pad, pad), (pad, pad), (pad, pad)))
    xflat = voxp.reshape(B, c_in_p, rp ** 3)
    xflat = jnp.pad(xflat, ((0, 0), (0, 0), (0, L - rp ** 3))).astype(jnp.bfloat16)

    # Interior mask over padded-flat indices (marks real output voxels).
    q = jnp.arange(sc)
    qx, qy, qz = q // (rp * rp), (q // rp) % rp, q % rp
    mask = ((q < rp ** 3) & (qx < r) & (qy < r) & (qz < r)).astype(jnp.float32)
    mask = mask.reshape(1, sc)

    # Fused voxel branch (both conv+BN+LeakyReLU layers, h1 stays in VMEM).
    h2 = voxel_branch_pallas(params["w1"], params["b1"], params["w2"],
                             params["b2"], mask, xflat, r=r, k=k)  # [B,c_out_p,sc]

    # Point tiling (lane-multiple) for kernel 2.
    n_tile = min(512, _round_up(N, 128))
    Np = _round_up(N, n_tile)

    # Trilinear interpolation matrix, built directly in bf16.
    wmat = build_trilinear_matrix(norm_coords, r, rp, sc)          # [B, sc, N]
    wmat = _pad_axis(wmat, 2, Np)

    feat_p = _pad_axis(_pad_axis(features, 1, c_in_p), 2, Np).astype(jnp.bfloat16)

    # Devoxelize + point MLP + add, fused in one kernel, tiled over N.
    fused = devox_point_fuse_pallas(params["wp"], params["bp"],
                                    feat_p, h2, wmat, n_tile=n_tile)
    fused = fused[:, :out_channels, :N]
    return fused, coords


if __name__ == "__main__":
    B, C_IN, C_OUT, N, R, K = 2, 4, 8, 128, 8, 3

    key = jax.random.PRNGKey(0)
    k_feat, k_coord, k_param = jax.random.split(key, 3)
    features = jax.random.normal(k_feat, (B, C_IN, N), jnp.float32)
    coords = jax.random.normal(k_coord, (B, 3, N), jnp.float32)

    params = init_params(k_param, C_IN, C_OUT, K)

    fwd = jax.jit(functools.partial(pvconv_forward, resolution=R,
                                    kernel_size=K, out_channels=C_OUT))
    fused, out_coords = fwd(features, coords, params)
    jax.block_until_ready(fused)
    jax.block_until_ready(out_coords)

    assert fused.shape == (B, C_OUT, N)
    assert out_coords.shape == (B, 3, N)
    assert bool(jnp.all(jnp.isfinite(fused)))
    print("KERNEL_OK")
</pallas_src>

<mosaic_0001>
module attributes {stable_mosaic.version = 11 : i64} {
  func.func private @main(%arg0: i32) attributes {dimension_semantics = [#tpu.dimension_semantics<core_parallel>], iteration_bounds = array<i64: 2>, tpu.core_type = #tpu.core_type<sc_scalar_subcore>, window_params = []} {
    return
  }
}

module attributes {stable_mosaic.version = 11 : i64} {
  func.func private @main(%arg0: i32) attributes {dimension_semantics = [#tpu.dimension_semantics<core_parallel>], iteration_bounds = array<i64: 2>, tpu.core_type = #tpu.core_type<sc_scalar_subcore>, window_params = []} {
    return
  }
}

module attributes {stable_mosaic.version = 11 : i64} {
  func.func @kernel(%arg0: i32, %arg1: memref<1x8x216xbf16, #tpu.memory_space<vmem>>, %arg2: memref<8x1xf32, #tpu.memory_space<vmem>>, %arg3: memref<1x8x216xbf16, #tpu.memory_space<vmem>>, %arg4: memref<8x1xf32, #tpu.memory_space<vmem>>, %arg5: memref<1x1024xf32, #tpu.memory_space<vmem>>, %arg6: memref<1x8x1280xbf16, #tpu.memory_space<vmem>>, %arg7: memref<1x8x1024xbf16, #tpu.memory_space<vmem>>, %arg8: memref<8x1280xbf16, #tpu.memory_space<vmem>>, %arg9: memref<216x1024xbf16, #tpu.memory_space<vmem>>, %arg10: memref<216x1024xbf16, #tpu.memory_space<vmem>>) attributes {dimension_semantics = [#tpu.dimension_semantics<parallel>], iteration_bounds = array<i64: 2>, scalar_prefetch = 0 : i64, scratch_operands = 3 : i64, tpu.core_type = #tpu.core_type<tc>, window_params = [{pipeline_mode = #tpu.pipeline_mode<synchronous>, transform_indices = @transform_0, window_bounds = array<i64: 1, 8, 216>}, {pipeline_mode = #tpu.pipeline_mode<synchronous>, transform_indices = @transform_1, window_bounds = array<i64: 8, 1>}, {pipeline_mode = #tpu.pipeline_mode<synchronous>, transform_indices = @transform_2, window_bounds = array<i64: 1, 8, 216>}, {pipeline_mode = #tpu.pipeline_mode<synchronous>, transform_indices = @transform_3, window_bounds = array<i64: 8, 1>}, {pipeline_mode = #tpu.pipeline_mode<synchronous>, transform_indices = @transform_4, window_bounds = array<i64: 1, 1024>}, {transform_indices = @transform_5, window_bounds = array<i64: 1, 8, 1280>}, {transform_indices = @transform_6, window_bounds = array<i64: 1, 8, 1024>}]} {
    %cst = arith.constant 0.000000e+00 : bf16
    %0 = vector.broadcast %cst : bf16 to vector<8x128xbf16>
    %c0 = arith.constant 0 : index
    %c0_0 = arith.constant 0 : index
    %1 = vector.load %arg8[%c0, %c0_0] : memref<8x1280xbf16, #tpu.memory_space<vmem>>, vector<8x128xbf16>
    tpu.vector_store %arg8[%c0, %c0_0], %0 {strides = array<i32>} : memref<8x1280xbf16, #tpu.memory_space<vmem>>, vector<8x128xbf16>,
    %cst_1 = arith.constant 0.000000e+00 : bf16
    %2 = vector.broadcast %cst_1 : bf16 to vector<8x128xbf16>
    %c0_2 = arith.constant 0 : index
    %c1152 = arith.constant 1152 : index
    %3 = vector.load %arg8[%c0_2, %c1152] : memref<8x1280xbf16, #tpu.memory_space<vmem>>, vector<8x128xbf16>
    tpu.vector_store %arg8[%c0_2, %c1152], %2 {strides = array<i32>} : memref<8x1280xbf16, #tpu.memory_space<vmem>>, vector<8x128xbf16>,
    %c0_3 = arith.constant 0 : index
    %c0_4 = arith.constant 0 : index
    %c0_5 = arith.constant 0 : index
    %4 = vector.load %arg6[%c0_3, %c0_4, %c0_5] : memref<1x8x1280xbf16, #tpu.memory_space<vmem>>, vector<1x8x1024xbf16>
    %5 = vector.shape_cast %4 : vector<1x8x1024xbf16> to vector<8x1024xbf16>
    %c0_6 = arith.constant 0 : index
    %c0_7 = arith.constant 0 : index
    %6 = vector.load %arg9[%c0_6, %c0_7] : memref<216x1024xbf16, #tpu.memory_space<vmem>>, vector<8x1024xbf16>
    tpu.vector_store %arg9[%c0_6, %c0_7], %5 {strides = array<i32>} : memref<216x1024xbf16, #tpu.memory_space<vmem>>, vector<8x1024xbf16>,
    %c0_8 = arith.constant 0 : index
    %c0_9 = arith.constant 0 : index
    %c1 = arith.constant 1 : index
    %7 = vector.load %arg6[%c0_8, %c0_9, %c1] : memref<1x8x1280xbf16, #tpu.memory_space<vmem>>, vector<1x8x1024xbf16>
    %8 = vector.shape_cast %7 : vector<1x8x1024xbf16> to vector<8x1024xbf16>
    %c8 = arith.constant 8 : index
    %c0_10 = arith.constant 0 : index
    %9 = vector.load %arg9[%c8, %c0_10] : memref<216x1024xbf16, #tpu.memory_space<vmem>>, vector<8x1024xbf16>
    tpu.vector_store %arg9[%c8, %c0_10], %8 {strides = array<i32>} : memref<216x1024xbf16, #tpu.memory_space<vmem>>, vector<8x1024xbf16>,
    %c0_11 = arith.constant 0 : index
    %c0_12 = arith.constant 0 : index
    %c2 = arith.constant 2 : index
    %10 = vector.load %arg6[%c0_11, %c0_12, %c2] : memref<1x8x1280xbf16, #tpu.memory_space<vmem>>, vector<1x8x1024xbf16>
    %11 = vector.shape_cast %10 : vector<1x8x1024xbf16> to vector<8x1024xbf16>
    %c16 = arith.constant 16 : index
    %c0_13 = arith.constant 0 : index
    %12 = vector.load %arg9[%c16, %c0_13] : memref<216x1024xbf16, #tpu.memory_space<vmem>>, vector<8x1024xbf16>
    tpu.vector_store %arg9[%c16, %c0_13], %11 {strides = array<i32>} : memref<216x1024xbf16, #tpu.memory_space<vmem>>, vector<8x1024xbf16>,
    %c0_14 = arith.constant 0 : index
    %c0_15 = arith.constant 0 : index
    %c10 = arith.constant 10 : index
    %13 = vector.load %arg6[%c0_14, %c0_15, %c10] : memref<1x8x1280xbf16, #tpu.memory_space<vmem>>, vector<1x8x1024xbf16>
    %14 = vector.shape_cast %13 : vector<1x8x1024xbf16> to vector<8x1024xbf16>
    %c24 = arith.constant 24 : index
    %c0_16 = arith.constant 0 : index
    %15 = vector.load %arg9[%c24, %c0_16] : memref<216x1024xbf16, #tpu.memory_space<vmem>>, vector<8x1024xbf16>
    tpu.vector_store %arg9[%c24, %c0_16], %14 {strides = array<i32>} : memref<216x1024xbf16, #tpu.memory_space<vmem>>, vector<8x1024xbf16>,
    %c0_17 = arith.constant 0 : index
    %c0_18 = arith.constant 0 : index
    %c11 = arith.constant 11 : index
    %16 = vector.load %arg6[%c0_17, %c0_18, %c11] : memref<1x8x1280xbf16, #tpu.memory_space<vmem>>, vector<1x8x1024xbf16>
    %17 = vector.shape_cast %16 : vector<1x8x1024xbf16> to vector<8x1024xbf16>
    %c32 = arith.constant 32 : index
    %c0_19 = arith.constant 0 : index
    %18 = vector.load %arg9[%c32, %c0_19] : memref<216x1024xbf16, #tpu.memory_space<vmem>>, vector<8x1024xbf16>
    tpu.vector_store %arg9[%c32, %c0_19], %17 {strides = array<i32>} : memref<216x1024xbf16, #tpu.memory_space<vmem>>, vector<8x1024xbf16>,
    %c0_20 = arith.constant 0 : index
    %c0_21 = arith.constant 0 : index
    %c12 = arith.constant 12 : index
    %19 = vector.load %arg6[%c0_20, %c0_21, %c12] : memref<1x8x1280xbf16, #tpu.memory_space<vmem>>, vector<1x8x1024xbf16>
    %20 = vector.shape_cast %19 : vector<1x8x1024xbf16> to vector<8x1024xbf16>
    %c40 = arith.constant 40 : index
    %c0_22 = arith.constant 0 : index
    %21 = vector.load %arg9[%c40, %c0_22] : memref<216x1024xbf16, #tpu.memory_space<vmem>>, vector<8x1024xbf16>
    tpu.vector_store %arg9[%c40, %c0_22], %20 {strides = array<i32>} : memref<216x1024xbf16, #tpu.memory_space<vmem>>, vector<8x1024xbf16>,
    %c0_23 = arith.constant 0 : index
    %c0_24 = arith.constant 0 : index
    %c20 = arith.constant 20 : index
    %22 = vector.load %arg6[%c0_23, %c0_24, %c20] : memref<1x8x1280xbf16, #tpu.memory_space<vmem>>, vector<1x8x1024xbf16>
    %23 = vector.shape_cast %22 : vector<1x8x1024xbf16> to vector<8x1024xbf16>
    %c48 = arith.constant 48 : index
    %c0_25 = arith.constant 0 : index
    %24 = vector.load %arg9[%c48, %c0_25] : memref<216x1024xbf16, #tpu.memory_space<vmem>>, vector<8x1024xbf16>
    tpu.vector_store %arg9[%c48, %c0_25], %23 {strides = array<i32>} : memref<216x1024xbf16, #tpu.memory_space<vmem>>, vector<8x1024xbf16>,
    %c0_26 = arith.constant 0 : index
    %c0_27 = arith.constant 0 : index
    %c21 = arith.constant 21 : index
    %25 = vector.load %arg6[%c0_26, %c0_27, %c21] : memref<1x8x1280xbf16, #tpu.memory_space<vmem>>, vector<1x8x1024xbf16>
    %26 = vector.shape_cast %25 : vector<1x8x1024xbf16> to vector<8x1024xbf16>
    %c56 = arith.constant 56 : index
    %c0_28 = arith.constant 0 : index
    %27 = vector.load %arg9[%c56, %c0_28] : memref<216x1024xbf16, #tpu.memory_space<vmem>>, vector<8x1024xbf16>
    tpu.vector_store %arg9[%c56, %c0_28], %26 {strides = array<i32>} : memref<216x1024xbf16, #tpu.memory_space<vmem>>, vector<8x1024xbf16>,
    %c0_29 = arith.constant 0 : index
    %c0_30 = arith.constant 0 : index
    %c22 = arith.constant 22 : index
    %28 = vector.load %arg6[%c0_29, %c0_30, %c22] : memref<1x8x1280xbf16, #tpu.memory_space<vmem>>, vector<1x8x1024xbf16>
    %29 = vector.shape_cast %28 : vector<1x8x1024xbf16> to vector<8x1024xbf16>
    %c64 = arith.constant 64 : index
    %c0_31 = arith.constant 0 : index
    %30 = vector.load %arg9[%c64, %c0_31] : memref<216x1024xbf16, #tpu.memory_space<vmem>>, vector<8x1024xbf16>
    tpu.vector_store %arg9[%c64, %c0_31], %29 {strides = array<i32>} : memref<216x1024xbf16, #tpu.memory_space<vmem>>, vector<8x1024xbf16>,
    %c0_32 = arith.constant 0 : index
    %c0_33 = arith.constant 0 : index
    %c100 = arith.constant 100 : index
    %31 = vector.load %arg6[%c0_32, %c0_33, %c100] : memref<1x8x1280xbf16, #tpu.memory_space<vmem>>, vector<1x8x1024xbf16>
    %32 = vector.shape_cast %31 : vector<1x8x1024xbf16> to vector<8x1024xbf16>
    %c72 = arith.constant 72 : index
    %c0_34 = arith.constant 0 : index
    %33 = vector.load %arg9[%c72, %c0_34] : memref<216x1024xbf16, #tpu.memory_space<vmem>>, vector<8x1024xbf16>
    tpu.vector_store %arg9[%c72, %c0_34], %32 {strides = array<i32>} : memref<216x1024xbf16, #tpu.memory_space<vmem>>, vector<8x1024xbf16>,
    %c0_35 = arith.constant 0 : index
    %c0_36 = arith.constant 0 : index
    %c101 = arith.constant 101 : index
    %34 = vector.load %arg6[%c0_35, %c0_36, %c101] : memref<1x8x1280xbf16, #tpu.memory_space<vmem>>, vector<1x8x1024xbf16>
    %35 = vector.shape_cast %34 : vector<1x8x1024xbf16> to vector<8x1024xbf16>
    %c80 = arith.constant 80 : index
    %c0_37 = arith.constant 0 : index
    %36 = vector.load %arg9[%c80, %c0_37] : memref<216x1024xbf16, #tpu.memory_space<vmem>>, vector<8x1024xbf16>
    tpu.vector_store %arg9[%c80, %c0_37], %35 {strides = array<i32>} : memref<216x1024xbf16, #tpu.memory_space<vmem>>, vector<8x1024xbf16>,
    %c0_38 = arith.constant 0 : index
    %c0_39 = arith.constant 0 : index
    %c102 = arith.constant 102 : index
    %37 = vector.load %arg6[%c0_38, %c0_39, %c102] : memref<1x8x1280xbf16, #tpu.memory_space<vmem>>, vector<1x8x1024xbf16>
    %38 = vector.shape_cast %37 : vector<1x8x1024xbf16> to vector<8x1024xbf16>
    %c88 = arith.constant 88 : index
    %c0_40 = arith.constant 0 : index
    %39 = vector.load %arg9[%c88, %c0_40] : memref<216x1024xbf16, #tpu.memory_space<vmem>>, vector<8x1024xbf16>
    tpu.vector_store %arg9[%c88, %c0_40], %38 {strides = array<i32>} : memref<216x1024xbf16, #tpu.memory_space<vmem>>, vector<8x1024xbf16>,
    %c0_41 = arith.constant 0 : index
    %c0_42 = arith.constant 0 : index
    %c110 = arith.constant 110 : index
    %40 = vector.load %arg6[%c0_41, %c0_42, %c110] : memref<1x8x1280xbf16, #tpu.memory_space<vmem>>, vector<1x8x1024xbf16>
    %41 = vector.shape_cast %40 : vector<1x8x1024xbf16> to vector<8x1024xbf16>
    %c96 = arith.constant 96 : index
    %c0_43 = arith.constant 0 : index
    %42 = vector.load %arg9[%c96, %c0_43] : memref<216x1024xbf16, #tpu.memory_space<vmem>>, vector<8x1024xbf16>
    tpu.vector_store %arg9[%c96, %c0_43], %41 {strides = array<i32>} : memref<216x1024xbf16, #tpu.memory_space<vmem>>, vector<8x1024xbf16>,
    %c0_44 = arith.constant 0 : index
    %c0_45 = arith.constant 0 : index
    %c111 = arith.constant 111 : index
    %43 = vector.load %arg6[%c0_44, %c0_45, %c111] : memref<1x8x1280xbf16, #tpu.memory_space<vmem>>, vector<1x8x1024xbf16>
    %44 = vector.shape_cast %43 : vector<1x8x1024xbf16> to vector<8x1024xbf16>
    %c104 = arith.constant 104 : index
    %c0_46 = arith.constant 0 : index
    %45 = vector.load %arg9[%c104, %c0_46] : memref<216x1024xbf16, #tpu.memory_space<vmem>>, vector<8x1024xbf16>
    tpu.vector_store %arg9[%c104, %c0_46], %44 {strides = array<i32>} : memref<216x1024xbf16, #tpu.memory_space<vmem>>, vector<8x1024xbf16>,
    %c0_47 = arith.constant 0 : index
    %c0_48 = arith.constant 0 : index
    %c112 = arith.constant 112 : index
    %46 = vector.load %arg6[%c0_47, %c0_48, %c112] : memref<1x8x1280xbf16, #tpu.memory_space<vmem>>, vector<1x8x1024xbf16>
    %47 = vector.shape_cast %46 : vector<1x8x1024xbf16> to vector<8x1024xbf16>
    %c112_49 = arith.constant 112 : index
    %c0_50 = arith.constant 0 : index
    %48 = vector.load %arg9[%c112_49, %c0_50] : memref<216x1024xbf16, #tpu.memory_space<vmem>>, vector<8x1024xbf16>
    tpu.vector_store %arg9[%c112_49, %c0_50], %47 {strides = array<i32>} : memref<216x1024xbf16, #tpu.memory_space<vmem>>, vector<8x1024xbf16>,
    %c0_51 = arith.constant 0 : index
    %c0_52 = arith.constant 0 : index
    %c120 = arith.constant 120 : index
    %49 = vector.load %arg6[%c0_51, %c0_52, %c120] : memref<1x8x1280xbf16, #tpu.memory_space<vmem>>, vector<1x8x1024xbf16>
    %50 = vector.shape_cast %49 : vector<1x8x1024xbf16> to vector<8x1024xbf16>
    %c120_53 = arith.constant 120 : index
    %c0_54 = arith.constant 0 : index
    %51 = vector.load %arg9[%c120_53, %c0_54] : memref<216x1024xbf16, #tpu.memory_space<vmem>>, vector<8x1024xbf16>
    tpu.vector_store %arg9[%c120_53, %c0_54], %50 {strides = array<i32>} : memref<216x1024xbf16, #tpu.memory_space<vmem>>, vector<8x1024xbf16>,
    %c0_55 = arith.constant 0 : index
    %c0_56 = arith.constant 0 : index
    %c121 = arith.constant 121 : index
    %52 = vector.load %arg6[%c0_55, %c0_56, %c121] : memref<1x8x1280xbf16, #tpu.memory_space<vmem>>, vector<1x8x1024xbf16>
    %53 = vector.shape_cast %52 : vector<1x8x1024xbf16> to vector<8x1024xbf16>
    %c128 = arith.constant 128 : index
    %c0_57 = arith.constant 0 : index
    %54 = vector.load %arg9[%c128, %c0_57] : memref<216x1024xbf16, #tpu.memory_space<vmem>>, vector<8x1024xbf16>
    tpu.vector_store %arg9[%c128, %c0_57], %53 {strides = array<i32>} : memref<216x1024xbf16, #tpu.memory_space<vmem>>, vector<8x1024xbf16>,
    %c0_58 = arith.constant 0 : index
    %c0_59 = arith.constant 0 : index
    %c122 = arith.constant 122 : index
    %55 = vector.load %arg6[%c0_58, %c0_59, %c122] : memref<1x8x1280xbf16, #tpu.memory_space<vmem>>, vector<1x8x1024xbf16>
    %56 = vector.shape_cast %55 : vector<1x8x1024xbf16> to vector<8x1024xbf16>
    %c136 = arith.constant 136 : index
    %c0_60 = arith.constant 0 : index
    %57 = vector.load %arg9[%c136, %c0_60] : memref<216x1024xbf16, #tpu.memory_space<vmem>>, vector<8x1024xbf16>
    tpu.vector_store %arg9[%c136, %c0_60], %56 {strides = array<i32>} : memref<216x1024xbf16, #tpu.memory_space<vmem>>, vector<8x1024xbf16>,
    %c0_61 = arith.constant 0 : index
    %c0_62 = arith.constant 0 : index
    %c200 = arith.constant 200 : index
    %58 = vector.load %arg6[%c0_61, %c0_62, %c200] : memref<1x8x1280xbf16, #tpu.memory_space<vmem>>, vector<1x8x1024xbf16>
    %59 = vector.shape_cast %58 : vector<1x8x1024xbf16> to vector<8x1024xbf16>
    %c144 = arith.constant 144 : index
    %c0_63 = arith.constant 0 : index
    %60 = vector.load %arg9[%c144, %c0_63] : memref<216x1024xbf16, #tpu.memory_space<vmem>>, vector<8x1024xbf16>
    tpu.vector_store %arg9[%c144, %c0_63], %59 {strides = array<i32>} : memref<216x1024xbf16, #tpu.memory_space<vmem>>, vector<8x1024xbf16>,
    %c0_64 = arith.constant 0 : index
    %c0_65 = arith.constant 0 : index
    %c201 = arith.constant 201 : index
    %61 = vector.load %arg6[%c0_64, %c0_65, %c201] : memref<1x8x1280xbf16, #tpu.memory_space<vmem>>, vector<1x8x1024xbf16>
    %62 = vector.shape_cast %61 : vector<1x8x1024xbf16> to vector<8x1024xbf16>
    %c152 = arith.constant 152 : index
    %c0_66 = arith.constant 0 : index
    %63 = vector.load %arg9[%c152, %c0_66] : memref<216x1024xbf16, #tpu.memory_space<vmem>>, vector<8x1024xbf16>
    tpu.vector_store %arg9[%c152, %c0_66], %62 {strides = array<i32>} : memref<216x1024xbf16, #tpu.memory_space<vmem>>, vector<8x1024xbf16>,
    %c0_67 = arith.constant 0 : index
    %c0_68 = arith.constant 0 : index
    %c202 = arith.constant 202 : index
    %64 = vector.load %arg6[%c0_67, %c0_68, %c202] : memref<1x8x1280xbf16, #tpu.memory_space<vmem>>, vector<1x8x1024xbf16>
    %65 = vector.shape_cast %64 : vector<1x8x1024xbf16> to vector<8x1024xbf16>
    %c160 = arith.constant 160 : index
    %c0_69 = arith.constant 0 : index
    %66 = vector.load %arg9[%c160, %c0_69] : memref<216x1024xbf16, #tpu.memory_space<vmem>>, vector<8x1024xbf16>
    tpu.vector_store %arg9[%c160, %c0_69], %65 {strides = array<i32>} : memref<216x1024xbf16, #tpu.memory_space<vmem>>, vector<8x1024xbf16>,
    %c0_70 = arith.constant 0 : index
    %c0_71 = arith.constant 0 : index
    %c210 = arith.constant 210 : index
    %67 = vector.load %arg6[%c0_70, %c0_71, %c210] : memref<1x8x1280xbf16, #tpu.memory_space<vmem>>, vector<1x8x1024xbf16>
    %68 = vector.shape_cast %67 : vector<1x8x1024xbf16> to vector<8x1024xbf16>
    %c168 = arith.constant 168 : index
    %c0_72 = arith.constant 0 : index
    %69 = vector.load %arg9[%c168, %c0_72] : memref<216x1024xbf16, #tpu.memory_space<vmem>>, vector<8x1024xbf16>
    tpu.vector_store %arg9[%c168, %c0_72], %68 {strides = array<i32>} : memref<216x1024xbf16, #tpu.memory_space<vmem>>, vector<8x1024xbf16>,
    %c0_73 = arith.constant 0 : index
    %c0_74 = arith.constant 0 : index
    %c211 = arith.constant 211 : index
    %70 = vector.load %arg6[%c0_73, %c0_74, %c211] : memref<1x8x1280xbf16, #tpu.memory_space<vmem>>, vector<1x8x1024xbf16>
    %71 = vector.shape_cast %70 : vector<1x8x1024xbf16> to vector<8x1024xbf16>
    %c176 = arith.constant 176 : index
    %c0_75 = arith.constant 0 : index
    %72 = vector.load %arg9[%c176, %c0_75] : memref<216x1024xbf16, #tpu.memory_space<vmem>>, vector<8x1024xbf16>
    tpu.vector_store %arg9[%c176, %c0_75], %71 {strides = array<i32>} : memref<216x1024xbf16, #tpu.memory_space<vmem>>, vector<8x1024xbf16>,
    %c0_76 = arith.constant 0 : index
    %c0_77 = arith.constant 0 : index
    %c212 = arith.constant 212 : index
    %73 = vector.load %arg6[%c0_76, %c0_77, %c212] : memref<1x8x1280xbf16, #tpu.memory_space<vmem>>, vector<1x8x1024xbf16>
    %74 = vector.shape_cast %73 : vector<1x8x1024xbf16> to vector<8x1024xbf16>
    %c184 = arith.constant 184 : index
    %c0_78 = arith.constant 0 : index
    %75 = vector.load %arg9[%c184, %c0_78] : memref<216x1024xbf16, #tpu.memory_space<vmem>>, vector<8x1024xbf16>
    tpu.vector_store %arg9[%c184, %c0_78], %74 {strides = array<i32>} : memref<216x1024xbf16, #tpu.memory_space<vmem>>, vector<8x1024xbf16>,
    %c0_79 = arith.constant 0 : index
    %c0_80 = arith.constant 0 : index
    %c220 = arith.constant 220 : index
    %76 = vector.load %arg6[%c0_79, %c0_80, %c220] : memref<1x8x1280xbf16, #tpu.memory_space<vmem>>, vector<1x8x1024xbf16>
    %77 = vector.shape_cast %76 : vector<1x8x1024xbf16> to vector<8x1024xbf16>
    %c192 = arith.constant 192 : index
    %c0_81 = arith.constant 0 : index
    %78 = vector.load %arg9[%c192, %c0_81] : memref<216x1024xbf16, #tpu.memory_space<vmem>>, vector<8x1024xbf16>
    tpu.vector_store %arg9[%c192, %c0_81], %77 {strides = array<i32>} : memref<216x1024xbf16, #tpu.memory_space<vmem>>, vector<8x1024xbf16>,
    %c0_82 = arith.constant 0 : index
    %c0_83 = arith.constant 0 : index
    %c221 = arith.constant 221 : index
    %79 = vector.load %arg6[%c0_82, %c0_83, %c221] : memref<1x8x1280xbf16, #tpu.memory_space<vmem>>, vector<1x8x1024xbf16>
    %80 = vector.shape_cast %79 : vector<1x8x1024xbf16> to vector<8x1024xbf16>
    %c200_84 = arith.constant 200 : index
    %c0_85 = arith.constant 0 : index
    %81 = vector.load %arg9[%c200_84, %c0_85] : memref<216x1024xbf16, #tpu.memory_space<vmem>>, vector<8x1024xbf16>
    tpu.vector_store %arg9[%c200_84, %c0_85], %80 {strides = array<i32>} : memref<216x1024xbf16, #tpu.memory_space<vmem>>, vector<8x1024xbf16>,
    %c0_86 = arith.constant 0 : index
    %c0_87 = arith.constant 0 : index
    %c222 = arith.constant 222 : index
    %82 = vector.load %arg6[%c0_86, %c0_87, %c222] : memref<1x8x1280xbf16, #tpu.memory_space<vmem>>, vector<1x8x1024xbf16>
    %83 = vector.shape_cast %82 : vector<1x8x1024xbf16> to vector<8x1024xbf16>
    %c208 = arith.constant 208 : index
    %c0_88 = arith.constant 0 : index
    %84 = vector.load %arg9[%c208, %c0_88] : memref<216x1024xbf16, #tpu.memory_space<vmem>>, vector<8x1024xbf16>
    tpu.vector_store %arg9[%c208, %c0_88], %83 {strides = array<i32>} : memref<216x1024xbf16, #tpu.memory_space<vmem>>, vector<8x1024xbf16>,
    %c0_89 = arith.constant 0 : index
    %c0_90 = arith.constant 0 : index
    %c0_91 = arith.constant 0 : index
    %85 = vector.load %arg1[%c0_89, %c0_90, %c0_91] : memref<1x8x216xbf16, #tpu.memory_space<vmem>>, vector<1x8x216xbf16>
    %86 = vector.shape_cast %85 : vector<1x8x216xbf16> to vector<8x216xbf16>
    %c0_92 = arith.constant 0 : index
    %c0_93 = arith.constant 0 : index
    %87 = vector.load %arg9[%c0_92, %c0_93] : memref<216x1024xbf16, #tpu.memory_space<vmem>>, vector<216x1024xbf16>
    %cst_94 = arith.constant dense<0.000000e+00> : vector<8x1024xf32>
    %88 = tpu.matmul %86, %87, %cst_94 {dimension_numbers = #tpu.dot_dimension_numbers<[1], [0], [0], [1], [0, 0, 1, 1], [], []>} : vector<8x216xbf16>, vector<216x1024xbf16>, vector<8x1024xf32> -> vector<8x1024xf32>
    %c0_95 = arith.constant 0 : index
    %c0_96 = arith.constant 0 : index
    %89 = vector.load %arg2[%c0_95, %c0_96] : memref<8x1xf32, #tpu.memory_space<vmem>>, vector<8x1xf32>
    %90 = vector.broadcast %89 : vector<8x1xf32> to vector<8x1024xf32>
    %91 = arith.addf %88, %90 : vector<8x1024xf32>
    %cst_97 = arith.constant 0.000000e+00 : f32
    %92 = vector.broadcast %cst_97 : f32 to vector<8x1024xf32>
    %93 = arith.cmpf ogt, %91, %92 : vector<8x1024xf32>
    %cst_98 = arith.constant 1.000000e-01 : f32
    %94 = vector.broadcast %cst_98 : f32 to vector<8x1024xf32>
    %95 = arith.mulf %94, %91 : vector<8x1024xf32>
    %96 = arith.select %93, %91, %95 : vector<8x1024xi1>, vector<8x1024xf32>
    %c0_99 = arith.constant 0 : index
    %c0_100 = arith.constant 0 : index
    %97 = vector.load %arg5[%c0_99, %c0_100] : memref<1x1024xf32, #tpu.memory_space<vmem>>, vector<1x1024xf32>
    %98 = vector.broadcast %97 : vector<1x1024xf32> to vector<8x1024xf32>
    %99 = arith.mulf %96, %98 : vector<8x1024xf32>
    %100 = arith.truncf %99 : vector<8x1024xf32> to vector<8x1024xbf16>
    %c0_101 = arith.constant 0 : index
    %c128_102 = arith.constant 128 : index
    %101 = vector.load %arg8[%c0_101, %c128_102] : memref<8x1280xbf16, #tpu.memory_space<vmem>>, vector<8x1024xbf16>
    tpu.vector_store %arg8[%c0_101, %c128_102], %100 {strides = array<i32>} : memref<8x1280xbf16, #tpu.memory_space<vmem>>, vector<8x1024xbf16>,
    %c0_103 = arith.constant 0 : index
    %c17 = arith.constant 17 : index
    %102 = vector.load %arg8[%c0_103, %c17] : memref<8x1280xbf16, #tpu.memory_space<vmem>>, vector<8x1024xbf16>
    %c0_104 = arith.constant 0 : index
    %c0_105 = arith.constant 0 : index
    %103 = vector.load %arg10[%c0_104, %c0_105] : memref<216x1024xbf16, #tpu.memory_space<vmem>>, vector<8x1024xbf16>
    tpu.vector_store %arg10[%c0_104, %c0_105], %102 {strides = array<i32>} : memref<216x1024xbf16, #tpu.memory_space<vmem>>, vector<8x1024xbf16>,
    %c0_106 = arith.constant 0 : index
    %c18 = arith.constant 18 : index
    %104 = vector.load %arg8[%c0_106, %c18] : memref<8x1280xbf16, #tpu.memory_space<vmem>>, vector<8x1024xbf16>
    %c8_107 = arith.constant 8 : index
    %c0_108 = arith.constant 0 : index
    %105 = vector.load %arg10[%c8_107, %c0_108] : memref<216x1024xbf16, #tpu.memory_space<vmem>>, vector<8x1024xbf16>
    tpu.vector_store %arg10[%c8_107, %c0_108], %104 {strides = array<i32>} : memref<216x1024xbf16, #tpu.memory_space<vmem>>, vector<8x1024xbf16>,
    %c0_109 = arith.constant 0 : index
    %c19 = arith.constant 19 : index
    %106 = vector.load %arg8[%c0_109, %c19] : memref<8x1280xbf16, #tpu.memory_space<vmem>>, vector<8x1024xbf16>
    %c16_110 = arith.constant 16 : index
    %c0_111 = arith.constant 0 : index
    %107 = vector.load %arg10[%c16_110, %c0_111] : memref<216x1024xbf16, #tpu.memory_space<vmem>>, vector<8x1024xbf16>
    tpu.vector_store %arg10[%c16_110, %c0_111], %106 {strides = array<i32>} : memref<216x1024xbf16, #tpu.memory_space<vmem>>, vector<8x1024xbf16>,
    %c0_112 = arith.constant 0 : index
    %c27 = arith.constant 27 : index
    %108 = vector.load %arg8[%c0_112, %c27] : memref<8x1280xbf16, #tpu.memory_space<vmem>>, vector<8x1024xbf16>
    %c24_113 = arith.constant 24 : index
    %c0_114 = arith.constant 0 : index
    %109 = vector.load %arg10[%c24_113, %c0_114] : memref<216x1024xbf16, #tpu.memory_space<vmem>>, vector<8x1024xbf16>
    tpu.vector_store %arg10[%c24_113, %c0_114], %108 {strides = array<i32>} : memref<216x1024xbf16, #tpu.memory_space<vmem>>, vector<8x1024xbf16>,
    %c0_115 = arith.constant 0 : index
    %c28 = arith.constant 28 : index
    %110 = vector.load %arg8[%c0_115, %c28] : memref<8x1280xbf16, #tpu.memory_space<vmem>>, vector<8x1024xbf16>
    %c32_116 = arith.constant 32 : index
    %c0_117 = arith.constant 0 : index
    %111 = vector.load %arg10[%c32_116, %c0_117] : memref<216x1024xbf16, #tpu.memory_space<vmem>>, vector<8x1024xbf16>
    tpu.vector_store %arg10[%c32_116, %c0_117], %110 {strides = array<i32>} : memref<216x1024xbf16, #tpu.memory_space<vmem>>, vector<8x1024xbf16>,
    %c0_118 = arith.constant 0 : index
    %c29 = arith.constant 29 : index
    %112 = vector.load %arg8[%c0_118, %c29] : memref<8x1280xbf16, #tpu.memory_space<vmem>>, vector<8x1024xbf16>
    %c40_119 = arith.constant 40 : index
    %c0_120 = arith.constant 0 : index
    %113 = vector.load %arg10[%c40_119, %c0_120] : memref<216x1024xbf16, #tpu.memory_space<vmem>>, vector<8x1024xbf16>
    tpu.vector_store %arg10[%c40_119, %c0_120], %112 {strides = array<i32>} : memref<216x1024xbf16, #tpu.memory_space<vmem>>, vector<8x1024xbf16>,
    %c0_121 = arith.constant 0 : index
    %c37 = arith.constant 37 : index
    %114 = vector.load %arg8[%c0_121, %c37] : memref<8x1280xbf16, #tpu.memory_space<vmem>>, vector<8x1024xbf16>
    %c48_122 = arith.constant 48 : index
    %c0_123 = arith.constant 0 : index
    %115 = vector.load %arg10[%c48_122, %c0_123] : memref<216x1024xbf16, #tpu.memory_space<vmem>>, vector<8x1024xbf16>
    tpu.vector_store %arg10[%c48_122, %c0_123], %114 {strides = array<i32>} : memref<216x1024xbf16, #tpu.memory_space<vmem>>, vector<8x1024xbf16>,
    %c0_124 = arith.constant 0 : index
    %c38 = arith.constant 38 : index
    %116 = vector.load %arg8[%c0_124, %c38] : memref<8x1280xbf16, #tpu.memory_space<vmem>>, vector<8x1024xbf16>
    %c56_125 = arith.constant 56 : index
    %c0_126 = arith.constant 0 : index
    %117 = vector.load %arg10[%c56_125, %c0_126] : memref<216x1024xbf16, #tpu.memory_space<vmem>>, vector<8x1024xbf16>
    tpu.vector_store %arg10[%c56_125, %c0_126], %116 {strides = array<i32>} : memref<216x1024xbf16, #tpu.memory_space<vmem>>, vector<8x1024xbf16>,
    %c0_127 = arith.constant 0 : index
    %c39 = arith.constant 39 : index
    %118 = vector.load %arg8[%c0_127, %c39] : memref<8x1280xbf16, #tpu.memory_space<vmem>>, vector<8x1024xbf16>
    %c64_128 = arith.constant 64 : index
    %c0_129 = arith.constant 0 : index
    %119 = vector.load %arg10[%c64_128, %c0_129] : memref<216x1024xbf16, #tpu.memory_space<vmem>>, vector<8x1024xbf16>
    tpu.vector_store %arg10[%c64_128, %c0_129], %118 {strides = array<i32>} : memref<216x1024xbf16, #tpu.memory_space<vmem>>, vector<8x1024xbf16>,
    %c0_130 = arith.constant 0 : index
    %c117 = arith.constant 117 : index
    %120 = vector.load %arg8[%c0_130, %c117] : memref<8x1280xbf16, #tpu.memory_space<vmem>>, vector<8x1024xbf16>
    %c72_131 = arith.constant 72 : index
    %c0_132 = arith.constant 0 : index
    %121 = vector.load %arg10[%c72_131, %c0_132] : memref<216x1024xbf16, #tpu.memory_space<vmem>>, vector<8x1024xbf16>
    tpu.vector_store %arg10[%c72_131, %c0_132], %120 {strides = array<i32>} : memref<216x1024xbf16, #tpu.memory_space<vmem>>, vector<8x1024xbf16>,
    %c0_133 = arith.constant 0 : index
    %c118 = arith.constant 118 : index
    %122 = vector.load %arg8[%c0_133, %c118] : memref<8x1280xbf16, #tpu.memory_space<vmem>>, vector<8x1024xbf16>
    %c80_134 = arith.constant 80 : index
    %c0_135 = arith.constant 0 : index
    %123 = vector.load %arg10[%c80_134, %c0_135] : memref<216x1024xbf16, #tpu.memory_space<vmem>>, vector<8x1024xbf16>
    tpu.vector_store %arg10[%c80_134, %c0_135], %122 {strides = array<i32>} : memref<216x1024xbf16, #tpu.memory_space<vmem>>, vector<8x1024xbf16>,
    %c0_136 = arith.constant 0 : index
    %c119 = arith.constant 119 : index
    %124 = vector.load %arg8[%c0_136, %c119] : memref<8x1280xbf16, #tpu.memory_space<vmem>>, vector<8x1024xbf16>
    %c88_137 = arith.constant 88 : index
    %c0_138 = arith.constant 0 : index
    %125 = vector.load %arg10[%c88_137, %c0_138] : memref<216x1024xbf16, #tpu.memory_space<vmem>>, vector<8x1024xbf16>
    tpu.vector_store %arg10[%c88_137, %c0_138], %124 {strides = array<i32>} : memref<216x1024xbf16, #tpu.memory_space<vmem>>, vector<8x1024xbf16>,
    %c0_139 = arith.constant 0 : index
    %c127 = arith.constant 127 : index
    %126 = vector.load %arg8[%c0_139, %c127] : memref<8x1280xbf16, #tpu.memory_space<vmem>>, vector<8x1024xbf16>
    %c96_140 = arith.constant 96 : index
    %c0_141 = arith.constant 0 : index
    %127 = vector.load %arg10[%c96_140, %c0_141] : memref<216x1024xbf16, #tpu.memory_space<vmem>>, vector<8x1024xbf16>
    tpu.vector_store %arg10[%c96_140, %c0_141], %126 {strides = array<i32>} : memref<216x1024xbf16, #tpu.memory_space<vmem>>, vector<8x1024xbf16>,
    %c0_142 = arith.constant 0 : index
    %c128_143 = arith.constant 128 : index
    %128 = vector.load %arg8[%c0_142, %c128_143] : memref<8x1280xbf16, #tpu.memory_space<vmem>>, vector<8x1024xbf16>
    %c104_144 = arith.constant 104 : index
    %c0_145 = arith.constant 0 : index
    %129 = vector.load %arg10[%c104_144, %c0_145] : memref<216x1024xbf16, #tpu.memory_space<vmem>>, vector<8x1024xbf16>
    tpu.vector_store %arg10[%c104_144, %c0_145], %128 {strides = array<i32>} : memref<216x1024xbf16, #tpu.memory_space<vmem>>, vector<8x1024xbf16>,
    %c0_146 = arith.constant 0 : index
    %c129 = arith.constant 129 : index
    %130 = vector.load %arg8[%c0_146, %c129] : memref<8x1280xbf16, #tpu.memory_space<vmem>>, vector<8x1024xbf16>
    %c112_147 = arith.constant 112 : index
    %c0_148 = arith.constant 0 : index
    %131 = vector.load %arg10[%c112_147, %c0_148] : memref<216x1024xbf16, #tpu.memory_space<vmem>>, vector<8x1024xbf16>
    tpu.vector_store %arg10[%c112_147, %c0_148], %130 {strides = array<i32>} : memref<216x1024xbf16, #tpu.memory_space<vmem>>, vector<8x1024xbf16>,
    %c0_149 = arith.constant 0 : index
    %c137 = arith.constant 137 : index
    %132 = vector.load %arg8[%c0_149, %c137] : memref<8x1280xbf16, #tpu.memory_space<vmem>>, vector<8x1024xbf16>
    %c120_150 = arith.constant 120 : index
    %c0_151 = arith.constant 0 : index
    %133 = vector.load %arg10[%c120_150, %c0_151] : memref<216x1024xbf16, #tpu.memory_space<vmem>>, vector<8x1024xbf16>
    tpu.vector_store %arg10[%c120_150, %c0_151], %132 {strides = array<i32>} : memref<216x1024xbf16, #tpu.memory_space<vmem>>, vector<8x1024xbf16>,
    %c0_152 = arith.constant 0 : index
    %c138 = arith.constant 138 : index
    %134 = vector.load %arg8[%c0_152, %c138] : memref<8x1280xbf16, #tpu.memory_space<vmem>>, vector<8x1024xbf16>
    %c128_153 = arith.constant 128 : index
    %c0_154 = arith.constant 0 : index
    %135 = vector.load %arg10[%c128_153, %c0_154] : memref<216x1024xbf16, #tpu.memory_space<vmem>>, vector<8x1024xbf16>
    tpu.vector_store %arg10[%c128_153, %c0_154], %134 {strides = array<i32>} : memref<216x1024xbf16, #tpu.memory_space<vmem>>, vector<8x1024xbf16>,
    %c0_155 = arith.constant 0 : index
    %c139 = arith.constant 139 : index
    %136 = vector.load %arg8[%c0_155, %c139] : memref<8x1280xbf16, #tpu.memory_space<vmem>>, vector<8x1024xbf16>
    %c136_156 = arith.constant 136 : index
    %c0_157 = arith.constant 0 : index
    %137 = vector.load %arg10[%c136_156, %c0_157] : memref<216x1024xbf16, #tpu.memory_space<vmem>>, vector<8x1024xbf16>
    tpu.vector_store %arg10[%c136_156, %c0_157], %136 {strides = array<i32>} : memref<216x1024xbf16, #tpu.memory_space<vmem>>, vector<8x1024xbf16>,
    %c0_158 = arith.constant 0 : index
    %c217 = arith.constant 217 : index
    %138 = vector.load %arg8[%c0_158, %c217] : memref<8x1280xbf16, #tpu.memory_space<vmem>>, vector<8x1024xbf16>
    %c144_159 = arith.constant 144 : index
    %c0_160 = arith.constant 0 : index
    %139 = vector.load %arg10[%c144_159, %c0_160] : memref<216x1024xbf16, #tpu.memory_space<vmem>>, vector<8x1024xbf16>
    tpu.vector_store %arg10[%c144_159, %c0_160], %138 {strides = array<i32>} : memref<216x1024xbf16, #tpu.memory_space<vmem>>, vector<8x1024xbf16>,
    %c0_161 = arith.constant 0 : index
    %c218 = arith.constant 218 : index
    %140 = vector.load %arg8[%c0_161, %c218] : memref<8x1280xbf16, #tpu.memory_space<vmem>>, vector<8x1024xbf16>
    %c152_162 = arith.constant 152 : index
    %c0_163 = arith.constant 0 : index
    %141 = vector.load %arg10[%c152_162, %c0_163] : memref<216x1024xbf16, #tpu.memory_space<vmem>>, vector<8x1024xbf16>
    tpu.vector_store %arg10[%c152_162, %c0_163], %140 {strides = array<i32>} : memref<216x1024xbf16, #tpu.memory_space<vmem>>, vector<8x1024xbf16>,
    %c0_164 = arith.constant 0 : index
    %c219 = arith.constant 219 : index
    %142 = vector.load %arg8[%c0_164, %c219] : memref<8x1280xbf16, #tpu.memory_space<vmem>>, vector<8x1024xbf16>
    %c160_165 = arith.constant 160 : index
    %c0_166 = arith.constant 0 : index
    %143 = vector.load %arg10[%c160_165, %c0_166] : memref<216x1024xbf16, #tpu.memory_space<vmem>>, vector<8x1024xbf16>
    tpu.vector_store %arg10[%c160_165, %c0_166], %142 {strides = array<i32>} : memref<216x1024xbf16, #tpu.memory_space<vmem>>, vector<8x1024xbf16>,
    %c0_167 = arith.constant 0 : index
    %c227 = arith.constant 227 : index
    %144 = vector.load %arg8[%c0_167, %c227] : memref<8x1280xbf16, #tpu.memory_space<vmem>>, vector<8x1024xbf16>
    %c168_168 = arith.constant 168 : index
    %c0_169 = arith.constant 0 : index
    %145 = vector.load %arg10[%c168_168, %c0_169] : memref<216x1024xbf16, #tpu.memory_space<vmem>>, vector<8x1024xbf16>
    tpu.vector_store %arg10[%c168_168, %c0_169], %144 {strides = array<i32>} : memref<216x1024xbf16, #tpu.memory_space<vmem>>, vector<8x1024xbf16>,
    %c0_170 = arith.constant 0 : index
    %c228 = arith.constant 228 : index
    %146 = vector.load %arg8[%c0_170, %c228] : memref<8x1280xbf16, #tpu.memory_space<vmem>>, vector<8x1024xbf16>
    %c176_171 = arith.constant 176 : index
    %c0_172 = arith.constant 0 : index
    %147 = vector.load %arg10[%c176_171, %c0_172] : memref<216x1024xbf16, #tpu.memory_space<vmem>>, vector<8x1024xbf16>
    tpu.vector_store %arg10[%c176_171, %c0_172], %146 {strides = array<i32>} : memref<216x1024xbf16, #tpu.memory_space<vmem>>, vector<8x1024xbf16>,
    %c0_173 = arith.constant 0 : index
    %c229 = arith.constant 229 : index
    %148 = vector.load %arg8[%c0_173, %c229] : memref<8x1280xbf16, #tpu.memory_space<vmem>>, vector<8x1024xbf16>
    %c184_174 = arith.constant 184 : index
    %c0_175 = arith.constant 0 : index
    %149 = vector.load %arg10[%c184_174, %c0_175] : memref<216x1024xbf16, #tpu.memory_space<vmem>>, vector<8x1024xbf16>
    tpu.vector_store %arg10[%c184_174, %c0_175], %148 {strides = array<i32>} : memref<216x1024xbf16, #tpu.memory_space<vmem>>, vector<8x1024xbf16>,
    %c0_176 = arith.constant 0 : index
    %c237 = arith.constant 237 : index
    %150 = vector.load %arg8[%c0_176, %c237] : memref<8x1280xbf16, #tpu.memory_space<vmem>>, vector<8x1024xbf16>
    %c192_177 = arith.constant 192 : index
    %c0_178 = arith.constant 0 : index
    %151 = vector.load %arg10[%c192_177, %c0_178] : memref<216x1024xbf16, #tpu.memory_space<vmem>>, vector<8x1024xbf16>
    tpu.vector_store %arg10[%c192_177, %c0_178], %150 {strides = array<i32>} : memref<216x1024xbf16, #tpu.memory_space<vmem>>, vector<8x1024xbf16>,
    %c0_179 = arith.constant 0 : index
    %c238 = arith.constant 238 : index
    %152 = vector.load %arg8[%c0_179, %c238] : memref<8x1280xbf16, #tpu.memory_space<vmem>>, vector<8x1024xbf16>
    %c200_180 = arith.constant 200 : index
    %c0_181 = arith.constant 0 : index
    %153 = vector.load %arg10[%c200_180, %c0_181] : memref<216x1024xbf16, #tpu.memory_space<vmem>>, vector<8x1024xbf16>
    tpu.vector_store %arg10[%c200_180, %c0_181], %152 {strides = array<i32>} : memref<216x1024xbf16, #tpu.memory_space<vmem>>, vector<8x1024xbf16>,
    %c0_182 = arith.constant 0 : index
    %c239 = arith.constant 239 : index
    %154 = vector.load %arg8[%c0_182, %c239] : memref<8x1280xbf16, #tpu.memory_space<vmem>>, vector<8x1024xbf16>
    %c208_183 = arith.constant 208 : index
    %c0_184 = arith.constant 0 : index
    %155 = vector.load %arg10[%c208_183, %c0_184] : memref<216x1024xbf16, #tpu.memory_space<vmem>>, vector<8x1024xbf16>
    tpu.vector_store %arg10[%c208_183, %c0_184], %154 {strides = array<i32>} : memref<216x1024xbf16, #tpu.memory_space<vmem>>, vector<8x1024xbf16>,
    %c0_185 = arith.constant 0 : index
    %c0_186 = arith.constant 0 : index
    %c0_187 = arith.constant 0 : index
    %156 = vector.load %arg3[%c0_185, %c0_186, %c0_187] : memref<1x8x216xbf16, #tpu.memory_space<vmem>>, vector<1x8x216xbf16>
    %157 = vector.shape_cast %156 : vector<1x8x216xbf16> to vector<8x216xbf16>
    %c0_188 = arith.constant 0 : index
    %c0_189 = arith.constant 0 : index
    %158 = vector.load %arg10[%c0_188, %c0_189] : memref<216x1024xbf16, #tpu.memory_space<vmem>>, vector<216x1024xbf16>
    %cst_190 = arith.constant dense<0.000000e+00> : vector<8x1024xf32>
    %159 = tpu.matmul %157, %158, %cst_190 {dimension_numbers = #tpu.dot_dimension_numbers<[1], [0], [0], [1], [0, 0, 1, 1], [], []>} : vector<8x216xbf16>, vector<216x1024xbf16>, vector<8x1024xf32> -> vector<8x1024xf32>
    %c0_191 = arith.constant 0 : index
    %c0_192 = arith.constant 0 : index
    %160 = vector.load %arg4[%c0_191, %c0_192] : memref<8x1xf32, #tpu.memory_space<vmem>>, vector<8x1xf32>
    %161 = vector.broadcast %160 : vector<8x1xf32> to vector<8x1024xf32>
    %162 = arith.addf %159, %161 : vector<8x1024xf32>
    %cst_193 = arith.constant 0.000000e+00 : f32
    %163 = vector.broadcast %cst_193 : f32 to vector<8x1024xf32>
    %164 = arith.cmpf ogt, %162, %163 : vector<8x1024xf32>
    %cst_194 = arith.constant 1.000000e-01 : f32
    %165 = vector.broadcast %cst_194 : f32 to vector<8x1024xf32>
    %166 = arith.mulf %165, %162 : vector<8x1024xf32>
    %167 = arith.select %164, %162, %166 : vector<8x1024xi1>, vector<8x1024xf32>
    %168 = arith.truncf %167 : vector<8x1024xf32> to vector<8x1024xbf16>
    %c0_195 = arith.constant 0 : index
    %c0_196 = arith.constant 0 : index
    %c0_197 = arith.constant 0 : index
    %169 = vector.load %arg7[%c0_195, %c0_196, %c0_197] : memref<1x8x1024xbf16, #tpu.memory_space<vmem>>, vector<1x8x1024xbf16>
    %170 = vector.shape_cast %169 : vector<1x8x1024xbf16> to vector<8x1024xbf16>
    %171 = vector.shape_cast %168 : vector<8x1024xbf16> to vector<1x8x1024xbf16>
    tpu.vector_store %arg7[%c0_195, %c0_196, %c0_197], %171 {strides = array<i32>} : memref<1x8x1024xbf16, #tpu.memory_space<vmem>>, vector<1x8x1024xbf16>,
    return
  }
  func.func @transform_0(%arg0: i32) -> (i32, i32, i32) {
    %c0_i32 = arith.constant 0 : i32
    %c0_i32_0 = arith.constant 0 : i32
    %c0_i32_1 = arith.constant 0 : i32
    %c0_i32_2 = arith.constant 0 : i32
    return %c0_i32, %c0_i32_0, %c0_i32_1 : i32, i32, i32
  }
  func.func @transform_1(%arg0: i32) -> (i32, i32) {
    %c0_i32 = arith.constant 0 : i32
    %c0_i32_0 = arith.constant 0 : i32
    %c0_i32_1 = arith.constant 0 : i32
    return %c0_i32, %c0_i32_0 : i32, i32
  }
  func.func @transform_2(%arg0: i32) -> (i32, i32, i32) {
    %c0_i32 = arith.constant 0 : i32
    %c0_i32_0 = arith.constant 0 : i32
    %c0_i32_1 = arith.constant 0 : i32
    %c0_i32_2 = arith.constant 0 : i32
    return %c0_i32, %c0_i32_0, %c0_i32_1 : i32, i32, i32
  }
  func.func @transform_3(%arg0: i32) -> (i32, i32) {
    %c0_i32 = arith.constant 0 : i32
    %c0_i32_0 = arith.constant 0 : i32
    %c0_i32_1 = arith.constant 0 : i32
    return %c0_i32, %c0_i32_0 : i32, i32
  }
  func.func @transform_4(%arg0: i32) -> (i32, i32) {
    %c0_i32 = arith.constant 0 : i32
    %c0_i32_0 = arith.constant 0 : i32
    %c0_i32_1 = arith.constant 0 : i32
    return %c0_i32, %c0_i32_0 : i32, i32
  }
  func.func @transform_5(%arg0: i32) -> (i32, i32, i32) {
    %c0_i32 = arith.constant 0 : i32
    %c0_i32_0 = arith.constant 0 : i32
    %c0_i32_1 = arith.constant 0 : i32
    return %arg0, %c0_i32, %c0_i32_0 : i32, i32, i32
  }
  func.func @transform_6(%arg0: i32) -> (i32, i32, i32) {
    %c0_i32 = arith.constant 0 : i32
    %c0_i32_0 = arith.constant 0 : i32
    %c0_i32_1 = arith.constant 0 : i32
    return %arg0, %c0_i32, %c0_i32_0 : i32, i32, i32
  }
}

module attributes {stable_mosaic.version = 11 : i64} {
  func.func @_devox_point_kernel(%arg0: i32, %arg1: i32, %arg2: memref<8x8xbf16, #tpu.memory_space<vmem>>, %arg3: memref<8x1xf32, #tpu.memory_space<vmem>>, %arg4: memref<1x8x128xbf16, #tpu.memory_space<vmem>>, %arg5: memref<1x8x1024xbf16, #tpu.memory_space<vmem>>, %arg6: memref<1x1024x128xbf16, #tpu.memory_space<vmem>>, %arg7: memref<1x8x128xf32, #tpu.memory_space<vmem>>) attributes {dimension_semantics = [#tpu.dimension_semantics<parallel>, #tpu.dimension_semantics<parallel>], iteration_bounds = array<i64: 2, 1>, scalar_prefetch = 0 : i64, scratch_operands = 0 : i64, tpu.core_type = #tpu.core_type<tc>, window_params = [{pipeline_mode = #tpu.pipeline_mode<synchronous>, transform_indices = @transform_0, window_bounds = array<i64: 8, 8>}, {pipeline_mode = #tpu.pipeline_mode<synchronous>, transform_indices = @transform_1, window_bounds = array<i64: 8, 1>}, {transform_indices = @transform_2, window_bounds = array<i64: 1, 8, 128>}, {transform_indices = @transform_3, window_bounds = array<i64: 1, 8, 1024>}, {transform_indices = @transform_4, window_bounds = array<i64: 1, 1024, 128>}, {transform_indices = @transform_5, window_bounds = array<i64: 1, 8, 128>}]} {
    %c0 = arith.constant 0 : index
    %c0_0 = arith.constant 0 : index
    %0 = vector.load %arg2[%c0, %c0_0] : memref<8x8xbf16, #tpu.memory_space<vmem>>, vector<8x8xbf16>
    %c0_1 = arith.constant 0 : index
    %c0_2 = arith.constant 0 : index
    %c0_3 = arith.constant 0 : index
    %1 = vector.load %arg4[%c0_1, %c0_2, %c0_3] : memref<1x8x128xbf16, #tpu.memory_space<vmem>>, vector<1x8x128xbf16>
    %2 = vector.shape_cast %1 : vector<1x8x128xbf16> to vector<8x128xbf16>
    %cst = arith.constant dense<0.000000e+00> : vector<8x128xf32>
    %3 = tpu.matmul %0, %2, %cst {dimension_numbers = #tpu.dot_dimension_numbers<[1], [0], [0], [1], [0, 0, 1, 1], [], []>} : vector<8x8xbf16>, vector<8x128xbf16>, vector<8x128xf32> -> vector<8x128xf32>
    %c0_4 = arith.constant 0 : index
    %c0_5 = arith.constant 0 : index
    %4 = vector.load %arg3[%c0_4, %c0_5] : memref<8x1xf32, #tpu.memory_space<vmem>>, vector<8x1xf32>
    %5 = vector.broadcast %4 : vector<8x1xf32> to vector<8x128xf32>
    %6 = arith.addf %3, %5 : vector<8x128xf32>
    %cst_6 = arith.constant 0.000000e+00 : f32
    %7 = vector.broadcast %cst_6 : f32 to vector<8x128xf32>
    %8 = arith.cmpf ogt, %6, %7 : vector<8x128xf32>
    %cst_7 = arith.constant 1.000000e-01 : f32
    %9 = vector.broadcast %cst_7 : f32 to vector<8x128xf32>
    %10 = arith.mulf %9, %6 : vector<8x128xf32>
    %11 = arith.select %8, %6, %10 : vector<8x128xi1>, vector<8x128xf32>
    %c0_8 = arith.constant 0 : index
    %c0_9 = arith.constant 0 : index
    %c0_10 = arith.constant 0 : index
    %12 = vector.load %arg5[%c0_8, %c0_9, %c0_10] : memref<1x8x1024xbf16, #tpu.memory_space<vmem>>, vector<1x8x1024xbf16>
    %13 = vector.shape_cast %12 : vector<1x8x1024xbf16> to vector<8x1024xbf16>
    %c0_11 = arith.constant 0 : index
    %c0_12 = arith.constant 0 : index
    %c0_13 = arith.constant 0 : index
    %14 = vector.load %arg6[%c0_11, %c0_12, %c0_13] : memref<1x1024x128xbf16, #tpu.memory_space<vmem>>, vector<1x1024x128xbf16>
    %15 = vector.shape_cast %14 : vector<1x1024x128xbf16> to vector<1024x128xbf16>
    %cst_14 = arith.constant dense<0.000000e+00> : vector<8x128xf32>
    %16 = tpu.matmul %13, %15, %cst_14 {dimension_numbers = #tpu.dot_dimension_numbers<[1], [0], [0], [1], [0, 0, 1, 1], [], []>} : vector<8x1024xbf16>, vector<1024x128xbf16>, vector<8x128xf32> -> vector<8x128xf32>
    %17 = arith.addf %11, %16 : vector<8x128xf32>
    %c0_15 = arith.constant 0 : index
    %c0_16 = arith.constant 0 : index
    %c0_17 = arith.constant 0 : index
    %18 = vector.load %arg7[%c0_15, %c0_16, %c0_17] : memref<1x8x128xf32, #tpu.memory_space<vmem>>, vector<1x8x128xf32>
    %19 = vector.shape_cast %18 : vector<1x8x128xf32> to vector<8x128xf32>
    %20 = vector.shape_cast %17 : vector<8x128xf32> to vector<1x8x128xf32>
    tpu.vector_store %arg7[%c0_15, %c0_16, %c0_17], %20 {strides = array<i32>} : memref<1x8x128xf32, #tpu.memory_space<vmem>>, vector<1x8x128xf32>,
    return
  }
  func.func @transform_0(%arg0: i32, %arg1: i32) -> (i32, i32) {
    %c0_i32 = arith.constant 0 : i32
    %c0_i32_0 = arith.constant 0 : i32
    %c0_i32_1 = arith.constant 0 : i32
    return %c0_i32, %c0_i32_0 : i32, i32
  }
  func.func @transform_1(%arg0: i32, %arg1: i32) -> (i32, i32) {
    %c0_i32 = arith.constant 0 : i32
    %c0_i32_0 = arith.constant 0 : i32
    %c0_i32_1 = arith.constant 0 : i32
    return %c0_i32, %c0_i32_0 : i32, i32
  }
  func.func @transform_2(%arg0: i32, %arg1: i32) -> (i32, i32, i32) {
    %c0_i32 = arith.constant 0 : i32
    %c0_i32_0 = arith.constant 0 : i32
    return %arg0, %c0_i32, %arg1 : i32, i32, i32
  }
  func.func @transform_3(%arg0: i32, %arg1: i32) -> (i32, i32, i32) {
    %c0_i32 = arith.constant 0 : i32
    %c0_i32_0 = arith.constant 0 : i32
    %c0_i32_1 = arith.constant 0 : i32
    return %arg0, %c0_i32, %c0_i32_0 : i32, i32, i32
  }
  func.func @transform_4(%arg0: i32, %arg1: i32) -> (i32, i32, i32) {
    %c0_i32 = arith.constant 0 : i32
    %c0_i32_0 = arith.constant 0 : i32
    return %arg0, %c0_i32, %arg1 : i32, i32, i32
  }
  func.func @transform_5(%arg0: i32, %arg1: i32) -> (i32, i32, i32) {
    %c0_i32 = arith.constant 0 : i32
    %c0_i32_0 = arith.constant 0 : i32
    return %arg0, %c0_i32, %arg1 : i32, i32, i32
  }
}

</mosaic_0001>

<bundles_post_ra>
// kernel: pvconv_forward.3
= control target key start
LH: loop header
LB: loop body
LE: loop exit
PB: predicated region body
PF: predicated region fallthrough
CT: control target
= control target key end

     0   :  { %10 = vsyncpa [#allocation3], 0  ;;  %s1810_s0 = inlined_call_operand.vmem [shape: bf16[8,8], index: 0, kind: input, shape index: {}]   ;;  %s1811_s1 = inlined_call_operand.vmem [shape: f32[8,1], index: 1, kind: input, shape index: {}]   ;;  %s1812_s2 = inlined_call_operand.vmem [shape: bf16[2,8,128], index: 2, kind: input, shape index: {}]   ;;  %s1813_s3 = inlined_call_operand.vmem [shape: bf16[2,8,1024], index: 3, kind: input, shape index: {}]   ;;  %s1814_s4 = inlined_call_operand.vmem [shape: bf16[2,1024,128], index: 4, kind: input, shape index: {}]   ;;  %s1815_s5 = inlined_call_operand.hbm [shape: f32[2,8,128], index: 5, kind: output, shape index: {}]  }
   0x1   :  { %12 = vsyncpa [#allocation3 + $0x1], 0  ;;  %s1609_s18 = smov 0   ;;  %s1611_s19 = smov 0  }
   0x2   :  { %s1613_s20 = smov 0   ;;  %s1615_s21 = smov 0  }
   0x3   :  { %s1617_s22 = smov 0   ;;  %s1619_s23 = smov 0  }
   0x4 LB: > { %s1178_s24 = sadd.s32 4294967295, %s1573_s23   ;;  %s1179_s25 = sadd.s32 4294967294, %s1573_s23   ;;  %s1573_s23 = sphi %s1619_s23, %s18_s23   ;;  %s1569_s22 = sphi %s1617_s22, %s1822_s22   ;;  %s1565_s21 = sphi %s1615_s21, %s1821_s21   ;;  %s1561_s20 = sphi %s1613_s20, %s1820_s20   ;;  %s1557_s19 = sphi %s1611_s19, %s1819_s19   ;;  %s1553_s18 = sphi %s1609_s18, %s1818_s18  }
   0x5   : > { %s30_s26 = sadd.s32 1, %s1569_s22  ;;  %s163_s27 = sadd.s32 1, %s1561_s20 }
   0x6   : > { %p32_p0 = scmp.ge.s32.totalorder %s30_s26, 2  ;;  %p173_p1 = scmp.ne.s32.totalorder %s1561_s20, %s1557_s19 }
   0x7   : > { %p174_p2 = scmp.eq.s32.totalorder %s1178_s24, 1  ;;  %p179_p3 = scmp.ne.s32.totalorder %s1557_s19, %s1553_s18 }
   0x8   : > { %s1824_s26 = smov (%p32_p0, %s30_s26), 0  ;;  %p180_p5 = scmp.eq.s32.totalorder %s1179_s25, 1 }
   0x9   : > { %p1649_p4 = por %p174_p2, %p173_p1  ;;  %s158_s29 = ssub.s32 %s1569_s22, %s1824_s26 }
   0xa   : > { %p1182_p6 = scmp.ge.s32.totalorder %s1573_s23, 1  ;;  %p161_p7 = scmp.eq.s32.totalorder %s158_s29, 0 }
   0xb   : > { %p1656_p8 = por %p180_p5, %p179_p3  ;;  %p233_p9 = scmp.lt.s32.totalorder %s1573_s23, 3 }
   0xc   : > { %s1662_s6 = scalar_select %p161_p7, %s1561_s20, %s163_s27  }
   0xd   : > { %p234_p10 = pnand %p1182_p6, %p233_p9 }
   0xe   : > { %p276_p11 = scmp.lt.s32.totalorder (!%p234_p10), %s1565_s21, 1  ;;  %v1575_v0 = vmov (!%p234_p10), 0.0   ;;  %vm1576_vm0 = vmmov (!%p234_p10), 0   ;;  %v299_v1 = vld [vmem:[%s1811_s1] sm:$0xff] (!%p234_p10)  ;;  %v1577_v2 = vmov (!%p234_p10), 0   ;;  %vm309_vm1 = vcmask (!%p234_p10), 1043456  }
   0xf   : > { %237 = sbr.rel (%p234_p10) target bundleno = 328 (0x148), region = 40  ;;  %1358 = vmatprep.subr.bf16.mxu0 (!%p234_p10), %v1575_v0  ;;  %1360 = vmatprep.mubr.msk.bf16.mxu0 (!%p234_p10), %vm1576_vm0, %v1575_v0  ;;  %v297_v4 = vld [vmem:[%s1810_s0] sm:$0xf] (!%p234_p10)  ;;  %vm305_vm2 = vcmask (!%p234_p10), 64512  }
  0x10   : > { %1422 = vset.pattern.permute.xlu0 (!%p234_p10), %v1577_v2 }
  0x11   : > { %302 = vperm.xlu0 (!%p234_p10), %1422, %v299_v1  }
  0x16   : > { %s1669_s9 = scalar_select %p276_p11, %s1565_s21, 1 }
  0x18   : > { %s1184_s10 = sshll.u32 %s1669_s9, 2  ;;  %s1267_s11 = sshll.u32 %s1669_s9, 9 }
  0x19   : > { %s282_s14 = scalar_lea.vmem %s1812_s2, %s1184_s10  ;;  %s1679_s17 = scalar_lea.vmem %s1814_s4, %s1267_s11 }
  0x1a   : > { %v298_v3 = vld [vmem:[%s282_s14] sm:$0xf]  ;;  %v1427_v10 = vld [vmem:[%s1679_s17 + $0x48] sm:$0xff]   ;;  %v1431_v14 = vld [vmem:[%s1679_s17 + $0x50] sm:$0xff]   ;;  %s1266_s27 = sshll.u32 %s1669_s9, 5  ;;  %s273_s9 = sand.u32 1, %s1557_s19  }
  0x1b   : > { %v311_v5 = vsel %vm309_vm1, %v298_v3, 0  ;;  %v1423_v6 = vld [vmem:[%s1679_s17 + $0x40] sm:$0xff]   ;;  %v1428_v11 = vld [vmem:[%s1679_s17 + $0x8] sm:$0xff]   ;;  %v1432_v15 = vld [vmem:[%s1679_s17 + $0x10] sm:$0xff]   ;;  %s1716_s8 = scalar_lea.vmem %s1813_s3, %s1266_s27  ;;  %s1183_s10 = sshll.u32 %s273_s9, 3 }
  0x1c   : > { %1359 = vmatpush3.bf16.msra.mxu0 %v311_v5  ;;  %v1424_v7 = vld [vmem:[%s1679_s17] sm:$0xff]   ;;  %1270 = vmatprep.subr.bf16.mxu1 %v1423_v6  ;;  %v1429_v12 = vld [vmem:[%s1679_s17 + $0xc8] sm:$0xff]   ;;  %v1433_v16 = vld [vmem:[%s1679_s17 + $0xd0] sm:$0xff]   ;;  %s1263_s11 = sshll.u32 %s1565_s21, 7  ;;  %s275_s12 = scalar_lea.vmem [#allocation2], %s1183_s10 }
  0x1d   : > { %v1425_v8 = vld [vmem:[%s1679_s17 + $0xc0] sm:$0xff]   ;;  %1271 = vmatpush3.bf16.msra.mxu1 %v1424_v7  ;;  %v1430_v13 = vld [vmem:[%s1679_s17 + $0x88] sm:$0xff]   ;;  %v1434_v17 = vld [vmem:[%s1679_s17 + $0x90] sm:$0xff]   ;;  %s1077_s13 = sshll.u32 %s275_s12, 4  ;;  %s1763_s16 = scalar_lea.hbm %s1815_s5, %s1263_s11  ;;  %s1765_s13 = int_to_ptr.vmem [resolvable:$true] %s1077_s13 }
  0x1e   : > { %v1426_v9 = vld [vmem:[%s1679_s17 + $0x80] sm:$0xff]   ;;  %1292 = vmatprep.subr.bf16.mxu0 %v1425_v8  ;;  %1272 = vmatprep.subr.bf16.mxu1 %v1427_v10  ;;  %v1435_v18 = vld [vmem:[%s1679_s17 + $0x58] sm:$0xff]   ;;  %v1443_v26 = vld [vmem:[%s1679_s17 + $0x68] sm:$0xff]   ;;  %s1495_s24 = scalar_lea.vmem %s1765_s13, 128  ;;  %s1578_s21 = smov [#allocation2]  }
  0x1f   : > { %1361 = vmatmul.mubr.msk.bf16.vlgmr.msra.gmra.mrb[0].mxu0 %vm305_vm2, %v297_v4  ;;  %v1436_v19 = vld [vmem:[%s1679_s17 + $0x18] sm:$0xff]   ;;  %v1439_v22 = vld [vmem:[%s1679_s17 + $0x60] sm:$0xff]   ;;  %v1444_v27 = vld [vmem:[%s1679_s17 + $0x28] sm:$0xff]   ;;  %p1496_p12 = scmp.ne.s32.totalorder %s1765_s13, %s1495_s24  ;;  %s1499_s25 = sshll.u32 %s1578_s21, 4  ;;  %s1500_s25 = int_to_ptr.vmem [resolvable:$false] %s1499_s25 }
  0x20   : > { %1293 = vmatpush3.bf16.msra.mxu0 %v1426_v9  ;;  %v1437_v20 = vld [vmem:[%s1679_s17 + $0xd8] sm:$0xff]   ;;  %v1440_v23 = vld [vmem:[%s1679_s17 + $0x20] sm:$0xff]   ;;  %v1445_v28 = vld [vmem:[%s1679_s17 + $0xe8] sm:$0xff]   ;;  %s1501_s27 = scalar_lea.vmem %s1500_s25, 256  ;;  %p1502_p1 = scmp.lt.s32.totalorder %s1765_s13, %s1500_s25 }
  0x21   : > { %1273 = vmatpush3.bf16.msra.mxu1 %v1428_v11  ;;  %1294 = vmatprep.subr.bf16.mxu0 %v1429_v12  ;;  %v1438_v21 = vld [vmem:[%s1679_s17 + $0x98] sm:$0xff]   ;;  %v1441_v24 = vld [vmem:[%s1679_s17 + $0xe0] sm:$0xff]   ;;  %v1446_v29 = vld [vmem:[%s1679_s17 + $0xa8] sm:$0xff]   ;;  %p1497_p13 = pnand %p1496_p12, %p1649_p4  ;;  %p1503_p2 = scmp.lt.s32.totalorder %s1501_s27, %s1495_s24 }
  0x22   : > { %1274 = vmatprep.subr.bf16.mxu1 %v1431_v14  ;;  %v1442_v25 = vld [vmem:[%s1679_s17 + $0xa0] sm:$0xff]   ;;  %v1447_v30 = vld [vmem:[%s1679_s17 + $0x70] sm:$0xff]   ;;  %v1451_v34 = vld [vmem:[%s1679_s17 + $0x78] sm:$0xff]  }
  0x23   : > { %v1448_v31 = vld [vmem:[%s1679_s17 + $0x30] sm:$0xff]   ;;  %v1452_v35 = vld [vmem:[%s1679_s17 + $0x38] sm:$0xff]   ;;  %v356_v37 = vld [vmem:[%s1716_s8] sm:$0xff]  ;;  %p1498_p0 = pneg %p1497_p13  ;;  %p1504_p3 = por %p1503_p2, %p1502_p1 }
  0x24   : > { %1295 = vmatpush3.bf16.msra.mxu0 %v1430_v13  ;;  %v1449_v32 = vld [vmem:[%s1679_s17 + $0xf0] sm:$0xff]   ;;  %v1453_v36 = vld [vmem:[%s1679_s17 + $0xf8] sm:$0xff]   ;;  %v1190_v38 = vcombine.low %v356_v37, %v356_v37  ;;  %v1191_v39 = vcombine.high %v356_v37, %v356_v37  ;;  %v1457_v41 = vld [vmem:[%s1679_s17 + $0x140] sm:$0xff]  }
  0x25   : > { %1275 = vmatpush3.bf16.msra.mxu1 %v1432_v15  ;;  %1296 = vmatprep.subr.bf16.mxu0 %v1433_v16  ;;  %v1450_v33 = vld [vmem:[%s1679_s17 + $0xb0] sm:$0xff]   ;;  %v1456_v40 = vld [vmem:[%s1679_s17 + $0xb8] sm:$0xff]   ;;  %v357_v42 = vld [vmem:[%s1716_s8 + $0x8] sm:$0xff]  ;;  %p1505_p5 = pnand %p1504_p3, %p1498_p0 }
  0x26   : > { %1276 = vmatprep.subr.bf16.mxu1 %v1435_v18  ;;  %932 = vmatprep.mubr.bf16.mxu1 %v1191_v39  ;;  %v1192_v43 = vcombine.low %v357_v42, %v357_v42  ;;  %v1193_v44 = vcombine.high %v357_v42, %v357_v42  ;;  %v1460_v45 = vld [vmem:[%s1679_s17 + $0x100] sm:$0xff]   ;;  %v1463_v48 = vld [vmem:[%s1679_s17 + $0x148] sm:$0xff]   ;;  %v1467_v52 = vld [vmem:[%s1679_s17 + $0x150] sm:$0xff]  }
  0x27   : > { %v1461_v46 = vld [vmem:[%s1679_s17 + $0x1c0] sm:$0xff]   ;;  %v1464_v49 = vld [vmem:[%s1679_s17 + $0x108] sm:$0xff]   ;;  %v1468_v53 = vld [vmem:[%s1679_s17 + $0x110] sm:$0xff]  }
  0x28   : > { %1297 = vmatpush3.bf16.msra.mxu0 %v1434_v17  ;;  %972 = vmatprep.mubr.bf16.mxu0 %v1193_v44  ;;  %v1462_v47 = vld [vmem:[%s1679_s17 + $0x180] sm:$0xff]   ;;  %v1465_v50 = vld [vmem:[%s1679_s17 + $0x1c8] sm:$0xff]   ;;  %v1469_v54 = vld [vmem:[%s1679_s17 + $0x1d0] sm:$0xff]  }
  0x29   : > { %1277 = vmatpush3.bf16.msra.mxu1 %v1436_v19  ;;  %1298 = vmatprep.subr.bf16.mxu0 %v1437_v20  ;;  %v1466_v51 = vld [vmem:[%s1679_s17 + $0x188] sm:$0xff]   ;;  %v1470_v55 = vld [vmem:[%s1679_s17 + $0x190] sm:$0xff]   ;;  %v1471_v56 = vld [vmem:[%s1679_s17 + $0x158] sm:$0xff]  }
  0x2a   : > { %1278 = vmatprep.subr.bf16.mxu1 %v1439_v22  ;;  %v1472_v57 = vld [vmem:[%s1679_s17 + $0x118] sm:$0xff]   ;;  %v1475_v60 = vld [vmem:[%s1679_s17 + $0x160] sm:$0xff]   ;;  %v1479_v0 = vld [vmem:[%s1679_s17 + $0x168] sm:$0xff]  }
  0x2b   : > { %v1473_v58 = vld [vmem:[%s1679_s17 + $0x1d8] sm:$0xff]   ;;  %v1476_v61 = vld [vmem:[%s1679_s17 + $0x120] sm:$0xff]   ;;  %v1480_v1 = vld [vmem:[%s1679_s17 + $0x128] sm:$0xff]  }
  0x2c   : > { %1299 = vmatpush3.bf16.msra.mxu0 %v1438_v21  ;;  %v1474_v59 = vld [vmem:[%s1679_s17 + $0x198] sm:$0xff]   ;;  %v1477_v62 = vld [vmem:[%s1679_s17 + $0x1e0] sm:$0xff]   ;;  %v1481_v2 = vld [vmem:[%s1679_s17 + $0x1e8] sm:$0xff]  }
  0x2d   : > { %1279 = vmatpush3.bf16.msra.mxu1 %v1440_v23  ;;  %1300 = vmatprep.subr.bf16.mxu0 %v1441_v24  ;;  %v1478_v63 = vld [vmem:[%s1679_s17 + $0x1a0] sm:$0xff]   ;;  %v1482_v3 = vld [vmem:[%s1679_s17 + $0x1a8] sm:$0xff]   ;;  %v1483_v4 = vld [vmem:[%s1679_s17 + $0x170] sm:$0xff]  }
  0x2e   : > { %1280 = vmatprep.subr.bf16.mxu1 %v1443_v26  ;;  %v1484_v5 = vld [vmem:[%s1679_s17 + $0x130] sm:$0xff]   ;;  %v1487_v8 = vld [vmem:[%s1679_s17 + $0x178] sm:$0xff]  }
  0x2f   : > { %v1485_v6 = vld [vmem:[%s1679_s17 + $0x1f0] sm:$0xff]   ;;  %v1488_v9 = vld [vmem:[%s1679_s17 + $0x138] sm:$0xff]  }
  0x30   : > { %1301 = vmatpush3.bf16.msra.mxu0 %v1442_v25  ;;  %v1486_v7 = vld [vmem:[%s1679_s17 + $0x1b0] sm:$0xff]   ;;  %v1489_v10 = vld [vmem:[%s1679_s17 + $0x1f8] sm:$0xff]  }
  0x31   : > { %1281 = vmatpush3.bf16.msra.mxu1 %v1444_v27  ;;  %1302 = vmatprep.subr.bf16.mxu0 %v1445_v28  ;;  %v358_v11 = vld [vmem:[%s1716_s8 + $0x10] sm:$0xff]  ;;  %v1492_v14 = vld [vmem:[%s1679_s17 + $0x1b8] sm:$0xff]   ;;  %s1063_s17 = scalar_lea.sflag [#allocation3], %s273_s9 }
  0x32   : > { %1282 = vmatprep.subr.bf16.mxu1 %v1447_v30  ;;  %v1194_v12 = vcombine.low %v358_v11, %v358_v11  ;;  %v1195_v13 = vcombine.high %v358_v11, %v358_v11  ;;  %v359_v15 = vld [vmem:[%s1716_s8 + $0x18] sm:$0xff] }
  0x33   : > { %v1196_v16 = vcombine.low %v359_v15, %v359_v15  ;;  %v1197_v17 = vcombine.high %v359_v15, %v359_v15 }
  0x34   : > { %1303 = vmatpush3.bf16.msra.mxu0 %v1446_v29 }
  0x35   : > { %1283 = vmatpush3.bf16.msra.mxu1 %v1448_v31  ;;  %1304 = vmatprep.subr.bf16.mxu0 %v1449_v32 }
  0x36   : > { %1284 = vmatprep.subr.bf16.mxu1 %v1451_v34 }
  0x38   : > { %1305 = vmatpush3.bf16.msra.mxu0 %v1450_v33 }
  0x39   : > { %1285 = vmatpush3.bf16.msra.mxu1 %v1452_v35  ;;  %1306 = vmatprep.subr.bf16.mxu0 %v1453_v36 }
  0x3a   : > { %1314 = vmatprep.subr.bf16.mxu1 %v1457_v41 }
  0x3c   : > { %1307 = vmatpush3.bf16.msra.mxu0 %v1456_v40  ;;  %933 = vmatmul.mubr.bf16.vlgmr.msra.gmra.mrb[0].mxu1 %v1190_v38 }
  0x3d   : > { %1315 = vmatpush3.bf16.msra.mxu1 %v1460_v45  ;;  %1336 = vmatprep.subr.bf16.mxu0 %v1461_v46 }
  0x3e   : > { %1316 = vmatprep.subr.bf16.mxu1 %v1463_v48  ;;  %1012 = vmatprep.mubr.bf16.mxu1 %v1195_v13 }
  0x3f   : > { %973 = vmatmul.mubr.bf16.vlgmr.msra.gmra.mrb[4].mxu0 %v1192_v43 }
  0x40   : > { %1337 = vmatpush3.bf16.msra.mxu0 %v1462_v47  ;;  %1052 = vmatprep.mubr.bf16.mxu0 %v1197_v17 }
  0x41   : > { %1317 = vmatpush3.bf16.msra.mxu1 %v1464_v49  ;;  %1338 = vmatprep.subr.bf16.mxu0 %v1465_v50 }
  0x42   : > { %1318 = vmatprep.subr.bf16.mxu1 %v1467_v52 }
  0x44   : > { %1339 = vmatpush3.bf16.msra.mxu0 %v1466_v51 }
  0x45   : > { %1319 = vmatpush3.bf16.msra.mxu1 %v1468_v53  ;;  %1340 = vmatprep.subr.bf16.mxu0 %v1469_v54 }
  0x46   : > { %1320 = vmatprep.subr.bf16.mxu1 %v1471_v56 }
  0x48   : > { %1341 = vmatpush3.bf16.msra.mxu0 %v1470_v55 }
  0x49   : > { %1321 = vmatpush3.bf16.msra.mxu1 %v1472_v57  ;;  %1342 = vmatprep.subr.bf16.mxu0 %v1473_v58 }
  0x4a   : > { %1322 = vmatprep.subr.bf16.mxu1 %v1475_v60 }
  0x4c   : > { %1343 = vmatpush3.bf16.msra.mxu0 %v1474_v59 }
  0x4d   : > { %1323 = vmatpush3.bf16.msra.mxu1 %v1476_v61  ;;  %1344 = vmatprep.subr.bf16.mxu0 %v1477_v62 }
  0x4e   : > { %1324 = vmatprep.subr.bf16.mxu1 %v1479_v0 }
  0x50   : > { %1345 = vmatpush3.bf16.msra.mxu0 %v1478_v63 }
  0x51   : > { %1325 = vmatpush3.bf16.msra.mxu1 %v1480_v1  ;;  %1346 = vmatprep.subr.bf16.mxu0 %v1481_v2 }
  0x52   : > { %1326 = vmatprep.subr.bf16.mxu1 %v1483_v4 }
  0x54   : > { %1347 = vmatpush3.bf16.msra.mxu0 %v1482_v3 }
  0x55   : > { %1327 = vmatpush3.bf16.msra.mxu1 %v1484_v5  ;;  %1348 = vmatprep.subr.bf16.mxu0 %v1485_v6 }
  0x56   : > { %1328 = vmatprep.subr.bf16.mxu1 %v1487_v8 }
  0x58   : > { %1349 = vmatpush3.bf16.msra.mxu0 %v1486_v7 }
  0x59   : > { %1329 = vmatpush3.bf16.msra.mxu1 %v1488_v9  ;;  %1350 = vmatprep.subr.bf16.mxu0 %v1489_v10 }
  0x5c   : > { %1351 = vmatpush3.bf16.msra.mxu0 %v1492_v14  ;;  %1013 = vmatmul.mubr.bf16.vlgmr.msra.gmra.mrb[4].mxu1 %v1194_v12 }
  0x5f   : > { %1053 = vmatmul.mubr.bf16.vlgmr.msra.gmra.mrb[8].mxu0 %v1196_v16 }
  0x90   : > { %v303_v33 = vpop.permute.xlu0 %302 }
  0xf2   : > { %v347_v18 = vpop.f32.mrb[0].mxu0 }
  0xf3   : > { %v1362_v19 = vpop.f32.mrb[1].mxu0  ;;  %v348_v34 = vadd.f32 %v347_v18, %v303_v33 }
  0xf4   : > { %v350_v20 = vpop.f32.mrb[2].mxu0 }
  0xf5   : > { %v1363_v21 = vpop.f32.mrb[3].mxu0  ;;  %v354_v40 = vmul.f32 0.1, %v348_v34  ;;  %vm353_vm3 = vcmp.gt.f32.partialorder %v348_v34, 0.0 }
  0xf7   : > { %v355_v48 = vsel %vm353_vm3, %v348_v34, %v354_v40 }
 0x10f   : > { %v1286_v22 = vpop.f32.mrb[0].mxu1 }
 0x110   : > { %v1287_v23 = vpop.f32.mrb[1].mxu1 }
 0x111   : > { %v1288_v24 = vadd.f32 %v1287_v23, %v1286_v22  ;;  %v1289_v25 = vpop.f32.mrb[2].mxu1 }
 0x112   : > { %v1308_v26 = vpop.f32.mrb[4].mxu0  ;;  %v1290_v27 = vpop.f32.mrb[3].mxu1 }
 0x113   : > { %v1309_v28 = vpop.f32.mrb[5].mxu0 }
 0x114   : > { %v1310_v29 = vadd.f32 %v1309_v28, %v1308_v26  ;;  %v1311_v30 = vpop.f32.mrb[6].mxu0 }
 0x115   : > { %v1312_v31 = vpop.f32.mrb[7].mxu0 }
 0x116   : > { %v975_v32 = vadd.f32 %v1310_v29, %v1288_v24 }
 0x12f   : > { %v1330_v35 = vpop.f32.mrb[4].mxu1 }
 0x130   : > { %v1331_v36 = vpop.f32.mrb[5].mxu1 }
 0x131   : > { %v1332_v37 = vadd.f32 %v1331_v36, %v1330_v35  ;;  %v1333_v38 = vpop.f32.mrb[6].mxu1 }
 0x132   : > { %v1352_v39 = vpop.f32.mrb[8].mxu0  ;;  %v1334_v41 = vpop.f32.mrb[7].mxu1 }
 0x133   : > { %v1353_v42 = vpop.f32.mrb[9].mxu0  ;;  %v1015_v43 = vadd.f32 %v1332_v37, %v975_v32 }
 0x134   : > { %v1354_v44 = vadd.f32 %v1353_v42, %v1352_v39  ;;  %v1355_v45 = vpop.f32.mrb[10].mxu0 }
 0x135   : > { %v1356_v46 = vpop.f32.mrb[11].mxu0 }
 0x136   : > { %v1055_v47 = vadd.f32 %v1354_v44, %v1015_v43 }
 0x138   : > { %v1060_v49 = vadd.f32 %v1055_v47, %v355_v48 }
 0x13a   : > { %1061 = vst [vmem:[%s275_s12] sm:$0xff] %v1060_v49 }
 0x13b   : > { %1508 = shalt.err (!%p1505_p5)
}
 0x13c   : > { %s1509_s29 = scalar_lea.hbm %s1763_s16, 128  ;;  %s1513_s9 = scalar_lea.hbm %s1815_s5, 256 }
 0x13d   : > { %p1510_p6 = scmp.ne.s32.totalorder %s1763_s16, %s1509_s29  ;;  %p1514_p10 = scmp.lt.u32.totalorder %s1763_s16, %s1815_s5 }
 0x13e   : > { %p1515_p11 = scmp.lt.u32.totalorder %s1513_s9, %s1509_s29  ;;  %p1517_p13 = scmp.lt.u32.totalorder %s1509_s29, %s1763_s16 }
 0x13f   : > { %p1511_p7 = pnand %p1510_p6, %p1649_p4 }
 0x140   : > { %p1516_p12 = por %p1515_p11, %p1514_p10 }
 0x141   : > { %p1512_p9 = pneg %p1511_p7 }
 0x142   : > { %p1518_p0 = por %p1517_p13, %p1516_p12 }
 0x144   : > { %p1519_p1 = pnand %p1518_p0, %p1512_p9 }
 0x146   : > { %1522 = shalt.err (!%p1519_p1)
}
 0x147   : > { %1364 = dma.vmem_to_hbm [thread:$0]  (%p1649_p4), %s1765_s13, 128, %s1763_s16, %s1063_s17  }
 0x148 PF: > { %p1370_p2 = scmp.ge.s32.totalorder %s1573_s23, 2  ;;  %s1089_s12 = sand.u32 1, %s1553_s18  }
 0x149   : > { %s1090_s14 = scalar_lea.sflag [#allocation3], %s1089_s12 }
 0x14a   : > { %p1367_p3 = pnand %p1370_p2, %p1656_p8 }
 0x14c   : > { %1548 = dma.done.wait (!%p1367_p3), %s1090_s14, 128  }
 0x14d   : > { %1550 = vsyncadd (!%p1367_p3), %s1090_s14, 4294967168  ;;  %s18_s23 = sadd.s32 1, %s1573_s23   ;;  %s1818_s18 = smov %s1557_s19 }
 0x14e   : > { %p15_p5 = scmp.ge.s32.totalorder %s18_s23, 4   ;;  %s1819_s19 = smov %s1561_s20 }
 0x14f   : > { %s1820_s20 = smov %s1662_s6  ;;  %s1821_s21 = smov %s1569_s22 }
 0x150   : > { %s1822_s22 = smov %s1824_s26  ;;  %17 = sbr.rel (!%p15_p5) target bundleno = 4 (0x4), region = 81 }
 0x157   :  { %1095 = vsyncpa [#allocation3], 1 }
 0x158   :  { %1097 = vsyncpa [#allocation3 + $0x1], 1 }

// kernel: pvconv_forward.2
= control target key start
LH: loop header
LB: loop body
LE: loop exit
PB: predicated region body
PF: predicated region fallthrough
CT: control target
= control target key end

     0   :  { %s4800_s21 = smov 0   ;;  %s6681_s0 = inlined_call_operand.vmem [shape: bf16[1,8,216], index: 0, kind: input, shape index: {}]   ;;  %s6682_s1 = inlined_call_operand.vmem [shape: f32[8,1], index: 1, kind: input, shape index: {}]   ;;  %s6683_s2 = inlined_call_operand.vmem [shape: bf16[1,8,216], index: 2, kind: input, shape index: {}]   ;;  %s6684_s3 = inlined_call_operand.vmem [shape: f32[8,1], index: 3, kind: input, shape index: {}]   ;;  %s6685_s4 = inlined_call_operand.vmem [shape: f32[1,1024], index: 4, kind: input, shape index: {}]   ;;  %s6686_s5 = inlined_call_operand.vmem [shape: bf16[2,8,1280], index: 5, kind: input, shape index: {}]   ;;  %s6687_s6 = inlined_call_operand.vmem [shape: bf16[2,8,1024], index: 6, kind: output, shape index: {}]  }
   0x1 LB: > { %s4380_s22 = sadd.s32 4294967295, %s4717_s21   ;;  %p4384_p0 = scmp.ge.s32.totalorder %s4717_s21, 1  ;;  %s4717_s21 = sphi %s4800_s21, %s16_s21  }
   0x2   : > { %p212_p1 = scmp.lt.s32.totalorder %s4717_s21, 3 }
   0x4   : > { %p213_p2 = pnand %p4384_p0, %p212_p1 }
   0x5   : > { %p242_p3 = scmp.lt.s32.totalorder (!%p213_p2), %s4380_s22, 1  ;;  %s4719_s27 = smov (!%p213_p2), 126   ;;  %v4909_v4 = vld [vmem:[%s6681_s0] sm:$0xff] (!%p213_p2)  ;;  %vm2017_vm0 = vcmask (!%p213_p2), 719872   ;;  %vm288_vm1 = vcmask (!%p213_p2), 1043456   ;;  %vm290_vm2 = vcmask (!%p213_p2), 1039360  }
   0x6   : > { %216 = sbr.rel (%p213_p2) target bundleno = 1180 (0x49c), region = 44  ;;  %s6742_s28 = smov (!%p213_p2), 127   ;;  %v4913_v5 = vcombine.high (!%p213_p2), %v4909_v4, %v4909_v4  ;;  %vm332_vm3 = vcmask (!%p213_p2), 1031168   ;;  %vm6767_vm4 = vcmask (!%p213_p2), 965632   ;;  %vm6766_vm5 = vcmask (!%p213_p2), 957440  }
   0x7   : > { %s6746_s29 = smov (!%p213_p2), 118   ;;  %s6756_s30 = smov (!%p213_p2), 117   ;;  %vm458_vm6 = vcmask (!%p213_p2), 949248   ;;  %vm500_vm7 = vcmask (!%p213_p2), 883712   ;;  %vm542_vm8 = vcmask (!%p213_p2), 875520   ;;  %vm6736_vm9 = vcmask (!%p213_p2), 867328  }
   0x8   : > { %s4723_s7 = smov (!%p213_p2), 116   ;;  %s4724_s8 = smov (!%p213_p2), 108   ;;  %4503 = vmatprep.mubr.msk.bf16.mxu0 (!%p213_p2), %vm2017_vm0, %v4913_v5  ;;  %4505 = vmatprep.mubr.msk.bf16.mxu1 (!%p213_p2), %vm2017_vm0, %v4913_v5  ;;  %vm6735_vm10 = vcmask (!%p213_p2), 228352   ;;  %vm6734_vm11 = vcmask (!%p213_p2), 220160   ;;  %vm6733_vm12 = vcmask (!%p213_p2), 211968   ;;  %vm6705_vm13 = vcmask (!%p213_p2), 146432  }
   0x9   : > { %s4725_s9 = smov (!%p213_p2), 107   ;;  %s4726_s10 = smov (!%p213_p2), 106   ;;  %vm6702_vm14 = vcmask (!%p213_p2), 138240   ;;  %vm6709_vm15 = vcmask (!%p213_p2), 130048  }
   0xa   : > { %s6750_s11 = smov (!%p213_p2), 28   ;;  %s4728_s12 = smov (!%p213_p2), 27  }
   0xb   : > { %s4729_s13 = smov (!%p213_p2), 26   ;;  %s6711_s14 = smov (!%p213_p2), 18  }
   0xc   : > { %s6707_s15 = smov (!%p213_p2), 17   ;;  %s6704_s16 = smov (!%p213_p2), 16  }
   0xd   : > { %s6935_s22 = smov (!%p242_p3, %s4380_s22), 1  ;;  %s6703_s17 = smov 8  }
   0xe   : > { %s4651_s23 = smul.u32 40, %s6935_s22  ;;  %s6696_s18 = smov 7  }
   0xf   : > { %s6688_s19 = smov 6   ;;  %s6690_s20 = smov 56  }
  0x10   : > { %s4814_s26 = scalar_lea.vmem %s6686_s5, %s4651_s23  ;;  %s6692_s23 = smov 55  }
  0x11   : > { %v4817_v0 = vld [vmem:[%s4814_s26] sm:$0xff]  ;;  %v4824_v1 = vld [vmem:[%s4814_s26 + $0x8] sm:$0xff]  ;;  %s6694_s24 = smov 54   ;;  %s6715_s25 = smov 46   ;;  %v4924_v6 = vld [vmem:[%s4814_s26 + $0x18] sm:$0xff] }
  0x12   : > { %316 = vrot.lane.b32.xlu1 %v4817_v0, %s4719_s27  ;;  %273 = vrot.lane.b32.xlu0 %v4817_v0, %s6742_s28  ;;  %v979_v2 = vld [vmem:[%s4814_s26 + $0xc] sm:$0xff]  ;;  %v978_v3 = vld [vmem:[%s4814_s26 + $0x4] sm:$0xff] }
  0x13   : > { %v4927_v7 = vld [vmem:[%s4814_s26 + $0x10] sm:$0xff] }
  0x16   : > { %318 = vrot.lane.b32.xlu1 %v4824_v1, %s4719_s27  ;;  %275 = vrot.lane.b32.xlu0 %v4824_v1, %s6742_s28 }
  0x1a   : > { %360 = vrot.lane.b32.xlu1 %v4824_v1, %s6746_s29  ;;  %358 = vrot.lane.b32.xlu0 %v4817_v0, %s6746_s29 }
  0x1e   : > { %402 = vrot.lane.b32.xlu1 %v4824_v1, %s6756_s30  ;;  %400 = vrot.lane.b32.xlu0 %v4817_v0, %s6756_s30 }
  0x22   : > { %444 = vrot.lane.b32.xlu1 %v4824_v1, %s4723_s7  ;;  %442 = vrot.lane.b32.xlu0 %v4817_v0, %s4723_s7 }
  0x26   : > { %486 = vrot.lane.b32.xlu1 %v4824_v1, %s4724_s8  ;;  %484 = vrot.lane.b32.xlu0 %v4817_v0, %s4724_s8 }
  0x2a   : > { %528 = vrot.lane.b32.xlu1 %v4824_v1, %s4725_s9  ;;  %526 = vrot.lane.b32.xlu0 %v4817_v0, %s4725_s9 }
  0x2e   : > { %570 = vrot.lane.b32.xlu1 %v4824_v1, %s4726_s10  ;;  %568 = vrot.lane.b32.xlu0 %v4817_v0, %s4726_s10 }
  0x32   : > { %612 = vrot.lane.b32.xlu1 %v4824_v1, %s6750_s11  ;;  %610 = vrot.lane.b32.xlu0 %v4817_v0, %s6750_s11 }
  0x36   : > { %654 = vrot.lane.b32.xlu1 %v4824_v1, %s4728_s12  ;;  %652 = vrot.lane.b32.xlu0 %v4817_v0, %s4728_s12 }
  0x3a   : > { %696 = vrot.lane.b32.xlu1 %v4824_v1, %s4729_s13  ;;  %694 = vrot.lane.b32.xlu0 %v4817_v0, %s4729_s13 }
  0x3e   : > { %738 = vrot.lane.b32.xlu1 %v4824_v1, %s6711_s14  ;;  %736 = vrot.lane.b32.xlu0 %v4817_v0, %s6711_s14 }
  0x42   : > { %780 = vrot.lane.b32.xlu1 %v4824_v1, %s6707_s15  ;;  %778 = vrot.lane.b32.xlu0 %v4817_v0, %s6707_s15 }
  0x46   : > { %822 = vrot.lane.b32.xlu1 %v4824_v1, %s6704_s16  ;;  %820 = vrot.lane.b32.xlu0 %v4817_v0, %s6704_s16 }
  0x4a   : > { %864 = vrot.lane.b32.xlu1 %v4824_v1, %s6703_s17  ;;  %862 = vrot.lane.b32.xlu0 %v4817_v0, %s6703_s17 }
  0x4e   : > { %906 = vrot.lane.b32.xlu1 %v4824_v1, %s6696_s18  ;;  %904 = vrot.lane.b32.xlu0 %v4817_v0, %s6696_s18  ;;  %s6791_s18 = smov 7  }
  0x52   : > { %948 = vrot.lane.b32.xlu1 %v4824_v1, %s6688_s19  ;;  %946 = vrot.lane.b32.xlu0 %v4817_v0, %s6688_s19  ;;  %s6698_s19 = smov 45  }
  0x56   : > { %990 = vrot.lane.b32.xlu1 %v979_v2, %s6690_s20  ;;  %988 = vrot.lane.b32.xlu0 %v978_v3, %s6690_s20  ;;  %s4741_s20 = smov 44  }
  0x5a   : > { %1032 = vrot.lane.b32.xlu1 %v979_v2, %s6692_s23  ;;  %1030 = vrot.lane.b32.xlu0 %v978_v3, %s6692_s23  ;;  %s6700_s23 = smov 36  }
  0x5e   : > { %1074 = vrot.lane.b32.xlu1 %v979_v2, %s6694_s24  ;;  %1072 = vrot.lane.b32.xlu0 %v978_v3, %s6694_s24  ;;  %s6792_s24 = smov 6  }
  0x62   : > { %1116 = vrot.lane.b32.xlu1 %v979_v2, %s6715_s25  ;;  %1114 = vrot.lane.b32.xlu0 %v978_v3, %s6715_s25 }
  0x66   : > { %1158 = vrot.lane.b32.xlu1 %v979_v2, %s6698_s19  ;;  %1156 = vrot.lane.b32.xlu0 %v978_v3, %s6698_s19  ;;  %s4743_s19 = smov 35  }
  0x6a   : > { %1200 = vrot.lane.b32.xlu1 %v979_v2, %s4741_s20  ;;  %1198 = vrot.lane.b32.xlu0 %v978_v3, %s4741_s20 }
  0x6e   : > { %1242 = vrot.lane.b32.xlu1 %v979_v2, %s6700_s23  ;;  %1240 = vrot.lane.b32.xlu0 %v978_v3, %s6700_s23  ;;  %s4744_s23 = smov 34  }
  0x72   : > { %1284 = vrot.lane.b32.xlu1 %v979_v2, %s4743_s19  ;;  %1282 = vrot.lane.b32.xlu0 %v978_v3, %s4743_s19 }
  0x76   : > { %1326 = vrot.lane.b32.xlu1 %v979_v2, %s4744_s23  ;;  %1324 = vrot.lane.b32.xlu0 %v978_v3, %s4744_s23 }
  0x7a   : > { %279 = vrot.lane.b32.xlu1 %v4924_v6, %s6742_s28  ;;  %277 = vrot.lane.b32.xlu0 %v4927_v7, %s6742_s28 }
  0x7e   : > { %322 = vrot.lane.b32.xlu1 %v4924_v6, %s4719_s27  ;;  %320 = vrot.lane.b32.xlu0 %v4927_v7, %s4719_s27 }
  0x82   : > { %364 = vrot.lane.b32.xlu1 %v4924_v6, %s6746_s29  ;;  %362 = vrot.lane.b32.xlu0 %v4927_v7, %s6746_s29 }
  0x84   : > { %v317_v8 = vpop.permute.xlu1 %316  ;;  %v274_v9 = vpop.permute.xlu0 %273 }
  0x85   : > { %v326_v10 = vrot.slane %v317_v8, 4  ;;  %v283_v13 = vrot.slane %v274_v9, 4 }
  0x86   : > { %406 = vrot.lane.b32.xlu1 %v4924_v6, %s6756_s30  ;;  %404 = vrot.lane.b32.xlu0 %v4927_v7, %s6756_s30 }
  0x88   : > { %v4945_v11 = vpop.permute.xlu1 %318  ;;  %v4947_v12 = vpop.permute.xlu0 %275 }
  0x89   : > { %v327_v14 = vrot.slane %v4945_v11, 4  ;;  %v284_v15 = vrot.slane %v4947_v12, 4 }
  0x8a   : > { %448 = vrot.lane.b32.xlu1 %v4924_v6, %s4723_s7  ;;  %446 = vrot.lane.b32.xlu0 %v4927_v7, %s4723_s7 }
  0x8b   : > { %v289_v16 = vsel %vm288_vm1, %v283_v13, %v284_v15  ;;  %v331_v17 = vsel %vm288_vm1, %v326_v10, %v327_v14 }
  0x8c   : > { %v4961_v18 = vpop.permute.xlu1 %360  ;;  %v359_v19 = vpop.permute.xlu0 %358  ;;  %v291_v20 = vsel %vm290_vm2, %v274_v9, %v289_v16  ;;  %v333_v25 = vsel %vm332_vm3, %v317_v8, %v331_v17 }
  0x8d   : > { %v369_v21 = vrot.slane %v4961_v18, 4  ;;  %v368_v22 = vrot.slane %v359_v19, 4  ;;  %v4391_v23 = vcombine.high %v4817_v0, %v291_v20  ;;  %v4390_v24 = vcombine.low %v4817_v0, %v291_v20 }
  0x8e   : > { %490 = vrot.lane.b32.xlu1 %v4924_v6, %s4724_s8  ;;  %488 = vrot.lane.b32.xlu0 %v4927_v7, %s4724_s8 }
  0x8f   : > { %v373_v26 = vsel %vm288_vm1, %v368_v22, %v369_v21  ;;  %2046 = vmatprep.subr.bf16.mxu0 %v4391_v23 }
  0x90   : > { %v375_v27 = vsel %vm6767_vm4, %v359_v19, %v373_v26  ;;  %v4976_v28 = vpop.permute.xlu1 %402  ;;  %v401_v29 = vpop.permute.xlu0 %400  ;;  %2047 = vmatpush1.bf16.msra.mxu0 %v4390_v24 }
  0x91   : > { %v411_v30 = vrot.slane %v4976_v28, 4  ;;  %v410_v31 = vrot.slane %v401_v29, 4  ;;  %v4399_v32 = vcombine.high %v333_v25, %v375_v27  ;;  %v4398_v33 = vcombine.low %v333_v25, %v375_v27 }
  0x92   : > { %532 = vrot.lane.b32.xlu1 %v4924_v6, %s4725_s9  ;;  %530 = vrot.lane.b32.xlu0 %v4927_v7, %s4725_s9 }
  0x93   : > { %2048 = vmatprep.subr.bf16.mxu0 %v4399_v32  ;;  %v415_v36 = vsel %vm288_vm1, %v410_v31, %v411_v30 }
  0x94   : > { %v4983_v34 = vpop.permute.xlu1 %444  ;;  %v443_v35 = vpop.permute.xlu0 %442  ;;  %2049 = vmatpush1.bf16.msra.mxu0 %v4398_v33  ;;  %v417_v40 = vsel %vm6766_vm5, %v401_v29, %v415_v36 }
  0x95   : > { %v453_v37 = vrot.slane %v4983_v34, 4  ;;  %v452_v38 = vrot.slane %v443_v35, 4 }
  0x96   : > { %574 = vrot.lane.b32.xlu1 %v4924_v6, %s4726_s10  ;;  %572 = vrot.lane.b32.xlu0 %v4927_v7, %s4726_s10 }
  0x97   : > { %v457_v39 = vsel %vm288_vm1, %v452_v38, %v453_v37 }
  0x98   : > { %v459_v41 = vsel %vm458_vm6, %v443_v35, %v457_v39  ;;  %v4998_v42 = vpop.permute.xlu1 %486  ;;  %v485_v43 = vpop.permute.xlu0 %484 }
  0x99   : > { %v495_v44 = vrot.slane %v4998_v42, 4  ;;  %v494_v45 = vrot.slane %v485_v43, 4  ;;  %v4407_v46 = vcombine.high %v417_v40, %v459_v41  ;;  %v4406_v47 = vcombine.low %v417_v40, %v459_v41 }
  0x9a   : > { %616 = vrot.lane.b32.xlu1 %v4924_v6, %s6750_s11  ;;  %614 = vrot.lane.b32.xlu0 %v4927_v7, %s6750_s11 }
  0x9b   : > { %2050 = vmatprep.subr.bf16.mxu0 %v4407_v46  ;;  %v499_v50 = vsel %vm288_vm1, %v494_v45, %v495_v44 }
  0x9c   : > { %v5005_v48 = vpop.permute.xlu1 %528  ;;  %v527_v49 = vpop.permute.xlu0 %526  ;;  %2051 = vmatpush1.bf16.msra.mxu0 %v4406_v47  ;;  %v501_v54 = vsel %vm500_vm7, %v485_v43, %v499_v50 }
  0x9d   : > { %v537_v51 = vrot.slane %v5005_v48, 4  ;;  %v536_v52 = vrot.slane %v527_v49, 4 }
  0x9e   : > { %658 = vrot.lane.b32.xlu1 %v4924_v6, %s4728_s12  ;;  %656 = vrot.lane.b32.xlu0 %v4927_v7, %s4728_s12 }
  0x9f   : > { %v541_v53 = vsel %vm288_vm1, %v536_v52, %v537_v51 }
  0xa0   : > { %v543_v55 = vsel %vm542_vm8, %v527_v49, %v541_v53  ;;  %v5020_v56 = vpop.permute.xlu1 %570  ;;  %v569_v57 = vpop.permute.xlu0 %568 }
  0xa1   : > { %v579_v58 = vrot.slane %v5020_v56, 4  ;;  %v578_v59 = vrot.slane %v569_v57, 4  ;;  %v4415_v60 = vcombine.high %v501_v54, %v543_v55  ;;  %v4414_v61 = vcombine.low %v501_v54, %v543_v55 }
  0xa2   : > { %700 = vrot.lane.b32.xlu1 %v4924_v6, %s4729_s13  ;;  %698 = vrot.lane.b32.xlu0 %v4927_v7, %s4729_s13 }
  0xa3   : > { %2052 = vmatprep.subr.bf16.mxu0 %v4415_v60  ;;  %v583_v0 = vsel %vm288_vm1, %v578_v59, %v579_v58 }
  0xa4   : > { %v5027_v62 = vpop.permute.xlu1 %612  ;;  %v611_v63 = vpop.permute.xlu0 %610  ;;  %2053 = vmatpush1.bf16.msra.mxu0 %v4414_v61  ;;  %v585_v9 = vsel %vm6736_vm9, %v569_v57, %v583_v0  ;;  %v5094_v61 = vld [vmem:[%s4814_s26 + $0x1c] sm:$0xff] }
  0xa5   : > { %v621_v2 = vrot.slane %v5027_v62, 4  ;;  %v620_v3 = vrot.slane %v611_v63, 4 }
  0xa6   : > { %742 = vrot.lane.b32.xlu1 %v4924_v6, %s6711_s14  ;;  %740 = vrot.lane.b32.xlu0 %v4927_v7, %s6711_s14  ;;  %s6796_s14 = smov 45  }
  0xa7   : > { %v625_v8 = vsel %vm288_vm1, %v620_v3, %v621_v2 }
  0xa8   : > { %v627_v10 = vsel %vm6735_vm10, %v611_v63, %v625_v8  ;;  %v5042_v13 = vpop.permute.xlu1 %654  ;;  %v653_v16 = vpop.permute.xlu0 %652  ;;  %v5097_v63 = vld [vmem:[%s4814_s26 + $0x14] sm:$0xff] }
  0xa9   : > { %v663_v17 = vrot.slane %v5042_v13, 4  ;;  %v662_v19 = vrot.slane %v653_v16, 4  ;;  %v4423_v20 = vcombine.high %v585_v9, %v627_v10  ;;  %v4422_v22 = vcombine.low %v585_v9, %v627_v10 }
  0xaa   : > { %784 = vrot.lane.b32.xlu1 %v4924_v6, %s6707_s15  ;;  %782 = vrot.lane.b32.xlu0 %v4927_v7, %s6707_s15  ;;  %s6795_s15 = smov 54  }
  0xab   : > { %2054 = vmatprep.subr.bf16.mxu0 %v4423_v20  ;;  %v667_v25 = vsel %vm288_vm1, %v662_v19, %v663_v17 }
  0xac   : > { %v5049_v23 = vpop.permute.xlu1 %696  ;;  %v695_v24 = vpop.permute.xlu0 %694  ;;  %2055 = vmatpush1.bf16.msra.mxu0 %v4422_v22  ;;  %v669_v31 = vsel %vm6734_vm11, %v653_v16, %v667_v25 }
  0xad   : > { %v705_v26 = vrot.slane %v5049_v23, 4  ;;  %v704_v27 = vrot.slane %v695_v24, 4 }
  0xae   : > { %826 = vrot.lane.b32.xlu1 %v4924_v6, %s6704_s16  ;;  %824 = vrot.lane.b32.xlu0 %v4927_v7, %s6704_s16  ;;  %s6794_s16 = smov 55  }
  0xaf   : > { %v709_v29 = vsel %vm288_vm1, %v704_v27, %v705_v26 }
  0xb0   : > { %v711_v32 = vsel %vm6733_vm12, %v695_v24, %v709_v29  ;;  %v5064_v33 = vpop.permute.xlu1 %738  ;;  %v737_v35 = vpop.permute.xlu0 %736 }
  0xb1   : > { %v747_v36 = vrot.slane %v5064_v33, 4  ;;  %v746_v38 = vrot.slane %v737_v35, 4  ;;  %v4431_v39 = vcombine.high %v669_v31, %v711_v32  ;;  %v4430_v40 = vcombine.low %v669_v31, %v711_v32 }
  0xb2   : > { %868 = vrot.lane.b32.xlu1 %v4924_v6, %s6703_s17  ;;  %866 = vrot.lane.b32.xlu0 %v4927_v7, %s6703_s17  ;;  %s6793_s17 = smov 56  }
  0xb3   : > { %2056 = vmatprep.subr.bf16.mxu0 %v4431_v39  ;;  %v751_v45 = vsel %vm288_vm1, %v746_v38, %v747_v36 }
  0xb4   : > { %v5071_v41 = vpop.permute.xlu1 %780  ;;  %v779_v43 = vpop.permute.xlu0 %778  ;;  %2057 = vmatpush1.bf16.msra.mxu0 %v4430_v40  ;;  %v753_v50 = vsel %vm6705_vm13, %v737_v35, %v751_v45  ;;  %vm6713_vm13 = vcmask 56320  }
  0xb5   : > { %v789_v46 = vrot.slane %v5071_v41, 4  ;;  %v788_v47 = vrot.slane %v779_v43, 4 }
  0xb6   : > { %910 = vrot.lane.b32.xlu1 %v4924_v6, %s6791_s18  ;;  %908 = vrot.lane.b32.xlu0 %v4927_v7, %s6791_s18 }
  0xb7   : > { %v793_v49 = vsel %vm288_vm1, %v788_v47, %v789_v46 }
  0xb8   : > { %v795_v52 = vsel %vm6702_vm14, %v779_v43, %v793_v49  ;;  %v5086_v53 = vpop.permute.xlu1 %822  ;;  %v821_v54 = vpop.permute.xlu0 %820  ;;  %vm6706_vm14 = vcmask 64512  }
  0xb9   : > { %v831_v55 = vrot.slane %v5086_v53, 4  ;;  %v830_v57 = vrot.slane %v821_v54, 4  ;;  %v4439_v59 = vcombine.high %v753_v50, %v795_v52  ;;  %v4438_v60 = vcombine.low %v753_v50, %v795_v52 }
  0xba   : > { %952 = vrot.lane.b32.xlu1 %v4924_v6, %s6792_s24  ;;  %950 = vrot.lane.b32.xlu0 %v4927_v7, %s6792_s24 }
  0xbb   : > { %2058 = vmatprep.subr.bf16.mxu0 %v4439_v59  ;;  %v835_v8 = vsel %vm288_vm1, %v830_v57, %v831_v55 }
  0xbc   : > { %v5099_v0 = vpop.permute.xlu1 %864  ;;  %v863_v3 = vpop.permute.xlu0 %862  ;;  %2059 = vmatpush1.bf16.msra.mxu0 %v4438_v60  ;;  %v837_v16 = vsel %vm6709_vm15, %v821_v54, %v835_v8  ;;  %vm6722_vm15 = vcmask 457728  }
  0xbd   : > { %v873_v9 = vrot.slane %v5099_v0, 4  ;;  %v872_v6 = vrot.slane %v863_v3, 4 }
  0xbe   : > { %994 = vrot.lane.b32.xlu1 %v5094_v61, %s6793_s17  ;;  %992 = vrot.lane.b32.xlu0 %v5097_v63, %s6793_s17 }
  0xbf   : > { %v877_v10 = vsel %vm288_vm1, %v872_v6, %v873_v9 }
  0xc0   : > { %v879_v19 = vsel %vm6706_vm14, %v863_v3, %v877_v10  ;;  %v5114_v20 = vpop.permute.xlu1 %906  ;;  %v905_v22 = vpop.permute.xlu0 %904  ;;  %vm6710_vm14 = vcmask 48128  }
  0xc1   : > { %v915_v24 = vrot.slane %v5114_v20, 4  ;;  %v914_v25 = vrot.slane %v905_v22, 4  ;;  %v4447_v27 = vcombine.high %v837_v16, %v879_v19  ;;  %v4446_v29 = vcombine.low %v837_v16, %v879_v19 }
  0xc2   : > { %1036 = vrot.lane.b32.xlu1 %v5094_v61, %s6794_s16  ;;  %1034 = vrot.lane.b32.xlu0 %v5097_v63, %s6794_s16 }
  0xc3   : > { %2060 = vmatprep.subr.bf16.mxu0 %v4447_v27  ;;  %v919_v35 = vsel %vm288_vm1, %v914_v25, %v915_v24 }
  0xc4   : > { %v5121_v31 = vpop.permute.xlu1 %948  ;;  %v947_v32 = vpop.permute.xlu0 %946  ;;  %2061 = vmatpush1.bf16.msra.mxu0 %v4446_v29  ;;  %v921_v43 = vsel %vm6713_vm13, %v905_v22, %v919_v35  ;;  %vm6716_vm13 = vcmask 441344  }
  0xc5   : > { %v957_v38 = vrot.slane %v5121_v31, 4  ;;  %v956_v39 = vrot.slane %v947_v32, 4 }
  0xc6   : > { %1078 = vrot.lane.b32.xlu1 %v5094_v61, %s6795_s15  ;;  %1076 = vrot.lane.b32.xlu0 %v5097_v63, %s6795_s15 }
  0xc7   : > { %v961_v40 = vsel %vm288_vm1, %v956_v39, %v957_v38 }
  0xc8   : > { %v963_v45 = vsel %vm6710_vm14, %v947_v32, %v961_v40  ;;  %v5136_v47 = vpop.permute.xlu1 %990  ;;  %v989_v49 = vpop.permute.xlu0 %988  ;;  %vm6714_vm14 = vcmask 449536  }
  0xc9   : > { %v999_v50 = vrot.slane %v5136_v47, 4  ;;  %v998_v52 = vrot.slane %v989_v49, 4  ;;  %v4455_v54 = vcombine.high %v921_v43, %v963_v45  ;;  %v4454_v57 = vcombine.low %v921_v43, %v963_v45 }
  0xca   : > { %1120 = vrot.lane.b32.xlu1 %v5094_v61, %s6715_s25  ;;  %1118 = vrot.lane.b32.xlu0 %v5097_v63, %s6715_s25  ;;  %s6797_s25 = smov 36  }
  0xcb   : > { %2062 = vmatprep.subr.bf16.mxu0 %v4455_v54  ;;  %v1003_v3 = vsel %vm288_vm1, %v998_v52, %v999_v50 }
  0xcc   : > { %v5143_v59 = vpop.permute.xlu1 %1032  ;;  %v1031_v60 = vpop.permute.xlu0 %1030  ;;  %2063 = vmatpush1.bf16.msra.mxu0 %v4454_v57  ;;  %v1005_v16 = vsel %vm6722_vm15, %v989_v49, %v1003_v3  ;;  %vm1340_vm15 = vcmask 277504  }
  0xcd   : > { %v1041_v8 = vrot.slane %v5143_v59, 4  ;;  %v1040_v6 = vrot.slane %v1031_v60, 4 }
  0xce   : > { %1162 = vrot.lane.b32.xlu1 %v5094_v61, %s6796_s14  ;;  %1160 = vrot.lane.b32.xlu0 %v5097_v63, %s6796_s14 }
  0xcf   : > { %v1045_v10 = vsel %vm288_vm1, %v1040_v6, %v1041_v8 }
  0xd0   : > { %v1047_v19 = vsel %vm6714_vm14, %v1031_v60, %v1045_v10  ;;  %v5158_v22 = vpop.permute.xlu1 %1074  ;;  %v1073_v25 = vpop.permute.xlu0 %1072  ;;  %vm6717_vm14 = vcmask 375808  }
  0xd1   : > { %v6725_v27 = vrot.slane %v5158_v22, 4  ;;  %v1082_v29 = vrot.slane %v1073_v25, 4  ;;  %v4463_v32 = vcombine.high %v1005_v16, %v1047_v19  ;;  %v4462_v35 = vcombine.low %v1005_v16, %v1047_v19 }
  0xd2   : > { %1204 = vrot.lane.b32.xlu1 %v5094_v61, %s4741_s20  ;;  %1202 = vrot.lane.b32.xlu0 %v5097_v63, %s4741_s20 }
  0xd3   : > { %2064 = vmatprep.subr.bf16.mxu0 %v4463_v32  ;;  %v1087_v43 = vsel %vm288_vm1, %v1082_v29, %v6725_v27 }
  0xd4   : > { %v5165_v39 = vpop.permute.xlu1 %1116  ;;  %v1115_v40 = vpop.permute.xlu0 %1114  ;;  %2065 = vmatpush1.bf16.msra.mxu0 %v4462_v35  ;;  %v1089_v54 = vsel %vm6716_vm13, %v1073_v25, %v1087_v43  ;;  %vm6720_vm13 = vcmask 367616  }
  0xd5   : > { %v6719_v45 = vrot.slane %v5165_v39, 4  ;;  %v1124_v49 = vrot.slane %v1115_v40, 4 }
  0xd6   : > { %1246 = vrot.lane.b32.xlu1 %v5094_v61, %s6797_s25  ;;  %1244 = vrot.lane.b32.xlu0 %v5097_v63, %s6797_s25 }
  0xd7   : > { %v1129_v52 = vsel %vm288_vm1, %v1124_v49, %v6719_v45  ;;  %v267_v49 = vld [vmem:[%s4814_s26 + $0x20] sm:$0xf] }
  0xd8   : > { %v1131_v57 = vsel %vm6717_vm14, %v1115_v40, %v1129_v52  ;;  %v5180_v60 = vpop.permute.xlu1 %1158  ;;  %v1157_v3 = vpop.permute.xlu0 %1156  ;;  %vm6721_vm14 = vcmask 359424   ;;  %v310_v52 = vld [vmem:[%s4814_s26 + $0x20] sm:$0xf] }
  0xd9   : > { %v6718_v6 = vrot.slane %v5180_v60, 4  ;;  %v1166_v10 = vrot.slane %v1157_v3, 4  ;;  %v4471_v16 = vcombine.high %v1089_v54, %v1131_v57  ;;  %v4470_v19 = vcombine.low %v1089_v54, %v1131_v57 }
  0xda   : > { %1288 = vrot.lane.b32.xlu1 %v5094_v61, %s4743_s19  ;;  %1286 = vrot.lane.b32.xlu0 %v5097_v63, %s4743_s19 }
  0xdb   : > { %2066 = vmatprep.subr.bf16.mxu0 %v4471_v16  ;;  %v1171_v32 = vsel %vm288_vm1, %v1166_v10, %v6718_v6 }
  0xdc   : > { %v5187_v25 = vpop.permute.xlu1 %1200  ;;  %v1199_v29 = vpop.permute.xlu0 %1198  ;;  %2067 = vmatpush1.bf16.msra.mxu0 %v4470_v19  ;;  %v1173_v54 = vsel %vm6720_vm13, %v1157_v3, %v1171_v32  ;;  %vm1256_vm13 = vcmask 293888  }
  0xdd   : > { %v6724_v35 = vrot.slane %v5187_v25, 4  ;;  %v1208_v40 = vrot.slane %v1199_v29, 4 }
  0xde   : > { %1330 = vrot.lane.b32.xlu1 %v5094_v61, %s4744_s23  ;;  %1328 = vrot.lane.b32.xlu0 %v5097_v63, %s4744_s23  ;;  %v352_v63 = vld [vmem:[%s4814_s26 + $0x20] sm:$0xf] }
  0xdf   : > { %v1213_v43 = vsel %vm288_vm1, %v1208_v40, %v6724_v35  ;;  %v394_v40 = vld [vmem:[%s4814_s26 + $0x20] sm:$0xf] }
  0xe0   : > { %v1215_v57 = vsel %vm6721_vm14, %v1199_v29, %v1213_v43  ;;  %v5204_v10 = vpop.permute.xlu1 %1242  ;;  %v1241_v16 = vpop.permute.xlu0 %1240  ;;  %vm1298_vm14 = vcmask 285696  }
  0xe1   : > { %v6723_v61 = vrot.slane %v5204_v10, 4  ;;  %v1250_v19 = vrot.slane %v1241_v16, 4  ;;  %v4479_v6 = vcombine.high %v1173_v54, %v1215_v57  ;;  %v4478_v45 = vcombine.low %v1173_v54, %v1215_v57 }
  0xe2   : > { %281 = vrot.lane.b32.xlu0 %v267_v49, %s6742_s28  ;;  %324 = vrot.lane.b32.xlu1 %v310_v52, %s4719_s27  ;;  %v436_v52 = vld [vmem:[%s4814_s26 + $0x20] sm:$0xf]  ;;  %s6798_s27 = smov 18  }
  0xe3   : > { %2068 = vmatprep.subr.bf16.mxu0 %v4479_v6  ;;  %v1255_v32 = vsel %vm288_vm1, %v1250_v19, %v6723_v61 }
  0xe4   : > { %v5211_v3 = vpop.permute.xlu1 %1284  ;;  %v1283_v29 = vpop.permute.xlu0 %1282  ;;  %2069 = vmatpush1.bf16.msra.mxu0 %v4478_v45  ;;  %v478_v45 = vld [vmem:[%s4814_s26 + $0x20] sm:$0xf]  ;;  %v1257_v54 = vsel %vm1256_vm13, %v1241_v16, %v1255_v32 }
  0xe5   : > { %v6726_v43 = vrot.slane %v5211_v3, 4  ;;  %v1292_v49 = vrot.slane %v1283_v29, 4  ;;  %v520_v16 = vld [vmem:[%s4814_s26 + $0x20] sm:$0xf] }
  0xe6   : > { %366 = vrot.lane.b32.xlu0 %v352_v63, %s6746_s29  ;;  %408 = vrot.lane.b32.xlu1 %v394_v40, %s6756_s30 }
  0xe7   : > { %v1297_v6 = vsel %vm288_vm1, %v1292_v49, %v6726_v43 }
  0xe8   : > { %v1299_v57 = vsel %vm1298_vm14, %v1283_v29, %v1297_v6  ;;  %v5226_v19 = vpop.permute.xlu1 %1326  ;;  %v1325_v61 = vpop.permute.xlu0 %1324  ;;  %v562_v29 = vld [vmem:[%s4814_s26 + $0x20] sm:$0xf] }
  0xe9   : > { %v6728_v63 = vrot.slane %v5226_v19, 4  ;;  %v1334_v35 = vrot.slane %v1325_v61, 4  ;;  %v4487_v40 = vcombine.high %v1257_v54, %v1299_v57  ;;  %v4486_v27 = vcombine.low %v1257_v54, %v1299_v57 }
  0xea   : > { %450 = vrot.lane.b32.xlu0 %v436_v52, %s4723_s7  ;;  %492 = vrot.lane.b32.xlu1 %v478_v45, %s4724_s8  ;;  %s6799_s7 = smov 17   ;;  %s6800_s8 = smov 16  }
  0xeb   : > { %v1339_v49 = vsel %vm288_vm1, %v1334_v35, %v6728_v63  ;;  %2070 = vmatprep.subr.bf16.mxu0 %v4487_v40  ;;  %v604_v40 = vld [vmem:[%s4814_s26 + $0x20] sm:$0xf] }
  0xec   : > { %v1341_v32 = vsel %vm1340_vm15, %v1325_v61, %v1339_v49  ;;  %v5237_v6 = vpop.permute.xlu1 %279  ;;  %v278_v43 = vpop.permute.xlu0 %277  ;;  %2071 = vmatpush1.bf16.msra.mxu0 %v4486_v27  ;;  %v5253_v49 = vcombine.low %v4909_v4, %v4909_v4 }
  0xed   : > { %v4495_v54 = vcombine.high %v1341_v32, %v1341_v32  ;;  %v6727_v52 = vrot.slane %v5237_v6, 4  ;;  %v285_v57 = vrot.slane %v278_v43, 4  ;;  %v4494_v45 = vcombine.low %v1341_v32, %v1341_v32 }
  0xee   : > { %534 = vrot.lane.b32.xlu0 %v520_v16, %s4725_s9  ;;  %576 = vrot.lane.b32.xlu1 %v562_v29, %s4726_s10  ;;  %v646_v16 = vld [vmem:[%s4814_s26 + $0x20] sm:$0xf]  ;;  %s6801_s9 = smov 8   ;;  %s6802_s10 = smov 46  }
  0xef   : > { %v294_v35 = vsel %vm288_vm1, %v285_v57, %v6727_v52  ;;  %4502 = vmatprep.subr.msk.bf16.mxu0 %vm288_vm1, %v4495_v54  ;;  %v2023_v61 = vsel %vm288_vm1, %v4494_v45, 0  ;;  %v292_v27 = vsel %vm288_vm1, %v284_v15, %v285_v57 }
  0xf0   : > { %v295_v29 = vsel %vm290_vm2, %v278_v43, %v294_v35  ;;  %v5257_v32 = vpop.permute.xlu1 %322  ;;  %v321_v52 = vpop.permute.xlu0 %320  ;;  %2073 = vmatpush1.bf16.msra.mxu0 %v2023_v61  ;;  %v293_v54 = vsel %vm290_vm2, %v4947_v12, %v292_v27  ;;  %v688_v12 = vld [vmem:[%s4814_s26 + $0x20] sm:$0xf] }
  0xf1   : > { %v4394_v45 = vcombine.low %v4927_v7, %v295_v29  ;;  %v6730_v15 = vrot.slane %v5257_v32, 4  ;;  %v328_v57 = vrot.slane %v321_v52, 4  ;;  %v4393_v4 = vcombine.high %v4824_v1, %v293_v54  ;;  %v730_v35 = vld [vmem:[%s4814_s26 + $0x20] sm:$0xf] }
  0xf2   : > { %618 = vrot.lane.b32.xlu0 %v604_v40, %s6750_s11  ;;  %v4395_v63 = vcombine.high %v4927_v7, %v295_v29  ;;  %v4392_v43 = vcombine.low %v4824_v1, %v293_v54  ;;  %660 = vrot.lane.b32.xlu1 %v646_v16, %s4728_s12  ;;  %v772_v29 = vld [vmem:[%s4814_s26 + $0x20] sm:$0xf] }
  0xf3   : > { %2087 = vmatprep.subr.bf16.mxu1 %v4393_v4  ;;  %2079 = vmatmul.mubr.bf16.vlgmr.msra.gmra.mrb[0].mxu0 %v5253_v49  ;;  %v336_v7 = vsel %vm288_vm1, %v328_v57, %v6730_v15  ;;  %v334_v16 = vsel %vm288_vm1, %v327_v14, %v328_v57 }
  0xf4   : > { %2128 = vmatprep.subr.bf16.mxu0 %v4395_v63  ;;  %v5271_v61 = vpop.permute.xlu1 %364  ;;  %v363_v27 = vpop.permute.xlu0 %362  ;;  %2088 = vmatpush1.bf16.msra.mxu1 %v4392_v43  ;;  %v337_v14 = vsel %vm332_vm3, %v321_v52, %v336_v7 }
  0xf5   : > { %v6729_v1 = vrot.slane %v5271_v61, 4  ;;  %v370_v40 = vrot.slane %v363_v27, 4  ;;  %2129 = vmatpush1.bf16.msra.mxu0 %v4394_v45  ;;  %4507 = vmatprep.mubr.msk.bf16.mxu0 %vm2017_vm0, %v4913_v5  ;;  %v814_v45 = vld [vmem:[%s4814_s26 + $0x20] sm:$0xf] }
  0xf6   : > { %702 = vrot.lane.b32.xlu0 %v688_v12, %s4729_s13  ;;  %744 = vrot.lane.b32.xlu1 %v730_v35, %s6798_s27  ;;  %v335_v12 = vsel %vm332_vm3, %v4945_v11, %v334_v16  ;;  %s4757_s13 = smov 9  }
  0xf7   : > { %v378_v63 = vsel %vm288_vm1, %v370_v40, %v6729_v1  ;;  %v376_v54 = vsel %vm288_vm1, %v369_v21, %v370_v40 }
  0xf8   : > { %v379_v57 = vsel %vm6767_vm4, %v363_v27, %v378_v63  ;;  %v5294_v4 = vpop.permute.xlu1 %406  ;;  %v405_v43 = vpop.permute.xlu0 %404  ;;  %v377_v35 = vsel %vm6767_vm4, %v4961_v18, %v376_v54  ;;  %v856_v27 = vld [vmem:[%s4814_s26 + $0x20] sm:$0xf] }
  0xf9   : > { %v4402_v1 = vcombine.low %v337_v14, %v379_v57  ;;  %v413_v15 = vrot.slane %v5294_v4, 4  ;;  %v412_v21 = vrot.slane %v405_v43, 4  ;;  %v4401_v40 = vcombine.high %v335_v12, %v377_v35  ;;  %v898_v63 = vld [vmem:[%s4814_s26 + $0x20] sm:$0xf] }
  0xfa   : > { %786 = vrot.lane.b32.xlu0 %v772_v29, %s6799_s7  ;;  %v4403_v52 = vcombine.high %v337_v14, %v379_v57  ;;  %v4400_v7 = vcombine.low %v335_v12, %v377_v35  ;;  %828 = vrot.lane.b32.xlu1 %v814_v45, %s6800_s8  ;;  %v940_v57 = vld [vmem:[%s4814_s26 + $0x20] sm:$0xf]  ;;  %v982_v35 = vld [vmem:[%s4814_s26 + $0x24] sm:$0xf]  ;;  %s4754_s8 = smov 89  }
  0xfb   : > { %2089 = vmatprep.subr.bf16.mxu1 %v4401_v40  ;;  %v420_v16 = vsel %vm288_vm1, %v412_v21, %v413_v15  ;;  %v418_v45 = vsel %vm288_vm1, %v411_v30, %v412_v21 }
  0xfc   : > { %2130 = vmatprep.subr.bf16.mxu0 %v4403_v52  ;;  %v5305_v11 = vpop.permute.xlu1 %448  ;;  %v447_v18 = vpop.permute.xlu0 %446  ;;  %2090 = vmatpush1.bf16.msra.mxu1 %v4400_v7  ;;  %v419_v52 = vsel %vm6766_vm5, %v4976_v28, %v418_v45 }
  0xfd   : > { %v455_v29 = vrot.slane %v5305_v11, 4  ;;  %v454_v54 = vrot.slane %v447_v18, 4  ;;  %2131 = vmatpush1.bf16.msra.mxu0 %v4402_v1  ;;  %v421_v1 = vsel %vm6766_vm5, %v405_v43, %v420_v16 }
  0xfe   : > { %870 = vrot.lane.b32.xlu0 %v856_v27, %s6801_s9  ;;  %912 = vrot.lane.b32.xlu1 %v898_v63, %s6791_s18  ;;  %s4752_s18 = smov 91   ;;  %s4755_s9 = smov 11  }
  0xff   : > { %v462_v14 = vsel %vm288_vm1, %v454_v54, %v455_v29  ;;  %v460_v12 = vsel %vm288_vm1, %v453_v37, %v454_v54 }
 0x100   : > { %v463_v30 = vsel %vm458_vm6, %v447_v18, %v462_v14  ;;  %v5326_v21 = vpop.permute.xlu1 %490  ;;  %v489_v40 = vpop.permute.xlu0 %488  ;;  %v461_v7 = vsel %vm458_vm6, %v4983_v34, %v460_v12  ;;  %v1024_v18 = vld [vmem:[%s4814_s26 + $0x24] sm:$0xf] }
 0x101   : > { %v4410_v27 = vcombine.low %v421_v1, %v463_v30  ;;  %v497_v63 = vrot.slane %v5326_v21, 4  ;;  %v496_v37 = vrot.slane %v489_v40, 4  ;;  %v4409_v54 = vcombine.high %v419_v52, %v461_v7  ;;  %v1066_v14 = vld [vmem:[%s4814_s26 + $0x24] sm:$0xf] }
 0x102   : > { %954 = vrot.lane.b32.xlu0 %v940_v57, %s6792_s24  ;;  %v4411_v43 = vcombine.high %v421_v1, %v463_v30  ;;  %v4408_v16 = vcombine.low %v419_v52, %v461_v7  ;;  %996 = vrot.lane.b32.xlu1 %v982_v35, %s6793_s17  ;;  %v1108_v30 = vld [vmem:[%s4814_s26 + $0x24] sm:$0xf]  ;;  %s4747_s17 = smov 110   ;;  %s4753_s24 = smov 90  }
 0x103   : > { %2091 = vmatprep.subr.bf16.mxu1 %v4409_v54  ;;  %v504_v45 = vsel %vm288_vm1, %v496_v37, %v497_v63  ;;  %v502_v35 = vsel %vm288_vm1, %v495_v44, %v496_v37  ;;  %v1150_v7 = vld [vmem:[%s4814_s26 + $0x24] sm:$0xf] }
 0x104   : > { %2132 = vmatprep.subr.bf16.mxu0 %v4411_v43  ;;  %v5337_v28 = vpop.permute.xlu1 %532  ;;  %v531_v34 = vpop.permute.xlu0 %530  ;;  %2092 = vmatpush1.bf16.msra.mxu1 %v4408_v16  ;;  %v503_v43 = vsel %vm500_vm7, %v4998_v42, %v502_v35 }
 0x105   : > { %v539_v57 = vrot.slane %v5337_v28, 4  ;;  %v538_v12 = vrot.slane %v531_v34, 4  ;;  %2133 = vmatpush1.bf16.msra.mxu0 %v4410_v27  ;;  %v505_v27 = vsel %vm500_vm7, %v489_v40, %v504_v45 }
 0x106   : > { %1038 = vrot.lane.b32.xlu0 %v1024_v18, %s6794_s16  ;;  %1080 = vrot.lane.b32.xlu1 %v1066_v14, %s6795_s15  ;;  %s4746_s16 = smov 111   ;;  %s6748_s15 = smov 39  }
 0x107   : > { %v546_v1 = vsel %vm288_vm1, %v538_v12, %v539_v57  ;;  %v544_v52 = vsel %vm288_vm1, %v537_v51, %v538_v12 }
 0x108   : > { %v547_v44 = vsel %vm542_vm8, %v531_v34, %v546_v1  ;;  %v5358_v37 = vpop.permute.xlu1 %574  ;;  %v573_v54 = vpop.permute.xlu0 %572  ;;  %v545_v16 = vsel %vm542_vm8, %v5005_v48, %v544_v52  ;;  %v1192_v34 = vld [vmem:[%s4814_s26 + $0x24] sm:$0xf] }
 0x109   : > { %v4418_v18 = vcombine.low %v505_v27, %v547_v44  ;;  %v6732_v14 = vrot.slane %v5358_v37, 4  ;;  %v580_v51 = vrot.slane %v573_v54, 4  ;;  %v4417_v12 = vcombine.high %v503_v43, %v545_v16  ;;  %v1234_v1 = vld [vmem:[%s4814_s26 + $0x24] sm:$0xf] }
 0x10a   : > { %1122 = vrot.lane.b32.xlu0 %v1108_v30, %s6802_s10  ;;  %v4419_v40 = vcombine.high %v505_v27, %v547_v44  ;;  %v4416_v45 = vcombine.low %v503_v43, %v545_v16  ;;  %1164 = vrot.lane.b32.xlu1 %v1150_v7, %s6796_s14  ;;  %v1276_v44 = vld [vmem:[%s4814_s26 + $0x24] sm:$0xf]  ;;  %s4756_s10 = smov 10   ;;  %s6754_s14 = smov 1  }
 0x10b   : > { %2093 = vmatprep.subr.bf16.mxu1 %v4417_v12  ;;  %v588_v35 = vsel %vm288_vm1, %v580_v51, %v6732_v14  ;;  %v586_v7 = vsel %vm288_vm1, %v579_v58, %v580_v51  ;;  %v1318_v16 = vld [vmem:[%s4814_s26 + $0x24] sm:$0xf] }
 0x10c   : > { %2134 = vmatprep.subr.bf16.mxu0 %v4419_v40  ;;  %v5369_v42 = vpop.permute.xlu1 %616  ;;  %v615_v48 = vpop.permute.xlu0 %614  ;;  %2094 = vmatpush1.bf16.msra.mxu1 %v4416_v45  ;;  %v587_v51 = vsel %vm6736_vm9, %v5020_v56, %v586_v7  ;;  %v1465_v56 = vld [vmem:[%s6682_s1] sm:$0xff] }
 0x10d   : > { %v6731_v30 = vrot.slane %v5369_v42, 4  ;;  %v622_v52 = vrot.slane %v615_v48, 4  ;;  %2135 = vmatpush1.bf16.msra.mxu0 %v4418_v18  ;;  %v589_v18 = vsel %vm6736_vm9, %v573_v54, %v588_v35 }
 0x10e   : > { %1206 = vrot.lane.b32.xlu0 %v1192_v34, %s4741_s20  ;;  %1248 = vrot.lane.b32.xlu1 %v1234_v1, %s6797_s25  ;;  %s4749_s20 = smov 101   ;;  %s4751_s25 = smov 99  }
 0x10f   : > { %v630_v27 = vsel %vm288_vm1, %v622_v52, %v6731_v30  ;;  %v628_v43 = vsel %vm288_vm1, %v621_v2, %v622_v52 }
 0x110   : > { %v631_v12 = vsel %vm6735_vm10, %v615_v48, %v630_v27  ;;  %v5390_v40 = vpop.permute.xlu1 %658  ;;  %v657_v58 = vpop.permute.xlu0 %656  ;;  %v629_v45 = vsel %vm6735_vm10, %v5027_v62, %v628_v43  ;;  %v4745_v27 = vmov 0  }
 0x111   : > { %v4426_v34 = vcombine.low %v589_v18, %v631_v12  ;;  %v665_v1 = vrot.slane %v5390_v40, 4  ;;  %v664_v30 = vrot.slane %v657_v58, 4  ;;  %v4425_v14 = vcombine.high %v587_v51, %v629_v45  ;;  %4706 = vset.pattern.permute.xlu0 %v4745_v27  ;;  %253 = vst [vmem:[#allocation2] sm:$0xf] %v4745_v27  ;;  %254 = vst [vmem:[#allocation2 + $0x24] sm:$0xf] %v4745_v27 }
 0x112   : > { %1290 = vrot.lane.b32.xlu0 %v1276_v44, %s4743_s19  ;;  %v4427_v2 = vcombine.high %v589_v18, %v631_v12  ;;  %v4424_v54 = vcombine.low %v587_v51, %v629_v45  ;;  %1332 = vrot.lane.b32.xlu1 %v1318_v16, %s4744_s23  ;;  %s4748_s19 = smov 109   ;;  %s4750_s23 = smov 100  }
 0x113   : > { %2095 = vmatprep.subr.bf16.mxu1 %v4425_v14  ;;  %v672_v62 = vsel %vm288_vm1, %v664_v30, %v665_v1  ;;  %v670_v14 = vsel %vm288_vm1, %v663_v17, %v664_v30 }
 0x114   : > { %2136 = vmatprep.subr.bf16.mxu0 %v4427_v2  ;;  %v5399_v48 = vpop.permute.xlu1 %700  ;;  %v699_v35 = vpop.permute.xlu0 %698  ;;  %2096 = vmatpush1.bf16.msra.mxu1 %v4424_v54  ;;  %v673_v16 = vsel %vm6734_vm11, %v657_v58, %v672_v62  ;;  %v671_v30 = vsel %vm6734_vm11, %v5042_v13, %v670_v14  ;;  %vm6804_vm11 = vcmask 138240  }
 0x115   : > { %v707_v52 = vrot.slane %v5399_v48, 4  ;;  %v706_v7 = vrot.slane %v699_v35, 4  ;;  %2137 = vmatpush1.bf16.msra.mxu0 %v4426_v34  ;;  %vm6806_vm9 = vmmov %vm6804_vm11 }
 0x116   : > { %1468 = vperm.xlu0 %4706, %v1465_v56  }
 0x117   : > { %v714_v44 = vsel %vm288_vm1, %v706_v7, %v707_v52  ;;  %v712_v43 = vsel %vm288_vm1, %v705_v26, %v706_v7 }
 0x118   : > { %v715_v18 = vsel %vm6733_vm12, %v699_v35, %v714_v44  ;;  %v5419_v12 = vpop.permute.xlu1 %742  ;;  %v741_v17 = vpop.permute.xlu0 %740  ;;  %v713_v51 = vsel %vm6733_vm12, %v5049_v23, %v712_v43  ;;  %vm6803_vm12 = vcmask 146432  }
 0x119   : > { %v4434_v45 = vcombine.low %v673_v16, %v715_v18  ;;  %v749_v34 = vrot.slane %v5419_v12, 4  ;;  %v748_v2 = vrot.slane %v741_v17, 4  ;;  %v4433_v54 = vcombine.high %v671_v30, %v713_v51  ;;  %vm6805_vm10 = vmmov %vm6803_vm12 }
 0x11a   : > { %v4435_v56 = vcombine.high %v673_v16, %v715_v18  ;;  %v4432_v26 = vcombine.low %v671_v30, %v713_v51 }
 0x11b   : > { %2097 = vmatprep.subr.bf16.mxu1 %v4433_v54  ;;  %v756_v13 = vsel %vm288_vm1, %v748_v2, %v749_v34  ;;  %v754_v7 = vsel %vm288_vm1, %v747_v36, %v748_v2 }
 0x11c   : > { %2138 = vmatprep.subr.bf16.mxu0 %v4435_v56  ;;  %v5426_v58 = vpop.permute.xlu1 %784  ;;  %v783_v35 = vpop.permute.xlu0 %782  ;;  %2098 = vmatpush1.bf16.msra.mxu1 %v4432_v26  ;;  %v757_v44 = vsel %vm6803_vm12, %v741_v17, %v756_v13  ;;  %v755_v30 = vsel %vm6805_vm10, %v5064_v33, %v754_v7  ;;  %vm6808_vm10 = vcmask 64512  }
 0x11d   : > { %v791_v62 = vrot.slane %v5426_v58, 4  ;;  %v790_v23 = vrot.slane %v783_v35, 4  ;;  %2139 = vmatpush1.bf16.msra.mxu0 %v4434_v45  ;;  %vm6810_vm12 = vmmov %vm6808_vm10 }
 0x11f   : > { %v798_v14 = vsel %vm288_vm1, %v790_v23, %v791_v62  ;;  %v796_v27 = vsel %vm288_vm1, %v789_v46, %v790_v23 }
 0x120   : > { %v799_v43 = vsel %vm6804_vm11, %v783_v35, %v798_v14  ;;  %v5443_v16 = vpop.permute.xlu1 %826  ;;  %v825_v18 = vpop.permute.xlu0 %824  ;;  %v797_v36 = vsel %vm6806_vm9, %v5071_v41, %v796_v27  ;;  %vm6807_vm9 = vcmask 130048  }
 0x121   : > { %v4442_v51 = vcombine.low %v757_v44, %v799_v43  ;;  %v833_v45 = vrot.slane %v5443_v16, 4  ;;  %v832_v2 = vrot.slane %v825_v18, 4  ;;  %v4441_v54 = vcombine.high %v755_v30, %v797_v36  ;;  %vm6809_vm11 = vmmov %vm6807_vm9 }
 0x122   : > { %v4443_v56 = vcombine.high %v757_v44, %v799_v43  ;;  %v4440_v46 = vcombine.low %v755_v30, %v797_v36 }
 0x123   : > { %2099 = vmatprep.subr.bf16.mxu1 %v4441_v54  ;;  %v840_v33 = vsel %vm288_vm1, %v832_v2, %v833_v45  ;;  %v838_v13 = vsel %vm288_vm1, %v831_v55, %v832_v2 }
 0x124   : > { %2140 = vmatprep.subr.bf16.mxu0 %v4443_v56  ;;  %v5450_v17 = vpop.permute.xlu1 %868  ;;  %v867_v26 = vpop.permute.xlu0 %866  ;;  %2100 = vmatpush1.bf16.msra.mxu1 %v4440_v46  ;;  %v841_v14 = vsel %vm6807_vm9, %v825_v18, %v840_v33  ;;  %v839_v30 = vsel %vm6809_vm11, %v5086_v53, %v838_v13  ;;  %vm6811_vm9 = vcmask 56320  }
 0x125   : > { %v875_v35 = vrot.slane %v5450_v17, 4  ;;  %v874_v41 = vrot.slane %v867_v26, 4  ;;  %2141 = vmatpush1.bf16.msra.mxu0 %v4442_v51  ;;  %vm6813_vm11 = vmmov %vm6811_vm9 }
 0x127   : > { %v882_v23 = vsel %vm288_vm1, %v874_v41, %v875_v35  ;;  %v880_v7 = vsel %vm288_vm1, %v873_v9, %v874_v41 }
 0x128   : > { %v883_v27 = vsel %vm6808_vm10, %v867_v26, %v882_v23  ;;  %v5467_v44 = vpop.permute.xlu1 %910  ;;  %v909_v43 = vpop.permute.xlu0 %908  ;;  %v881_v55 = vsel %vm6810_vm12, %v5099_v0, %v880_v7  ;;  %vm6812_vm10 = vcmask 48128  }
 0x129   : > { %v4450_v36 = vcombine.low %v841_v14, %v883_v27  ;;  %v917_v51 = vrot.slane %v5467_v44, 4  ;;  %v916_v2 = vrot.slane %v909_v43, 4  ;;  %v4449_v54 = vcombine.high %v839_v30, %v881_v55  ;;  %vm6814_vm12 = vmmov %vm6812_vm10 }
 0x12a   : > { %v4451_v56 = vcombine.high %v841_v14, %v883_v27  ;;  %v4448_v9 = vcombine.low %v839_v30, %v881_v55 }
 0x12b   : > { %2101 = vmatprep.subr.bf16.mxu1 %v4449_v54  ;;  %v924_v53 = vsel %vm288_vm1, %v916_v2, %v917_v51  ;;  %v922_v33 = vsel %vm288_vm1, %v915_v24, %v916_v2 }
 0x12c   : > { %2142 = vmatprep.subr.bf16.mxu0 %v4451_v56  ;;  %v5474_v18 = vpop.permute.xlu1 %952  ;;  %v951_v46 = vpop.permute.xlu0 %950  ;;  %2102 = vmatpush1.bf16.msra.mxu1 %v4448_v9  ;;  %v925_v23 = vsel %vm6811_vm9, %v909_v43, %v924_v53  ;;  %v923_v30 = vsel %vm6813_vm11, %v5114_v20, %v922_v33  ;;  %vm6815_vm9 = vcmask 457728  }
 0x12d   : > { %v959_v26 = vrot.slane %v5474_v18, 4  ;;  %v958_v0 = vrot.slane %v951_v46, 4  ;;  %2143 = vmatpush1.bf16.msra.mxu0 %v4450_v36  ;;  %vm6817_vm11 = vmmov %vm6815_vm9 }
 0x12f   : > { %v966_v41 = vsel %vm288_vm1, %v958_v0, %v959_v26  ;;  %v964_v13 = vsel %vm288_vm1, %v957_v38, %v958_v0 }
 0x130   : > { %v967_v7 = vsel %vm6812_vm10, %v951_v46, %v966_v41  ;;  %v5491_v14 = vpop.permute.xlu1 %994  ;;  %v993_v27 = vpop.permute.xlu0 %992  ;;  %v965_v24 = vsel %vm6814_vm12, %v5121_v31, %v964_v13  ;;  %vm6816_vm10 = vcmask 449536  }
 0x131   : > { %v4458_v55 = vcombine.low %v925_v23, %v967_v7  ;;  %v1001_v36 = vrot.slane %v5491_v14, 4  ;;  %v1000_v2 = vrot.slane %v993_v27, 4  ;;  %v4457_v54 = vcombine.high %v923_v30, %v965_v24  ;;  %vm6818_vm12 = vmmov %vm6816_vm10 }
 0x132   : > { %v4459_v56 = vcombine.high %v925_v23, %v967_v7  ;;  %v4456_v38 = vcombine.low %v923_v30, %v965_v24 }
 0x133   : > { %2103 = vmatprep.subr.bf16.mxu1 %v4457_v54  ;;  %v1008_v20 = vsel %vm288_vm1, %v1000_v2, %v1001_v36  ;;  %v1006_v53 = vsel %vm288_vm1, %v999_v50, %v1000_v2 }
 0x134   : > { %2144 = vmatprep.subr.bf16.mxu0 %v4459_v56  ;;  %v5498_v43 = vpop.permute.xlu1 %1036  ;;  %v1035_v9 = vpop.permute.xlu0 %1034  ;;  %2104 = vmatpush1.bf16.msra.mxu1 %v4456_v38  ;;  %v1009_v41 = vsel %vm6815_vm9, %v993_v27, %v1008_v20  ;;  %v1007_v30 = vsel %vm6817_vm11, %v5136_v47, %v1006_v53  ;;  %v6819_v20 = vrot.slane %v5158_v22, 4  ;;  %vm6821_vm9 = vcmask 441344  }
 0x135   : > { %v1043_v46 = vrot.slane %v5498_v43, 4  ;;  %v1042_v31 = vrot.slane %v1035_v9, 4  ;;  %2145 = vmatpush1.bf16.msra.mxu0 %v4458_v55  ;;  %vm6823_vm11 = vmmov %vm6821_vm9 }
 0x137   : > { %v1050_v0 = vsel %vm288_vm1, %v1042_v31, %v1043_v46  ;;  %v1048_v33 = vsel %vm288_vm1, %v1041_v8, %v1042_v31 }
 0x138   : > { %v1051_v13 = vsel %vm6816_vm10, %v1035_v9, %v1050_v0  ;;  %v5515_v23 = vpop.permute.xlu1 %1078  ;;  %v1077_v7 = vpop.permute.xlu0 %1076  ;;  %v1049_v50 = vsel %vm6818_vm12, %v5143_v59, %v1048_v33  ;;  %v6820_v0 = vrot.slane %v5165_v39, 4  ;;  %vm6822_vm10 = vcmask 375808  }
 0x139   : > { %v4466_v24 = vcombine.low %v1009_v41, %v1051_v13  ;;  %v1085_v55 = vrot.slane %v5515_v23, 4  ;;  %v1084_v2 = vrot.slane %v1077_v7, 4  ;;  %v4465_v54 = vcombine.high %v1007_v30, %v1049_v50  ;;  %vm6824_vm12 = vmmov %vm6822_vm10 }
 0x13a   : > { %v4467_v56 = vcombine.high %v1009_v41, %v1051_v13  ;;  %v4464_v8 = vcombine.low %v1007_v30, %v1049_v50 }
 0x13b   : > { %2105 = vmatprep.subr.bf16.mxu1 %v4465_v54  ;;  %v1092_v47 = vsel %vm288_vm1, %v1084_v2, %v1085_v55  ;;  %v1090_v31 = vsel %vm288_vm1, %v6819_v20, %v1084_v2 }
 0x13c   : > { %2146 = vmatprep.subr.bf16.mxu0 %v4467_v56  ;;  %v5522_v27 = vpop.permute.xlu1 %1120  ;;  %v1119_v38 = vpop.permute.xlu0 %1118  ;;  %2106 = vmatpush1.bf16.msra.mxu1 %v4464_v8  ;;  %v1093_v41 = vsel %vm6821_vm9, %v1077_v7, %v1092_v47  ;;  %vm6827_vm9 = vcmask 367616  }
 0x13d   : > { %v6737_v9 = vrot.slane %v5522_v27, 4  ;;  %v1126_v59 = vrot.slane %v1119_v38, 4  ;;  %2147 = vmatpush1.bf16.msra.mxu0 %v4466_v24  ;;  %v1091_v24 = vsel %vm6823_vm11, %v5158_v22, %v1090_v31  ;;  %v6825_v31 = vrot.slane %v5180_v60, 4  ;;  %vm6829_vm11 = vmmov %vm6827_vm9 }
 0x13f   : > { %v1134_v53 = vsel %vm288_vm1, %v1126_v59, %v6737_v9  ;;  %v1132_v33 = vsel %vm288_vm1, %v6820_v0, %v1126_v59  ;;  %v6826_v0 = vrot.slane %v5187_v25, 4 }
 0x140   : > { %v1135_v13 = vsel %vm6822_vm10, %v1119_v38, %v1134_v53  ;;  %v5539_v30 = vpop.permute.xlu1 %1162  ;;  %v1161_v50 = vpop.permute.xlu0 %1160  ;;  %v1133_v2 = vsel %vm6824_vm12, %v5165_v39, %v1132_v33  ;;  %vm6828_vm10 = vcmask 359424  }
 0x141   : > { %v4474_v54 = vcombine.low %v1093_v41, %v1135_v13  ;;  %v6739_v56 = vrot.slane %v5539_v30, 4  ;;  %v1168_v8 = vrot.slane %v1161_v50, 4  ;;  %v4473_v20 = vcombine.high %v1091_v24, %v1133_v2  ;;  %vm6830_vm12 = vmmov %vm6828_vm10 }
 0x142   : > { %v4475_v9 = vcombine.high %v1093_v41, %v1135_v13  ;;  %v4472_v59 = vcombine.low %v1091_v24, %v1133_v2 }
 0x143   : > { %2107 = vmatprep.subr.bf16.mxu1 %v4473_v20  ;;  %v1176_v22 = vsel %vm288_vm1, %v1168_v8, %v6739_v56  ;;  %v1174_v53 = vsel %vm288_vm1, %v6825_v31, %v1168_v8 }
 0x144   : > { %2148 = vmatprep.subr.bf16.mxu0 %v4475_v9  ;;  %v5546_v7 = vpop.permute.xlu1 %1204  ;;  %v1203_v38 = vpop.permute.xlu0 %1202  ;;  %2108 = vmatpush1.bf16.msra.mxu1 %v4472_v59  ;;  %v1177_v41 = vsel %vm6827_vm9, %v1161_v50, %v1176_v22  ;;  %vm6843_vm9 = vcmask 146432  }
 0x145   : > { %v6738_v47 = vrot.slane %v5546_v7, 4  ;;  %v1210_v39 = vrot.slane %v1203_v38, 4  ;;  %2149 = vmatpush1.bf16.msra.mxu0 %v4474_v54  ;;  %v1175_v54 = vsel %vm6829_vm11, %v5180_v60, %v1174_v53  ;;  %v6831_v53 = vrot.slane %v5204_v10, 4 }
 0x146   : > { %vm6845_vm11 = vcmask 130048  }
 0x147   : > { %v1218_v9 = vsel %vm288_vm1, %v1210_v39, %v6738_v47  ;;  %v1216_v33 = vsel %vm288_vm1, %v6826_v0, %v1210_v39 }
 0x148   : > { %v1219_v13 = vsel %vm6828_vm10, %v1203_v38, %v1218_v9  ;;  %v5563_v24 = vpop.permute.xlu1 %1246  ;;  %v1245_v2 = vpop.permute.xlu0 %1244  ;;  %v1217_v8 = vsel %vm6830_vm12, %v5187_v25, %v1216_v33  ;;  %vm6844_vm10 = vcmask 138240   ;;  %vm6846_vm12 = vcmask 64512  }
 0x149   : > { %v4482_v20 = vcombine.low %v1177_v41, %v1219_v13  ;;  %v6741_v59 = vrot.slane %v5563_v24, 4  ;;  %v1252_v31 = vrot.slane %v1245_v2, 4  ;;  %v4481_v47 = vcombine.high %v1175_v54, %v1217_v8 }
 0x14a   : > { %v4483_v56 = vcombine.high %v1177_v41, %v1219_v13  ;;  %v4480_v39 = vcombine.low %v1175_v54, %v1217_v8 }
 0x14b   : > { %2109 = vmatprep.subr.bf16.mxu1 %v4481_v47  ;;  %v1260_v60 = vsel %vm288_vm1, %v1252_v31, %v6741_v59  ;;  %v1258_v9 = vsel %vm288_vm1, %v6831_v53, %v1252_v31  ;;  %v6832_v47 = vrot.slane %v5211_v3, 4 }
 0x14c   : > { %2150 = vmatprep.subr.bf16.mxu0 %v4483_v56  ;;  %v5570_v50 = vpop.permute.xlu1 %1288  ;;  %v1287_v38 = vpop.permute.xlu0 %1286  ;;  %2110 = vmatpush1.bf16.msra.mxu1 %v4480_v39  ;;  %v1261_v33 = vsel %vm1256_vm13, %v1245_v2, %v1260_v60  ;;  %v1259_v8 = vsel %vm1256_vm13, %v5204_v10, %v1258_v9  ;;  %v6833_v2 = vrot.slane %v5226_v19, 4 }
 0x14d   : > { %v6740_v22 = vrot.slane %v5570_v50, 4  ;;  %v1294_v25 = vrot.slane %v1287_v38, 4  ;;  %2151 = vmatpush1.bf16.msra.mxu0 %v4482_v20 }
 0x14f   : > { %v1302_v56 = vsel %vm288_vm1, %v1294_v25, %v6740_v22  ;;  %v1300_v0 = vsel %vm288_vm1, %v6832_v47, %v1294_v25 }
 0x150   : > { %v1303_v41 = vsel %vm1298_vm14, %v1287_v38, %v1302_v56  ;;  %v5587_v13 = vpop.permute.xlu1 %1330  ;;  %v1329_v54 = vpop.permute.xlu0 %1328  ;;  %v1301_v20 = vsel %vm1298_vm14, %v5211_v3, %v1300_v0 }
 0x151   : > { %v4490_v31 = vcombine.low %v1261_v33, %v1303_v41  ;;  %v1337_v39 = vrot.slane %v5587_v13, 4  ;;  %v1336_v53 = vrot.slane %v1329_v54, 4  ;;  %v4489_v22 = vcombine.high %v1259_v8, %v1301_v20 }
 0x152   : > { %v4491_v59 = vcombine.high %v1261_v33, %v1303_v41  ;;  %v4488_v25 = vcombine.low %v1259_v8, %v1301_v20 }
 0x153   : > { %v1342_v38 = vsel %vm288_vm1, %v6833_v2, %v1336_v53  ;;  %v1344_v60 = vsel %vm288_vm1, %v1336_v53, %v1337_v39  ;;  %2111 = vmatprep.subr.bf16.mxu1 %v4489_v22  ;;  %v258_v2 = vld [vmem:[%s4814_s26 + $0x18] sm:$0xff]  ;;  %v6834_v53 = vrot.slane %v5237_v6, 4  ;;  %s6744_s26 = smov 119  }
 0x154   : > { %v1345_v10 = vsel %vm1340_vm15, %v1329_v54, %v1344_v60  ;;  %2152 = vmatprep.subr.bf16.mxu0 %v4491_v59  ;;  %v282_v3 = vpop.permute.xlu0 %281  ;;  %2112 = vmatpush1.bf16.msra.mxu1 %v4488_v25  ;;  %v325_v9 = vpop.permute.xlu1 %324  ;;  %v1343_v56 = vsel %vm1340_vm15, %v5226_v19, %v1342_v38  ;;  %v6835_v54 = vrot.slane %v5257_v32, 4 }
 0x155   : > { %v4498_v47 = vcombine.low %v1345_v10, %v1345_v10  ;;  %v4499_v0 = vcombine.high %v1345_v10, %v1345_v10  ;;  %v287_v33 = vrot.slane %v282_v3, 4  ;;  %2153 = vmatpush1.bf16.msra.mxu0 %v4490_v31  ;;  %v330_v41 = vrot.slane %v325_v9, 4 }
 0x156   : > { %v4497_v8 = vcombine.high %v1343_v56, %v1343_v56  ;;  %v4496_v20 = vcombine.low %v1343_v56, %v1343_v56 }
 0x157   : > { %v296_v22 = vsel %vm288_vm1, %v6834_v53, %v287_v33  ;;  %4506 = vmatprep.subr.msk.bf16.mxu0 %vm288_vm1, %v4499_v0  ;;  %v2035_v59 = vsel %vm288_vm1, %v4498_v47, 0  ;;  %v338_v19 = vsel %vm288_vm1, %v6835_v54, %v330_v41  ;;  %v6836_v47 = vrot.slane %v5271_v61, 4 }
 0x158   : > { %4504 = vmatprep.subr.msk.bf16.mxu1 %vm288_vm1, %v4497_v8  ;;  %v367_v25 = vpop.permute.xlu0 %366  ;;  %v2029_v31 = vsel %vm288_vm1, %v4496_v20, 0  ;;  %v297_v38 = vsel %vm290_vm2, %v5237_v6, %v296_v22  ;;  %v409_v60 = vpop.permute.xlu1 %408  ;;  %v339_v41 = vsel %vm332_vm3, %v5257_v32, %v338_v19  ;;  %vm6838_vm3 = vcmask 867328  }
 0x159   : > { %v372_v10 = vrot.slane %v367_v25, 4  ;;  %2114 = vmatpush1.bf16.msra.mxu1 %v2029_v31  ;;  %2155 = vmatpush1.bf16.msra.mxu0 %v2035_v59  ;;  %v4396_v3 = vcombine.low %v258_v2, %v297_v38  ;;  %v4397_v9 = vcombine.high %v258_v2, %v297_v38  ;;  %v414_v56 = vrot.slane %v409_v60, 4 }
 0x15b   : > { %v380_v0 = vsel %vm288_vm1, %v6836_v47, %v372_v10  ;;  %2169 = vmatprep.subr.bf16.mxu1 %v4397_v9  ;;  %v422_v33 = vsel %vm288_vm1, %v413_v15, %v414_v56 }
 0x15c   : > { %2120 = vmatmul.mubr.bf16.vlgmr.msra.gmra.mrb[0].mxu1 %v5253_v49  ;;  %2161 = vmatmul.mubr.bf16.vlgmr.msra.gmra.mrb[4].mxu0 %v5253_v49  ;;  %v451_v6 = vpop.permute.xlu0 %450  ;;  %v381_v8 = vsel %vm6767_vm4, %v5271_v61, %v380_v0  ;;  %v493_v20 = vpop.permute.xlu1 %492  ;;  %v423_v15 = vsel %vm6766_vm5, %v5294_v4, %v422_v33 }
 0x15d   : > { %v456_v2 = vrot.slane %v451_v6, 4  ;;  %2170 = vmatpush1.bf16.msra.mxu1 %v4396_v3  ;;  %v4404_v53 = vcombine.low %v339_v41, %v381_v8  ;;  %v4405_v22 = vcombine.high %v339_v41, %v381_v8  ;;  %v498_v59 = vrot.slane %v493_v20, 4  ;;  %4509 = vmatprep.mubr.msk.bf16.mxu1 %vm2017_vm0, %v4913_v5 }
 0x15f   : > { %v464_v54 = vsel %vm288_vm1, %v455_v29, %v456_v2  ;;  %2171 = vmatprep.subr.bf16.mxu1 %v4405_v22  ;;  %v506_v32 = vsel %vm288_vm1, %v497_v63, %v498_v59  ;;  %v6837_v63 = vrot.slane %v5358_v37, 4 }
 0x160   : > { %v535_v61 = vpop.permute.xlu0 %534  ;;  %v465_v19 = vsel %vm458_vm6, %v5305_v11, %v464_v54  ;;  %v577_v25 = vpop.permute.xlu1 %576  ;;  %v507_v4 = vsel %vm500_vm7, %v5326_v21, %v506_v32  ;;  %vm6840_vm6 = vcmask 228352   ;;  %vm6841_vm7 = vcmask 220160  }
 0x161   : > { %v540_v31 = vrot.slane %v535_v61, 4  ;;  %2172 = vmatpush1.bf16.msra.mxu1 %v4404_v53  ;;  %v4412_v5 = vcombine.low %v423_v15, %v465_v19  ;;  %v4413_v38 = vcombine.high %v423_v15, %v465_v19  ;;  %v582_v60 = vrot.slane %v577_v25, 4 }
 0x163   : > { %v548_v29 = vsel %vm288_vm1, %v539_v57, %v540_v31  ;;  %2173 = vmatprep.subr.bf16.mxu1 %v4413_v38  ;;  %v590_v10 = vsel %vm288_vm1, %v6837_v63, %v582_v60  ;;  %v6839_v57 = vrot.slane %v5369_v42, 4 }
 0x164   : > { %v619_v3 = vpop.permute.xlu0 %618  ;;  %v549_v11 = vsel %vm542_vm8, %v5337_v28, %v548_v29  ;;  %v661_v9 = vpop.permute.xlu1 %660  ;;  %v591_v21 = vsel %vm6838_vm3, %v5358_v37, %v590_v10  ;;  %vm6842_vm8 = vcmask 211968   ;;  %vm6847_vm3 = vcmask 56320  }
 0x165   : > { %v624_v56 = vrot.slane %v619_v3, 4  ;;  %2174 = vmatpush1.bf16.msra.mxu1 %v4412_v5  ;;  %v4420_v47 = vcombine.low %v507_v4, %v549_v11  ;;  %v4421_v0 = vcombine.high %v507_v4, %v549_v11  ;;  %v666_v33 = vrot.slane %v661_v9, 4 }
 0x167   : > { %v632_v6 = vsel %vm288_vm1, %v6839_v57, %v624_v56  ;;  %2175 = vmatprep.subr.bf16.mxu1 %v4421_v0  ;;  %v674_v41 = vsel %vm288_vm1, %v665_v1, %v666_v33 }
 0x168   : > { %v703_v8 = vpop.permute.xlu0 %702  ;;  %v633_v28 = vsel %vm6840_vm6, %v5369_v42, %v632_v6  ;;  %v745_v20 = vpop.permute.xlu1 %744  ;;  %v675_v37 = vsel %vm6841_vm7, %v5390_v40, %v674_v41  ;;  %vm6848_vm6 = vcmask 48128   ;;  %vm6849_vm7 = vcmask 457728  }
 0x169   : > { %v708_v2 = vrot.slane %v703_v8, 4  ;;  %2176 = vmatpush1.bf16.msra.mxu1 %v4420_v47  ;;  %v4428_v53 = vcombine.low %v591_v21, %v633_v28  ;;  %v4429_v22 = vcombine.high %v591_v21, %v633_v28  ;;  %v750_v59 = vrot.slane %v745_v20, 4 }
 0x16b   : > { %v716_v15 = vsel %vm288_vm1, %v707_v52, %v708_v2  ;;  %2177 = vmatprep.subr.bf16.mxu1 %v4429_v22  ;;  %v758_v1 = vsel %vm288_vm1, %v749_v34, %v750_v59 }
 0x16c   : > { %v787_v54 = vpop.permute.xlu0 %786  ;;  %v717_v42 = vsel %vm6842_vm8, %v5399_v48, %v716_v15  ;;  %v829_v32 = vpop.permute.xlu1 %828  ;;  %v759_v40 = vsel %vm6843_vm9, %v5419_v12, %v758_v1  ;;  %vm6850_vm8 = vcmask 449536   ;;  %vm6851_vm9 = vcmask 441344  }
 0x16d   : > { %v792_v61 = vrot.slane %v787_v54, 4  ;;  %2178 = vmatpush1.bf16.msra.mxu1 %v4428_v53  ;;  %v4436_v19 = vcombine.low %v675_v37, %v717_v42  ;;  %v4437_v25 = vcombine.high %v675_v37, %v717_v42  ;;  %v834_v31 = vrot.slane %v829_v32, 4 }
 0x16f   : > { %v800_v52 = vsel %vm288_vm1, %v791_v62, %v792_v61  ;;  %2179 = vmatprep.subr.bf16.mxu1 %v4437_v25  ;;  %v842_v34 = vsel %vm288_vm1, %v833_v45, %v834_v31  ;;  %v6857_v31 = vrot.slane %v5563_v24, 4 }
 0x170   : > { %v871_v5 = vpop.permute.xlu0 %870  ;;  %v801_v48 = vsel %vm6844_vm10, %v5426_v58, %v800_v52  ;;  %v913_v38 = vpop.permute.xlu1 %912  ;;  %v843_v12 = vsel %vm6845_vm11, %v5443_v16, %v842_v34  ;;  %vm6854_vm10 = vcmask 375808   ;;  %vm6855_vm11 = vcmask 367616  }
 0x171   : > { %v876_v60 = vrot.slane %v871_v5, 4  ;;  %2180 = vmatpush1.bf16.msra.mxu1 %v4436_v19  ;;  %v4444_v4 = vcombine.low %v759_v40, %v801_v48  ;;  %v4445_v29 = vcombine.high %v759_v40, %v801_v48  ;;  %v918_v63 = vrot.slane %v913_v38, 4 }
 0x172   : > { %v6856_v19 = vrot.slane %v5546_v7, 4 }
 0x173   : > { %v884_v62 = vsel %vm288_vm1, %v875_v35, %v876_v60  ;;  %2181 = vmatprep.subr.bf16.mxu1 %v4445_v29  ;;  %v926_v45 = vsel %vm288_vm1, %v917_v51, %v918_v63 }
 0x174   : > { %v955_v10 = vpop.permute.xlu0 %954  ;;  %v885_v58 = vsel %vm6846_vm12, %v5450_v17, %v884_v62  ;;  %v997_v3 = vpop.permute.xlu1 %996  ;;  %v927_v16 = vsel %vm6847_vm3, %v5467_v44, %v926_v45  ;;  %vm6858_vm12 = vcmask 359424  }
 0x175   : > { %v960_v11 = vrot.slane %v955_v10, 4  ;;  %2182 = vmatpush1.bf16.msra.mxu1 %v4444_v4  ;;  %v4452_v9 = vcombine.low %v843_v12, %v885_v58  ;;  %v4453_v56 = vcombine.high %v843_v12, %v885_v58  ;;  %v1002_v47 = vrot.slane %v997_v3, 4 }
 0x176   : > { %v6859_v4 = vrot.slane %v5570_v50, 4 }
 0x177   : > { %v968_v35 = vsel %vm288_vm1, %v959_v26, %v960_v11  ;;  %2183 = vmatprep.subr.bf16.mxu1 %v4453_v56  ;;  %v1010_v51 = vsel %vm288_vm1, %v1001_v36, %v1002_v47  ;;  %v5753_v11 = vld [vmem:[%s6685_s4] sm:$0xff] }
 0x178   : > { %v1039_v0 = vpop.permute.xlu0 %1038  ;;  %v969_v17 = vsel %vm6848_vm6, %v5474_v18, %v968_v35  ;;  %v1081_v33 = vpop.permute.xlu1 %1080  ;;  %v1011_v44 = vsel %vm6849_vm7, %v5491_v14, %v1010_v51 }
 0x179   : > { %v1044_v21 = vrot.slane %v1039_v0, 4  ;;  %2184 = vmatpush1.bf16.msra.mxu1 %v4452_v9  ;;  %v4460_v57 = vcombine.low %v927_v16, %v969_v17  ;;  %v4461_v6 = vcombine.high %v927_v16, %v969_v17  ;;  %v1086_v41 = vrot.slane %v1081_v33, 4 }
 0x17b   : > { %v1052_v26 = vsel %vm288_vm1, %v1043_v46, %v1044_v21  ;;  %2185 = vmatprep.subr.bf16.mxu1 %v4461_v6  ;;  %v1094_v36 = vsel %vm288_vm1, %v1085_v55, %v1086_v41  ;;  %v6852_v46 = vrot.slane %v5522_v27, 4  ;;  %v6853_v55 = vrot.slane %v5539_v30, 4 }
 0x17c   : > { %v1123_v8 = vpop.permute.xlu0 %1122  ;;  %v1053_v18 = vsel %vm6850_vm8, %v5498_v43, %v1052_v26  ;;  %v1165_v28 = vpop.permute.xlu1 %1164  ;;  %v1095_v14 = vsel %vm6851_vm9, %v5515_v23, %v1094_v36 }
 0x17d   : > { %v1128_v20 = vrot.slane %v1123_v8, 4  ;;  %2186 = vmatpush1.bf16.msra.mxu1 %v4460_v57  ;;  %v4468_v2 = vcombine.low %v1011_v44, %v1053_v18  ;;  %v4469_v53 = vcombine.high %v1011_v44, %v1053_v18  ;;  %v1170_v22 = vrot.slane %v1165_v28, 4 }
 0x17f   : > { %v1136_v59 = vsel %vm288_vm1, %v6852_v46, %v1128_v20  ;;  %2187 = vmatprep.subr.bf16.mxu1 %v4469_v53  ;;  %v1178_v37 = vsel %vm288_vm1, %v6853_v55, %v1170_v22 }
 0x180   : > { %v1207_v15 = vpop.permute.xlu0 %1206  ;;  %v1137_v43 = vsel %vm6854_vm10, %v5522_v27, %v1136_v59  ;;  %v1249_v1 = vpop.permute.xlu1 %1248  ;;  %v1179_v23 = vsel %vm6855_vm11, %v5539_v30, %v1178_v37  ;;  %vm2346_vm10 = vcmask 908288   ;;  %vm2388_vm11 = vcmask 900096  }
 0x181   : > { %v1212_v54 = vrot.slane %v1207_v15, 4  ;;  %2188 = vmatpush1.bf16.msra.mxu1 %v4468_v2  ;;  %v4476_v42 = vcombine.low %v1095_v14, %v1137_v43  ;;  %v4477_v32 = vcombine.high %v1095_v14, %v1137_v43  ;;  %v1254_v61 = vrot.slane %v1249_v1, 4 }
 0x183   : > { %v1220_v25 = vsel %vm288_vm1, %v6856_v19, %v1212_v54  ;;  %2189 = vmatprep.subr.bf16.mxu1 %v4477_v32  ;;  %v1262_v40 = vsel %vm288_vm1, %v6857_v31, %v1254_v61 }
 0x184   : > { %v1291_v52 = vpop.permute.xlu0 %1290  ;;  %v1221_v27 = vsel %vm6858_vm12, %v5546_v7, %v1220_v25  ;;  %v1333_v34 = vpop.permute.xlu1 %1332  ;;  %v1263_v30 = vsel %vm1256_vm13, %v5563_v24, %v1262_v40  ;;  %vm2430_vm12 = vcmask 891904  }
 0x185   : > { %v1296_v5 = vrot.slane %v1291_v52, 4  ;;  %2190 = vmatpush1.bf16.msra.mxu1 %v4476_v42  ;;  %v4484_v48 = vcombine.low %v1179_v23, %v1221_v27  ;;  %v4485_v38 = vcombine.high %v1179_v23, %v1221_v27  ;;  %v1338_v60 = vrot.slane %v1333_v34, 4 }
 0x187   : > { %v1304_v29 = vsel %vm288_vm1, %v6859_v4, %v1296_v5  ;;  %2191 = vmatprep.subr.bf16.mxu1 %v4485_v38  ;;  %v1346_v63 = vsel %vm288_vm1, %v1337_v39, %v1338_v60  ;;  %v2236_v39 = vlaneseq }
 0x188   : > { %v1305_v7 = vsel %vm1298_vm14, %v5570_v50, %v1304_v29  ;;  %v1347_v12 = vsel %vm1340_vm15, %v5587_v13, %v1346_v63 }
 0x189   : > { %2192 = vmatpush1.bf16.msra.mxu1 %v4484_v48  ;;  %v4492_v62 = vcombine.low %v1263_v30, %v1305_v7  ;;  %v4493_v45 = vcombine.high %v1263_v30, %v1305_v7  ;;  %v4501_v10 = vcombine.high %v1347_v12, %v1347_v12  ;;  %v4500_v24 = vcombine.low %v1347_v12, %v1347_v12 }
 0x18a   : > { %v5745_v3 = vshrl.u32 %v2236_v39, 7 }
 0x18b   : > { %2193 = vmatprep.subr.bf16.mxu1 %v4493_v45  ;;  %v2041_v58 = vsel %vm288_vm1, %v4500_v24, 0 }
 0x18c   : > { %v2238_v13 = vsub.s32 0, %v5745_v3  ;;  %v2242_v9 = vsub.s32 1, %v5745_v3  ;;  %v2246_v8 = vsub.s32 2, %v5745_v3  ;;  %v2254_v18 = vsub.s32 4, %v5745_v3 }
 0x18d   : > { %2194 = vmatpush1.bf16.msra.mxu1 %v4492_v62  ;;  %v2250_v28 = vsub.s32 3, %v5745_v3  ;;  %v2258_v20 = vsub.s32 5, %v5745_v3  ;;  %v2262_v7 = vsub.s32 6, %v5745_v3  ;;  %v2266_v12 = vsub.s32 7, %v5745_v3 }
 0x18e   : > { %4508 = vmatprep.subr.msk.bf16.mxu1 %vm288_vm1, %v4501_v10  ;;  %v2239_v35 = vrot.slane %v5753_v11, %v2238_v13  ;;  %v2243_v17 = vrot.slane %v5753_v11, %v2242_v9  ;;  %v2247_v14 = vrot.slane %v5753_v11, %v2246_v8  ;;  %v2255_v59 = vrot.slane %v5753_v11, %v2254_v18 }
 0x18f   : > { %v2251_v43 = vrot.slane %v5753_v11, %v2250_v28  ;;  %v2259_v54 = vrot.slane %v5753_v11, %v2258_v20  ;;  %v2263_v24 = vrot.slane %v5753_v11, %v2262_v7  ;;  %v2267_v9 = vrot.slane %v5753_v11, %v2266_v12  ;;  %v5884_v11 = vld [vmem:[%s6683_s2] sm:$0xff] }
 0x191   : > { %2196 = vmatpush1.bf16.msra.mxu1 %v2041_v58 }
 0x194   : > { %2202 = vmatmul.mubr.bf16.vlgmr.msra.gmra.mrb[4].mxu1 %v5253_v49 }
 0x195   : > { %v5747_v50 = vpop.permute.xlu0 %1468 }
 0x1c6   : > { %v2080_v56 = vpop.f32.mrb[0].mxu0 }
 0x1c7   : > { %v2081_v47 = vadd.f32 %v2080_v56, %v5747_v50  ;;  %v2082_v16 = vpop.f32.mrb[1].mxu0 }
 0x1c8   : > { %v2083_v49 = vadd.f32 %v2082_v16, %v5747_v50  ;;  %v2084_v51 = vpop.f32.mrb[2].mxu0 }
 0x1c9   : > { %vm2210_vm13 = vcmp.gt.f32.partialorder %v2081_v47, 0.0  ;;  %v2218_v0 = vmul.f32 0.1, %v2081_v47  ;;  %v2085_v33 = vpop.f32.mrb[3].mxu0  ;;  %v5888_v51 = vcombine.high %v5884_v11, %v5884_v11 }
 0x1ca   : > { %vm2211_vm14 = vcmp.gt.f32.partialorder %v2083_v49, 0.0  ;;  %v2219_v21 = vmul.f32 0.1, %v2083_v49 }
 0x1cb   : > { %v2226_v57 = vsel %vm2210_vm13, %v2081_v47, %v2218_v0  ;;  %4629 = vmatprep.mubr.msk.bf16.mxu0 %vm2017_vm0, %v5888_v51  ;;  %4631 = vmatprep.mubr.msk.bf16.mxu1 %vm2017_vm0, %v5888_v51  ;;  %vm2472_vm13 = vcmask 826368  }
 0x1cc   : > { %v2227_v6 = vsel %vm2211_vm14, %v2083_v49, %v2219_v21  ;;  %v2276_v41 = vmul.f32 %v2239_v35, %v2226_v57  ;;  %vm2514_vm14 = vcmask 818176  }
 0x1cd   : > { %v2277_v44 = vmul.f32 %v2243_v17, %v2227_v6 }
 0x1cf   : > { %v5760_v26 = vpack.c.bf16 %v2277_v44, %v2276_v41 }
 0x1d1   : > { %2316 = vst [vmem:[#allocation2 + $0x4] sm:$0xff] %v5760_v26 }
 0x1d8   : > { %v5763_v36 = vld [vmem:[#allocation2] sm:$0xff] }
 0x1d9   : > { %2330 = vrot.lane.b32.xlu1 %v5763_v36, %s4746_s16 }
 0x22f   : > { %v2121_v2 = vpop.f32.mrb[0].mxu1  ;;  %v2162_v53 = vpop.f32.mrb[4].mxu0 }
 0x230   : > { %v2122_v22 = vadd.f32 %v2121_v2, %v5747_v50  ;;  %v2163_v46 = vadd.f32 %v2162_v53, %v5747_v50  ;;  %v2123_v55 = vpop.f32.mrb[1].mxu1  ;;  %v2164_v37 = vpop.f32.mrb[5].mxu0 }
 0x231   : > { %v2124_v15 = vadd.f32 %v2123_v55, %v5747_v50  ;;  %v2165_v1 = vadd.f32 %v2164_v37, %v5747_v50  ;;  %v2125_v42 = vpop.f32.mrb[2].mxu1  ;;  %v2166_v32 = vpop.f32.mrb[6].mxu0 }
 0x232   : > { %vm2212_vm15 = vcmp.gt.f32.partialorder %v2122_v22, 0.0  ;;  %v2220_v61 = vmul.f32 0.1, %v2122_v22  ;;  %vm2214_vm3 = vcmp.gt.f32.partialorder %v2163_v46, 0.0  ;;  %v2222_v23 = vmul.f32 0.1, %v2163_v46 }
 0x233   : > { %vm2213_vm6 = vcmp.gt.f32.partialorder %v2124_v15, 0.0  ;;  %v2221_v19 = vmul.f32 0.1, %v2124_v15  ;;  %vm2215_vm7 = vcmp.gt.f32.partialorder %v2165_v1, 0.0  ;;  %v2223_v25 = vmul.f32 0.1, %v2165_v1 }
 0x234   : > { %v2228_v31 = vsel %vm2212_vm15, %v2122_v22, %v2220_v61  ;;  %v2230_v40 = vsel %vm2214_vm3, %v2163_v46, %v2222_v23  ;;  %v2126_v52 = vpop.f32.mrb[3].mxu1  ;;  %v2167_v27 = vpop.f32.mrb[7].mxu0  ;;  %vm2556_vm15 = vcmask 809984   ;;  %vm2598_vm3 = vcmask 744448  }
 0x235   : > { %v2278_v34 = vmul.f32 %v2247_v14, %v2228_v31  ;;  %v2280_v5 = vmul.f32 %v2255_v59, %v2230_v40  ;;  %v2229_v48 = vsel %vm2213_vm6, %v2124_v15, %v2221_v19  ;;  %v2231_v38 = vsel %vm2215_vm7, %v2165_v1, %v2223_v25 }
 0x236   : > { %v2279_v60 = vmul.f32 %v2251_v43, %v2229_v48  ;;  %v2281_v30 = vmul.f32 %v2259_v54, %v2231_v38  ;;  %vm6779_vm6 = vcmask 736256   ;;  %vm6763_vm7 = vcmask 728064  }
 0x238   : > { %v5779_v4 = vpack.c.bf16 %v2279_v60, %v2278_v34  ;;  %v5781_v29 = vpack.c.bf16 %v2281_v30, %v2280_v5 }
 0x23a   : > { %2317 = vst [vmem:[#allocation2 + $0xc] sm:$0xff] %v5779_v4  ;;  %2318 = vst [vmem:[#allocation2 + $0x14] sm:$0xff] %v5781_v29 }
 0x241   : > { %v2363_v63 = vld [vmem:[#allocation2 + $0x8] sm:$0xff]  ;;  %v2322_v0 = vld [vmem:[#allocation2 + $0x10] sm:$0xff] }
 0x242   : > { %2374 = vrot.lane.b32.xlu0 %v2363_v63, %s4747_s17  ;;  %2332 = vrot.lane.b32.xlu1 %v2363_v63, %s4746_s16 }
 0x246   : > { %2414 = vrot.lane.b32.xlu0 %v5763_v36, %s4748_s19  ;;  %2372 = vrot.lane.b32.xlu1 %v5763_v36, %s4747_s17 }
 0x24a   : > { %2458 = vrot.lane.b32.xlu0 %v2363_v63, %s4749_s20  ;;  %2416 = vrot.lane.b32.xlu1 %v2363_v63, %s4748_s19 }
 0x24b   : > { %v2331_v17 = vpop.permute.xlu1 %2330 }
 0x24c   : > { %v2340_v6 = vrot.slane %v2331_v17, 4 }
 0x24e   : > { %2498 = vrot.lane.b32.xlu0 %v5763_v36, %s4750_s23  ;;  %2456 = vrot.lane.b32.xlu1 %v5763_v36, %s4749_s20 }
 0x252   : > { %2542 = vrot.lane.b32.xlu0 %v2363_v63, %s4751_s25  ;;  %2500 = vrot.lane.b32.xlu1 %v2363_v63, %s4750_s23 }
 0x256   : > { %2582 = vrot.lane.b32.xlu0 %v5763_v36, %s4752_s18  ;;  %2540 = vrot.lane.b32.xlu1 %v5763_v36, %s4751_s25 }
 0x25a   : > { %2626 = vrot.lane.b32.xlu0 %v2363_v63, %s4753_s24  ;;  %2584 = vrot.lane.b32.xlu1 %v2363_v63, %s4752_s18 }
 0x25e   : > { %2666 = vrot.lane.b32.xlu0 %v5763_v36, %s4754_s8  ;;  %2624 = vrot.lane.b32.xlu1 %v5763_v36, %s4753_s24 }
 0x262   : > { %2710 = vrot.lane.b32.xlu0 %v2363_v63, %s4755_s9  ;;  %2668 = vrot.lane.b32.xlu1 %v2363_v63, %s4754_s8 }
 0x266   : > { %2750 = vrot.lane.b32.xlu0 %v5763_v36, %s4756_s10  ;;  %2708 = vrot.lane.b32.xlu1 %v5763_v36, %s4755_s9 }
 0x267   : > { %v2203_v62 = vpop.f32.mrb[4].mxu1 }
 0x268   : > { %v2204_v45 = vadd.f32 %v2203_v62, %v5747_v50  ;;  %v2205_v10 = vpop.f32.mrb[5].mxu1 }
 0x269   : > { %v2206_v58 = vadd.f32 %v2205_v10, %v5747_v50  ;;  %v2207_v39 = vpop.f32.mrb[6].mxu1 }
 0x26a   : > { %vm2216_vm8 = vcmp.gt.f32.partialorder %v2204_v45, 0.0  ;;  %v2224_v13 = vmul.f32 0.1, %v2204_v45  ;;  %2794 = vrot.lane.b32.xlu0 %v2363_v63, %s4757_s13  ;;  %2752 = vrot.lane.b32.xlu1 %v2363_v63, %s4756_s10  ;;  %v2208_v56 = vpop.f32.mrb[7].mxu1 }
 0x26b   : > { %vm2217_vm9 = vcmp.gt.f32.partialorder %v2206_v58, 0.0  ;;  %v2225_v3 = vmul.f32 0.1, %v2206_v58 }
 0x26c   : > { %v2232_v47 = vsel %vm2216_vm8, %v2204_v45, %v2224_v13  ;;  %vm6762_vm8 = vcmask 89088  }
 0x26d   : > { %v2282_v16 = vmul.f32 %v2263_v24, %v2232_v47  ;;  %v2233_v49 = vsel %vm2217_vm9, %v2206_v58, %v2225_v3  ;;  %vm2766_vm9 = vcmask 80896  }
 0x26e   : > { %v2283_v35 = vmul.f32 %v2267_v9, %v2233_v49  ;;  %2834 = vrot.lane.b32.xlu0 %v5763_v36, %s6754_s14  ;;  %2792 = vrot.lane.b32.xlu1 %v5763_v36, %s4757_s13 }
 0x270   : > { %v5827_v50 = vpack.c.bf16 %v2283_v35, %v2282_v16 }
 0x272   : > { %2319 = vst [vmem:[#allocation2 + $0x1c] sm:$0xff] %v5827_v50  ;;  %2886 = vrot.lane.b32.xlu0 %v5779_v4, %s6742_s28  ;;  %2836 = vrot.lane.b32.xlu1 %v2363_v63, %s6754_s14 }
 0x276   : > { %2925 = vrot.lane.b32.xlu0 %v5760_v26, %s6744_s26  ;;  %2884 = vrot.lane.b32.xlu1 %v5760_v26, %s6742_s28  ;;  %s6758_s28 = smov 38  }
 0x27a   : > { %2969 = vrot.lane.b32.xlu0 %v5779_v4, %s6746_s29  ;;  %2927 = vrot.lane.b32.xlu1 %v5779_v4, %s6744_s26  ;;  %s6752_s26 = smov 37  }
 0x27e   : > { %3008 = vrot.lane.b32.xlu0 %v5760_v26, %s6756_s30  ;;  %2967 = vrot.lane.b32.xlu1 %v5760_v26, %s6746_s29  ;;  %s6760_s29 = smov 29  }
 0x282   : > { %3051 = vrot.lane.b32.xlu0 %v5779_v4, %s6748_s15  ;;  %3010 = vrot.lane.b32.xlu1 %v5779_v4, %s6756_s30 }
 0x286   : > { %3091 = vrot.lane.b32.xlu0 %v5760_v26, %s6758_s28  ;;  %3049 = vrot.lane.b32.xlu1 %v5760_v26, %s6748_s15  ;;  %s4764_s15 = smov 19  }
 0x28a   : > { %3135 = vrot.lane.b32.xlu0 %v5779_v4, %s6752_s26  ;;  %3093 = vrot.lane.b32.xlu1 %v5779_v4, %s6758_s28 }
 0x28e   : > { %3175 = vrot.lane.b32.xlu0 %v5760_v26, %s6760_s29  ;;  %3133 = vrot.lane.b32.xlu1 %v5760_v26, %s6752_s26  ;;  %s6861_s26 = smov 127  }
 0x292   : > { %3219 = vrot.lane.b32.xlu0 %v5779_v4, %s6750_s11  ;;  %3177 = vrot.lane.b32.xlu1 %v5779_v4, %s6760_s29 }
 0x296   : > { %3258 = vrot.lane.b32.xlu0 %v5760_v26, %s4728_s12  ;;  %3217 = vrot.lane.b32.xlu1 %v5760_v26, %s6750_s11  ;;  %s6860_s11 = smov 119  }
 0x29a   : > { %3301 = vrot.lane.b32.xlu0 %v5779_v4, %s4764_s15  ;;  %3260 = vrot.lane.b32.xlu1 %v5779_v4, %s4728_s12 }
 0x29e   : > { %3341 = vrot.lane.b32.xlu0 %v5760_v26, %s6798_s27  ;;  %3299 = vrot.lane.b32.xlu1 %v5760_v26, %s4764_s15 }
 0x2a2   : > { %3384 = vrot.lane.b32.xlu0 %v5779_v4, %s6799_s7  ;;  %3343 = vrot.lane.b32.xlu1 %v5779_v4, %s6798_s27 }
 0x2a6   : > { %2334 = vrot.lane.b32.xlu0 %v2322_v0, %s4746_s16  ;;  %3382 = vrot.lane.b32.xlu1 %v5760_v26, %s6799_s7 }
 0x2aa   : > { %2418 = vrot.lane.b32.xlu0 %v2322_v0, %s4748_s19  ;;  %2376 = vrot.lane.b32.xlu1 %v2322_v0, %s4747_s17 }
 0x2ae   : > { %2502 = vrot.lane.b32.xlu0 %v2322_v0, %s4750_s23  ;;  %2460 = vrot.lane.b32.xlu1 %v2322_v0, %s4749_s20 }
 0x2b2   : > { %2586 = vrot.lane.b32.xlu0 %v2322_v0, %s4752_s18  ;;  %2544 = vrot.lane.b32.xlu1 %v2322_v0, %s4751_s25 }
 0x2b4   : > { %v5903_v33 = vpop.permute.xlu0 %2374  ;;  %v5905_v21 = vpop.permute.xlu1 %2332 }
 0x2b5   : > { %v2341_v57 = vrot.slane %v5905_v21, 4  ;;  %v2383_v36 = vrot.slane %v5903_v33, 4 }
 0x2b6   : > { %2670 = vrot.lane.b32.xlu0 %v2322_v0, %s4754_s8  ;;  %2628 = vrot.lane.b32.xlu1 %v2322_v0, %s4753_s24 }
 0x2b7   : > { %v2345_v8 = vsel %vm288_vm1, %v2340_v6, %v2341_v57 }
 0x2b8   : > { %v2415_v41 = vpop.permute.xlu0 %2414  ;;  %v2373_v44 = vpop.permute.xlu1 %2372  ;;  %v2347_v20 = vsel %vm2346_vm10, %v2331_v17, %v2345_v8 }
 0x2b9   : > { %v2382_v18 = vrot.slane %v2373_v44, 4  ;;  %v2424_v55 = vrot.slane %v2415_v41, 4 }
 0x2ba   : > { %2754 = vrot.lane.b32.xlu0 %v2322_v0, %s4756_s10  ;;  %2712 = vrot.lane.b32.xlu1 %v2322_v0, %s4755_s9 }
 0x2bb   : > { %v2387_v28 = vsel %vm288_vm1, %v2382_v18, %v2383_v36 }
 0x2bc   : > { %v2389_v2 = vsel %vm2388_vm11, %v2373_v44, %v2387_v28  ;;  %v5921_v53 = vpop.permute.xlu0 %2458  ;;  %v5923_v22 = vpop.permute.xlu1 %2416 }
 0x2bd   : > { %v4516_v14 = vcombine.low %v2347_v20, %v2389_v2  ;;  %v2425_v46 = vrot.slane %v5923_v22, 4  ;;  %v4517_v59 = vcombine.high %v2347_v20, %v2389_v2  ;;  %v2467_v43 = vrot.slane %v5921_v53, 4  ;;  %v5998_v20 = vld [vmem:[#allocation2 + $0x18] sm:$0xff] }
 0x2be   : > { %2838 = vrot.lane.b32.xlu0 %v2322_v0, %s6754_s14  ;;  %2796 = vrot.lane.b32.xlu1 %v2322_v0, %s4757_s13  ;;  %s6862_s14 = smov 118  }
 0x2bf   : > { %4101 = vmatprep.subr.bf16.mxu0 %v4517_v59  ;;  %v2429_v1 = vsel %vm288_vm1, %v2424_v55, %v2425_v46 }
 0x2c0   : > { %v2499_v37 = vpop.permute.xlu0 %2498  ;;  %4102 = vmatpush1.bf16.msra.mxu0 %v4516_v14  ;;  %v2457_v15 = vpop.permute.xlu1 %2456  ;;  %v2431_v32 = vsel %vm2430_vm12, %v2415_v41, %v2429_v1 }
 0x2c1   : > { %v2466_v54 = vrot.slane %v2457_v15, 4  ;;  %v2508_v52 = vrot.slane %v2499_v37, 4 }
 0x2c2   : > { %2929 = vrot.lane.b32.xlu0 %v5781_v29, %s6860_s11  ;;  %2888 = vrot.lane.b32.xlu1 %v5781_v29, %s6861_s26 }
 0x2c3   : > { %v2471_v42 = vsel %vm288_vm1, %v2466_v54, %v2467_v43  ;;  %v2324_v54 = vld [vmem:[#allocation2 + $0x20] sm:$0xf] }
 0x2c4   : > { %v2473_v61 = vsel %vm2472_vm13, %v2457_v15, %v2471_v42  ;;  %v5941_v23 = vpop.permute.xlu0 %2542  ;;  %v5943_v19 = vpop.permute.xlu1 %2500 }
 0x2c5   : > { %v4524_v25 = vcombine.low %v2431_v32, %v2473_v61  ;;  %v2509_v31 = vrot.slane %v5943_v19, 4  ;;  %v4525_v40 = vcombine.high %v2431_v32, %v2473_v61  ;;  %v2551_v5 = vrot.slane %v5941_v23, 4 }
 0x2c6   : > { %3012 = vrot.lane.b32.xlu0 %v5781_v29, %s6756_s30  ;;  %2971 = vrot.lane.b32.xlu1 %v5781_v29, %s6862_s14  ;;  %s6863_s30 = smov 39  }
 0x2c7   : > { %4103 = vmatprep.subr.bf16.mxu0 %v4525_v40  ;;  %v2513_v48 = vsel %vm288_vm1, %v2508_v52, %v2509_v31 }
 0x2c8   : > { %v2583_v27 = vpop.permute.xlu0 %2582  ;;  %4104 = vmatpush1.bf16.msra.mxu0 %v4524_v25  ;;  %v2541_v34 = vpop.permute.xlu1 %2540  ;;  %v2515_v30 = vsel %vm2514_vm14, %v2499_v37, %v2513_v48 }
 0x2c9   : > { %v2550_v38 = vrot.slane %v2541_v34, 4  ;;  %v2592_v10 = vrot.slane %v2583_v27, 4 }
 0x2ca   : > { %3095 = vrot.lane.b32.xlu0 %v5781_v29, %s6758_s28  ;;  %3053 = vrot.lane.b32.xlu1 %v5781_v29, %s6863_s30  ;;  %s6864_s28 = smov 37  }
 0x2cb   : > { %v2555_v60 = vsel %vm288_vm1, %v2550_v38, %v2551_v5 }
 0x2cc   : > { %v2557_v4 = vsel %vm2556_vm15, %v2541_v34, %v2555_v60  ;;  %v5963_v63 = vpop.permute.xlu0 %2626  ;;  %v5965_v7 = vpop.permute.xlu1 %2584 }
 0x2cd   : > { %v4532_v12 = vcombine.low %v2515_v30, %v2557_v4  ;;  %v2593_v62 = vrot.slane %v5965_v7, 4  ;;  %v4533_v45 = vcombine.high %v2515_v30, %v2557_v4  ;;  %v2635_v39 = vrot.slane %v5963_v63, 4 }
 0x2ce   : > { %3179 = vrot.lane.b32.xlu0 %v5781_v29, %s6760_s29  ;;  %3137 = vrot.lane.b32.xlu1 %v5781_v29, %s6864_s28  ;;  %s6865_s29 = smov 28  }
 0x2cf   : > { %4105 = vmatprep.subr.bf16.mxu0 %v4533_v45  ;;  %v2597_v13 = vsel %vm288_vm1, %v2592_v10, %v2593_v62  ;;  %v2408_v10 = vld [vmem:[#allocation2 + $0x20] sm:$0xf] }
 0x2d0   : > { %v2667_v24 = vpop.permute.xlu0 %2666  ;;  %4106 = vmatpush1.bf16.msra.mxu0 %v4532_v12  ;;  %v2625_v58 = vpop.permute.xlu1 %2624  ;;  %v2599_v3 = vsel %vm2598_vm3, %v2583_v27, %v2597_v13  ;;  %v2366_v27 = vld [vmem:[#allocation2 + $0x20] sm:$0xf] }
 0x2d1   : > { %v2634_v9 = vrot.slane %v2625_v58, 4  ;;  %v2676_v6 = vrot.slane %v2667_v24, 4 }
 0x2d2   : > { %3262 = vrot.lane.b32.xlu0 %v5781_v29, %s4728_s12  ;;  %3221 = vrot.lane.b32.xlu1 %v5781_v29, %s6865_s29 }
 0x2d3   : > { %v2639_v56 = vsel %vm288_vm1, %v2634_v9, %v2635_v39 }
 0x2d4   : > { %v2641_v47 = vsel %vm6779_vm6, %v2625_v58, %v2639_v56  ;;  %v5985_v16 = vpop.permute.xlu0 %2710  ;;  %v5987_v49 = vpop.permute.xlu1 %2668 }
 0x2d5   : > { %v4540_v35 = vcombine.low %v2599_v3, %v2641_v47  ;;  %v2677_v0 = vrot.slane %v5987_v49, 4  ;;  %v4541_v17 = vcombine.high %v2599_v3, %v2641_v47  ;;  %v2719_v8 = vrot.slane %v5985_v16, 4  ;;  %v2450_v47 = vld [vmem:[#allocation2 + $0x20] sm:$0xf] }
 0x2d6   : > { %3345 = vrot.lane.b32.xlu0 %v5781_v29, %s6798_s27  ;;  %3303 = vrot.lane.b32.xlu1 %v5781_v29, %s4764_s15 }
 0x2d7   : > { %4107 = vmatprep.subr.bf16.mxu0 %v4541_v17  ;;  %v2681_v18 = vsel %vm288_vm1, %v2676_v6, %v2677_v0 }
 0x2d8   : > { %v2751_v41 = vpop.permute.xlu0 %2750  ;;  %4108 = vmatpush1.bf16.msra.mxu0 %v4540_v35  ;;  %v2709_v44 = vpop.permute.xlu1 %2708  ;;  %v2683_v14 = vsel %vm6763_vm7, %v2667_v24, %v2681_v18  ;;  %vm6764_vm7 = vcmask 7168  }
 0x2d9   : > { %v2718_v28 = vrot.slane %v2709_v44, 4 }
 0x2da   : > { %2336 = vrot.lane.b32.xlu0 %v5998_v20, %s4746_s16  ;;  %3386 = vrot.lane.b32.xlu1 %v5781_v29, %s6799_s7  ;;  %v2760_v29 = vrot.slane %v2751_v41, 4 }
 0x2db   : > { %v2723_v2 = vsel %vm288_vm1, %v2718_v28, %v2719_v8 }
 0x2dc   : > { %v2725_v59 = vsel %vm6762_vm8, %v2709_v44, %v2723_v2  ;;  %v6009_v55 = vpop.permute.xlu0 %2794  ;;  %v6011_v37 = vpop.permute.xlu1 %2752  ;;  %vm2808_vm8 = vcmask 72704   ;;  %v2492_v2 = vld [vmem:[#allocation2 + $0x20] sm:$0xf] }
 0x2dd   : > { %v4548_v15 = vcombine.low %v2683_v14, %v2725_v59  ;;  %v2761_v1 = vrot.slane %v6011_v37, 4  ;;  %v4549_v42 = vcombine.high %v2683_v14, %v2725_v59  ;;  %v2803_v25 = vrot.slane %v6009_v55, 4 }
 0x2de   : > { %2378 = vrot.lane.b32.xlu0 %v5998_v20, %s4747_s17  ;;  %2338 = vrot.lane.b32.xlu1 %v2324_v54, %s4746_s16  ;;  %s6866_s16 = smov 1  }
 0x2df   : > { %4109 = vmatprep.subr.bf16.mxu0 %v4549_v42  ;;  %v2765_v40 = vsel %vm288_vm1, %v2760_v29, %v2761_v1 }
 0x2e0   : > { %v2835_v32 = vpop.permute.xlu0 %2834  ;;  %4110 = vmatpush1.bf16.msra.mxu0 %v4548_v15  ;;  %v2793_v61 = vpop.permute.xlu1 %2792  ;;  %v2767_v48 = vsel %vm2766_vm9, %v2751_v41, %v2765_v40 }
 0x2e1   : > { %v2802_v52 = vrot.slane %v2793_v61, 4  ;;  %v2844_v4 = vrot.slane %v2835_v32, 4 }
 0x2e2   : > { %2420 = vrot.lane.b32.xlu0 %v5998_v20, %s4748_s19  ;;  %2380 = vrot.lane.b32.xlu1 %v2366_v27, %s4747_s17  ;;  %s6870_s17 = smov 117  }
 0x2e3   : > { %v2807_v34 = vsel %vm288_vm1, %v2802_v52, %v2803_v25 }
 0x2e4   : > { %v2809_v38 = vsel %vm2808_vm8, %v2793_v61, %v2807_v34  ;;  %v6029_v60 = vpop.permute.xlu0 %2886  ;;  %v6031_v30 = vpop.permute.xlu1 %2836 }
 0x2e5   : > { %v4556_v12 = vcombine.low %v2767_v48, %v2809_v38  ;;  %v2845_v45 = vrot.slane %v6031_v30, 4  ;;  %v4557_v24 = vcombine.high %v2767_v48, %v2809_v38  ;;  %v2895_v6 = vrot.slane %v6029_v60, 4 }
 0x2e6   : > { %2462 = vrot.lane.b32.xlu0 %v5998_v20, %s4749_s20  ;;  %2422 = vrot.lane.b32.xlu1 %v2408_v10, %s4748_s19  ;;  %s6872_s19 = smov 38  }
 0x2e7   : > { %4111 = vmatprep.subr.bf16.mxu0 %v4557_v24  ;;  %v2849_v58 = vsel %vm288_vm1, %v2844_v4, %v2845_v45 }
 0x2e8   : > { %v2926_v13 = vpop.permute.xlu0 %2925  ;;  %4112 = vmatpush1.bf16.msra.mxu0 %v4556_v12  ;;  %v2885_v9 = vpop.permute.xlu1 %2884  ;;  %v2851_v56 = vsel %vm6764_vm7, %v2835_v32, %v2849_v58  ;;  %vm6765_vm7 = vcmask 973824   ;;  %v2534_v32 = vld [vmem:[#allocation2 + $0x20] sm:$0xf] }
 0x2e9   : > { %v2894_v3 = vrot.slane %v2885_v9, 4  ;;  %v4564_v35 = vcombine.low %v2851_v56, %v5760_v26  ;;  %v4565_v17 = vcombine.high %v2851_v56, %v5760_v26  ;;  %v2935_v18 = vrot.slane %v2926_v13, 4  ;;  %v2576_v12 = vld [vmem:[#allocation2 + $0x20] sm:$0xf] }
 0x2ea   : > { %2504 = vrot.lane.b32.xlu0 %v5998_v20, %s4750_s23  ;;  %2464 = vrot.lane.b32.xlu1 %v2450_v47, %s4749_s20 }
 0x2eb   : > { %4113 = vmatprep.subr.bf16.mxu0 %v4565_v17  ;;  %v2899_v28 = vsel %vm288_vm1, %v2894_v3, %v2895_v6  ;;  %v2618_v3 = vld [vmem:[#allocation2 + $0x20] sm:$0xf] }
 0x2ec   : > { %v6047_v41 = vpop.permute.xlu0 %2969  ;;  %4114 = vmatpush1.bf16.msra.mxu0 %v4564_v35  ;;  %v6049_v44 = vpop.permute.xlu1 %2927  ;;  %v2900_v59 = vsel %vm290_vm2, %v2885_v9, %v2899_v28 }
 0x2ed   : > { %v2936_v26 = vrot.slane %v6049_v44, 4  ;;  %v2978_v52 = vrot.slane %v6047_v41, 4 }
 0x2ee   : > { %2546 = vrot.lane.b32.xlu0 %v5998_v20, %s4751_s25  ;;  %2506 = vrot.lane.b32.xlu1 %v2492_v2, %s4750_s23 }
 0x2ef   : > { %v2940_v14 = vsel %vm288_vm1, %v2935_v18, %v2936_v26 }
 0x2f0   : > { %v3009_v15 = vpop.permute.xlu0 %3008  ;;  %v2968_v54 = vpop.permute.xlu1 %2967  ;;  %v2942_v42 = vsel %vm6765_vm7, %v2926_v13, %v2940_v14  ;;  %vm3065_vm7 = vcmask 318464  }
 0x2f1   : > { %v2977_v29 = vrot.slane %v2968_v54, 4  ;;  %v4572_v61 = vcombine.low %v2900_v59, %v2942_v42  ;;  %v4573_v40 = vcombine.high %v2900_v59, %v2942_v42  ;;  %v3018_v48 = vrot.slane %v3009_v15, 4 }
 0x2f2   : > { %2588 = vrot.lane.b32.xlu0 %v5998_v20, %s4752_s18  ;;  %2548 = vrot.lane.b32.xlu1 %v2534_v32, %s4751_s25 }
 0x2f3   : > { %4115 = vmatprep.subr.bf16.mxu0 %v4573_v40  ;;  %v2982_v38 = vsel %vm288_vm1, %v2977_v29, %v2978_v52 }
 0x2f4   : > { %v6067_v27 = vpop.permute.xlu0 %3051  ;;  %4116 = vmatpush1.bf16.msra.mxu0 %v4572_v61  ;;  %v6069_v34 = vpop.permute.xlu1 %3010  ;;  %v2983_v24 = vsel %vm6767_vm4, %v2968_v54, %v2982_v38  ;;  %vm6770_vm4 = vcmask 302080  }
 0x2f5   : > { %v3019_v4 = vrot.slane %v6069_v34, 4  ;;  %v6776_v17 = vrot.slane %v6067_v27, 4 }
 0x2f6   : > { %2630 = vrot.lane.b32.xlu0 %v5998_v20, %s4753_s24  ;;  %2590 = vrot.lane.b32.xlu1 %v2576_v12, %s4752_s18 }
 0x2f7   : > { %v3023_v10 = vsel %vm288_vm1, %v3018_v48, %v3019_v4  ;;  %v2702_v48 = vld [vmem:[#allocation2 + $0x20] sm:$0xf] }
 0x2f8   : > { %v3092_v58 = vpop.permute.xlu0 %3091  ;;  %v3050_v13 = vpop.permute.xlu1 %3049  ;;  %v3024_v9 = vsel %vm6766_vm5, %v3009_v15, %v3023_v10  ;;  %v2660_v15 = vld [vmem:[#allocation2 + $0x20] sm:$0xf]  ;;  %vm6768_vm5 = vcmask 310272  }
 0x2f9   : > { %v3059_v56 = vrot.slane %v3050_v13, 4  ;;  %v4580_v47 = vcombine.low %v2983_v24, %v3024_v9  ;;  %v4581_v35 = vcombine.high %v2983_v24, %v3024_v9  ;;  %v3101_v2 = vrot.slane %v3092_v58, 4 }
 0x2fa   : > { %2672 = vrot.lane.b32.xlu0 %v5998_v20, %s4754_s8  ;;  %2632 = vrot.lane.b32.xlu1 %v2618_v3, %s4753_s24  ;;  %v2744_v3 = vld [vmem:[#allocation2 + $0x20] sm:$0xf] }
 0x2fb   : > { %4117 = vmatprep.subr.bf16.mxu0 %v4581_v35  ;;  %v3064_v14 = vsel %vm288_vm1, %v3059_v56, %v6776_v17 }
 0x2fc   : > { %v6087_v18 = vpop.permute.xlu0 %3135  ;;  %4118 = vmatpush1.bf16.msra.mxu0 %v4580_v47  ;;  %v6089_v28 = vpop.permute.xlu1 %3093  ;;  %v3066_v42 = vsel %vm3065_vm7, %v3050_v13, %v3064_v14 }
 0x2fd   : > { %v3102_v59 = vrot.slane %v6089_v28, 4  ;;  %v6774_v10 = vrot.slane %v6087_v18, 4 }
 0x2fe   : > { %2714 = vrot.lane.b32.xlu0 %v5998_v20, %s4755_s9  ;;  %2674 = vrot.lane.b32.xlu1 %v2660_v15, %s4754_s8 }
 0x2ff   : > { %v3106_v54 = vsel %vm288_vm1, %v3101_v2, %v3102_v59 }
 0x300   : > { %v3176_v29 = vpop.permute.xlu0 %3175  ;;  %v3134_v32 = vpop.permute.xlu1 %3133  ;;  %v3108_v61 = vsel %vm6768_vm5, %v3092_v58, %v3106_v54  ;;  %vm6769_vm5 = vcmask 236544  }
 0x301   : > { %v3143_v40 = vrot.slane %v3134_v32, 4  ;;  %v4588_v38 = vcombine.low %v3066_v42, %v3108_v61  ;;  %v4589_v12 = vcombine.high %v3066_v42, %v3108_v61  ;;  %v3185_v9 = vrot.slane %v3176_v29, 4  ;;  %v2786_v42 = vld [vmem:[#allocation2 + $0x20] sm:$0xf] }
 0x302   : > { %2756 = vrot.lane.b32.xlu0 %v5998_v20, %s4756_s10  ;;  %2716 = vrot.lane.b32.xlu1 %v2702_v48, %s4755_s9 }
 0x303   : > { %4119 = vmatprep.subr.bf16.mxu0 %v4589_v12  ;;  %v3148_v58 = vsel %vm288_vm1, %v3143_v40, %v6774_v10 }
 0x304   : > { %v6107_v24 = vpop.permute.xlu0 %3219  ;;  %4120 = vmatpush1.bf16.msra.mxu0 %v4588_v38  ;;  %v6109_v13 = vpop.permute.xlu1 %3177  ;;  %v3150_v35 = vsel %vm6770_vm4, %v3134_v32, %v3148_v58  ;;  %v2828_v58 = vld [vmem:[#allocation2 + $0x20] sm:$0xf]  ;;  %vm6868_vm4 = vcmask 220160  }
 0x305   : > { %v6775_v56 = vrot.slane %v6109_v13, 4  ;;  %v6771_v48 = vrot.slane %v6107_v24, 4 }
 0x306   : > { %2798 = vrot.lane.b32.xlu0 %v5998_v20, %s4757_s13  ;;  %2758 = vrot.lane.b32.xlu1 %v2744_v3, %s4756_s10  ;;  %v2878_v3 = vld [vmem:[#allocation2 + $0x24] sm:$0xf] }
 0x307   : > { %v3190_v47 = vsel %vm288_vm1, %v3185_v9, %v6775_v56 }
 0x308   : > { %v3259_v2 = vpop.permute.xlu0 %3258  ;;  %v3218_v14 = vpop.permute.xlu1 %3217  ;;  %v3192_v15 = vsel %vm6769_vm5, %v3176_v29, %v3190_v47  ;;  %vm6867_vm5 = vcmask 228352  }
 0x309   : > { %v3227_v54 = vrot.slane %v3218_v14, 4  ;;  %v4596_v61 = vcombine.low %v3150_v35, %v3192_v15  ;;  %v4597_v40 = vcombine.high %v3150_v35, %v3192_v15  ;;  %v3268_v12 = vrot.slane %v3259_v2, 4 }
 0x30a   : > { %2840 = vrot.lane.b32.xlu0 %v5998_v20, %s6866_s16  ;;  %2800 = vrot.lane.b32.xlu1 %v2786_v42, %s4757_s13 }
 0x30b   : > { %4121 = vmatprep.subr.bf16.mxu0 %v4597_v40  ;;  %v3232_v29 = vsel %vm288_vm1, %v3227_v54, %v6771_v48  ;;  %v2919_v48 = vld [vmem:[#allocation2 + $0x24] sm:$0xf] }
 0x30c   : > { %v6127_v38 = vpop.permute.xlu0 %3301  ;;  %4122 = vmatpush1.bf16.msra.mxu0 %v4596_v61  ;;  %v6129_v32 = vpop.permute.xlu1 %3260  ;;  %v3233_v47 = vsel %vm6867_vm5, %v3218_v14, %v3232_v29  ;;  %vm3315_vm5 = vcmask 154624  }
 0x30d   : > { %v6772_v9 = vrot.slane %v6129_v32, 4 }
 0x30e   : > { %2890 = vrot.lane.b32.xlu0 %v5827_v50, %s6861_s26  ;;  %2842 = vrot.lane.b32.xlu1 %v2828_v58, %s6866_s16  ;;  %v6773_v58 = vrot.slane %v6127_v38, 4 }
 0x30f   : > { %v3273_v20 = vsel %vm288_vm1, %v3268_v12, %v6772_v9 }
 0x310   : > { %v3342_v35 = vpop.permute.xlu0 %3341  ;;  %v3300_v15 = vpop.permute.xlu1 %3299  ;;  %v3274_v42 = vsel %vm6868_vm4, %v3259_v2, %v3273_v20  ;;  %vm6869_vm4 = vcmask 146432  }
 0x311   : > { %v3309_v54 = vrot.slane %v3300_v15, 4  ;;  %v4604_v61 = vcombine.low %v3233_v47, %v3274_v42  ;;  %v4605_v40 = vcombine.high %v3233_v47, %v3274_v42  ;;  %v3351_v29 = vrot.slane %v3342_v35, 4  ;;  %v2961_v47 = vld [vmem:[#allocation2 + $0x24] sm:$0xf] }
 0x312   : > { %2931 = vrot.lane.b32.xlu0 %v5827_v50, %s6860_s11  ;;  %2892 = vrot.lane.b32.xlu1 %v2878_v3, %s6861_s26 }
 0x313   : > { %4123 = vmatprep.subr.bf16.mxu0 %v4605_v40  ;;  %v3314_v2 = vsel %vm288_vm1, %v3309_v54, %v6773_v58 }
 0x314   : > { %v6147_v12 = vpop.permute.xlu0 %3384  ;;  %4124 = vmatpush1.bf16.msra.mxu0 %v4604_v61  ;;  %v6149_v14 = vpop.permute.xlu1 %3343  ;;  %v3316_v42 = vsel %vm3315_vm5, %v3300_v15, %v3314_v2  ;;  %v3002_v15 = vld [vmem:[#allocation2 + $0x24] sm:$0xf] }
 0x315   : > { %v3352_v20 = vrot.slane %v6149_v14, 4  ;;  %v3393_v61 = vrot.slane %v6147_v12, 4 }
 0x316   : > { %2973 = vrot.lane.b32.xlu0 %v5827_v50, %s6862_s14  ;;  %2933 = vrot.lane.b32.xlu1 %v2919_v48, %s6860_s11 }
 0x317   : > { %v3356_v3 = vsel %vm288_vm1, %v3351_v29, %v3352_v20 }
 0x318   : > { %v6163_v40 = vpop.permute.xlu0 %2334  ;;  %v3383_v9 = vpop.permute.xlu1 %3382  ;;  %v3357_v54 = vsel %vm6869_vm4, %v3342_v35, %v3356_v3  ;;  %vm6871_vm4 = vcmask 138240  }
 0x319   : > { %v6778_v58 = vrot.slane %v6163_v40, 4  ;;  %v3392_v10 = vrot.slane %v3383_v9, 4  ;;  %v4612_v56 = vcombine.low %v3316_v42, %v3357_v54  ;;  %v4613_v17 = vcombine.high %v3316_v42, %v3357_v54 }
 0x31a   : > { %3014 = vrot.lane.b32.xlu0 %v5827_v50, %s6870_s17  ;;  %2975 = vrot.lane.b32.xlu1 %v2961_v47, %s6862_s14 }
 0x31b   : > { %v3397_v48 = vsel %vm288_vm1, %v3392_v10, %v3393_v61  ;;  %4125 = vmatprep.subr.bf16.mxu0 %v4613_v17  ;;  %v2348_v35 = vsel %vm288_vm1, %v2341_v57, %v6778_v58 }
 0x31c   : > { %v3398_v29 = vsel %vm6871_vm4, %v3383_v9, %v3397_v48  ;;  %v6179_v2 = vpop.permute.xlu0 %2418  ;;  %4126 = vmatpush1.bf16.msra.mxu0 %v4612_v56  ;;  %v6181_v3 = vpop.permute.xlu1 %2376  ;;  %v3043_v56 = vld [vmem:[#allocation2 + $0x24] sm:$0xf]  ;;  %v6197_v9 = vcombine.low %v5884_v11, %v5884_v11  ;;  %vm6874_vm4 = vcmask 728064  }
 0x31d   : > { %v4620_v47 = vcombine.low %v3398_v29, %v3398_v29  ;;  %v4621_v42 = vcombine.high %v3398_v29, %v3398_v29  ;;  %v2426_v54 = vrot.slane %v6179_v2, 4  ;;  %v6777_v17 = vrot.slane %v6181_v3, 4 }
 0x31e   : > { %3055 = vrot.lane.b32.xlu0 %v5827_v50, %s6863_s30  ;;  %3016 = vrot.lane.b32.xlu1 %v3002_v15, %s6870_s17 }
 0x31f   : > { %v2390_v57 = vsel %vm288_vm1, %v2383_v36, %v6777_v17  ;;  %4628 = vmatprep.subr.msk.bf16.mxu0 %vm288_vm1, %v4621_v42  ;;  %v4078_v10 = vsel %vm288_vm1, %v4620_v47, 0  ;;  %v2432_v48 = vsel %vm288_vm1, %v2425_v46, %v2426_v54  ;;  %v2349_v36 = vsel %vm2346_vm10, %v5905_v21, %v2348_v35 }
 0x320   : > { %v6204_v15 = vpop.permute.xlu0 %2502  ;;  %4128 = vmatpush1.bf16.msra.mxu0 %v4078_v10  ;;  %v6206_v29 = vpop.permute.xlu1 %2460  ;;  %v2391_v47 = vsel %vm2388_vm11, %v5903_v33, %v2390_v57  ;;  %v3085_v33 = vld [vmem:[#allocation2 + $0x24] sm:$0xf]  ;;  %v2433_v10 = vsel %vm2430_vm12, %v5923_v22, %v2432_v48 }
 0x321   : > { %v2510_v11 = vrot.slane %v6204_v15, 4  ;;  %v2468_v42 = vrot.slane %v6206_v29, 4  ;;  %v4518_v17 = vcombine.low %v2349_v36, %v2391_v47  ;;  %v4519_v58 = vcombine.high %v2349_v36, %v2391_v47  ;;  %v3127_v22 = vld [vmem:[#allocation2 + $0x24] sm:$0xf] }
 0x322   : > { %3097 = vrot.lane.b32.xlu0 %v5827_v50, %s6872_s19  ;;  %3057 = vrot.lane.b32.xlu1 %v3043_v56, %s6863_s30  ;;  %s6873_s30 = smov 29  }
 0x323   : > { %v2474_v21 = vsel %vm288_vm1, %v2467_v43, %v2468_v42  ;;  %4134 = vmatmul.mubr.bf16.vlgmr.msra.gmra.mrb[8].mxu0 %v6197_v9  ;;  %4142 = vmatprep.subr.bf16.mxu1 %v4519_v58  ;;  %v2516_v46 = vsel %vm288_vm1, %v2509_v31, %v2510_v11 }
 0x324   : > { %v6228_v35 = vpop.permute.xlu0 %2586  ;;  %4143 = vmatpush1.bf16.msra.mxu1 %v4518_v17  ;;  %v6230_v57 = vpop.permute.xlu1 %2544  ;;  %v2475_v43 = vsel %vm2472_vm13, %v5921_v53, %v2474_v21  ;;  %4633 = vmatprep.mubr.msk.bf16.mxu0 %vm2017_vm0, %v5888_v51  ;;  %v2517_v21 = vsel %vm2514_vm14, %v5943_v19, %v2516_v46 }
 0x325   : > { %v2594_v58 = vrot.slane %v6228_v35, 4  ;;  %v2552_v56 = vrot.slane %v6230_v57, 4  ;;  %v4526_v36 = vcombine.low %v2433_v10, %v2475_v43  ;;  %v4527_v31 = vcombine.high %v2433_v10, %v2475_v43 }
 0x326   : > { %3139 = vrot.lane.b32.xlu0 %v5827_v50, %s6864_s28  ;;  %3099 = vrot.lane.b32.xlu1 %v3085_v33, %s6872_s19 }
 0x327   : > { %v2558_v53 = vsel %vm288_vm1, %v2551_v5, %v2552_v56  ;;  %4144 = vmatprep.subr.bf16.mxu1 %v4527_v31  ;;  %v2600_v17 = vsel %vm288_vm1, %v2593_v62, %v2594_v58  ;;  %v3169_v62 = vld [vmem:[#allocation2 + $0x24] sm:$0xf] }
 0x328   : > { %v6253_v48 = vpop.permute.xlu0 %2670  ;;  %4145 = vmatpush1.bf16.msra.mxu1 %v4526_v36  ;;  %v6255_v47 = vpop.permute.xlu1 %2628  ;;  %v2559_v33 = vsel %vm2556_vm15, %v5941_v23, %v2558_v53  ;;  %v2601_v53 = vsel %vm2598_vm3, %v5965_v7, %v2600_v17 }
 0x329   : > { %v2678_v5 = vrot.slane %v6253_v48, 4  ;;  %v2636_v10 = vrot.slane %v6255_v47, 4  ;;  %v4534_v43 = vcombine.low %v2517_v21, %v2559_v33  ;;  %v4535_v31 = vcombine.high %v2517_v21, %v2559_v33 }
 0x32a   : > { %3181 = vrot.lane.b32.xlu0 %v5827_v50, %s6873_s30  ;;  %3141 = vrot.lane.b32.xlu1 %v3127_v22, %s6864_s28 }
 0x32b   : > { %v2642_v19 = vsel %vm288_vm1, %v2635_v39, %v2636_v10  ;;  %4146 = vmatprep.subr.bf16.mxu1 %v4535_v31  ;;  %v2684_v23 = vsel %vm288_vm1, %v2677_v0, %v2678_v5  ;;  %v3211_v0 = vld [vmem:[#allocation2 + $0x24] sm:$0xf] }
 0x32c   : > { %v6276_v46 = vpop.permute.xlu0 %2754  ;;  %4147 = vmatpush1.bf16.msra.mxu1 %v4534_v43  ;;  %v6278_v36 = vpop.permute.xlu1 %2712  ;;  %v2643_v22 = vsel %vm6779_vm6, %v5963_v63, %v2642_v19  ;;  %v2685_v43 = vsel %vm6874_vm4, %v5987_v49, %v2684_v23  ;;  %vm6875_vm6 = vcmask 89088   ;;  %vm6877_vm4 = vcmask 973824  }
 0x32d   : > { %v2762_v39 = vrot.slane %v6276_v46, 4  ;;  %v2720_v21 = vrot.slane %v6278_v36, 4  ;;  %v4542_v33 = vcombine.low %v2601_v53, %v2643_v22  ;;  %v4543_v31 = vcombine.high %v2601_v53, %v2643_v22  ;;  %v6309_v53 = vld [vmem:[#allocation2 + $0x1c] sm:$0xff] }
 0x32e   : > { %3223 = vrot.lane.b32.xlu0 %v5827_v50, %s6865_s29  ;;  %3183 = vrot.lane.b32.xlu1 %v3169_v62, %s6873_s30 }
 0x32f   : > { %v2726_v7 = vsel %vm288_vm1, %v2719_v8, %v2720_v21  ;;  %4148 = vmatprep.subr.bf16.mxu1 %v4543_v31  ;;  %v2768_v63 = vsel %vm288_vm1, %v2761_v1, %v2762_v39  ;;  %v3252_v1 = vld [vmem:[#allocation2 + $0x24] sm:$0xf] }
 0x330   : > { %v6299_v17 = vpop.permute.xlu0 %2838  ;;  %4149 = vmatpush1.bf16.msra.mxu1 %v4542_v33  ;;  %v6301_v50 = vpop.permute.xlu1 %2796  ;;  %v2727_v19 = vsel %vm6875_vm6, %v5985_v16, %v2726_v7  ;;  %v2769_v7 = vsel %vm2766_vm9, %v6011_v37, %v2768_v63  ;;  %vm6876_vm6 = vcmask 7168   ;;  %v3293_v63 = vld [vmem:[#allocation2 + $0x24] sm:$0xf] }
 0x331   : > { %v2846_v8 = vrot.slane %v6299_v17, 4  ;;  %v2804_v62 = vrot.slane %v6301_v50, 4  ;;  %v4550_v22 = vcombine.low %v2685_v43, %v2727_v19  ;;  %v4551_v31 = vcombine.high %v2685_v43, %v2727_v19 }
 0x332   : > { %3264 = vrot.lane.b32.xlu0 %v6309_v53, %s4728_s12  ;;  %3225 = vrot.lane.b32.xlu1 %v3211_v0, %s6865_s29 }
 0x333   : > { %v2852_v49 = vsel %vm288_vm1, %v2845_v45, %v2846_v8  ;;  %v2810_v16 = vsel %vm288_vm1, %v2803_v25, %v2804_v62  ;;  %4150 = vmatprep.subr.bf16.mxu1 %v4551_v31 }
 0x334   : > { %v6324_v23 = vpop.permute.xlu0 %2929  ;;  %4151 = vmatpush1.bf16.msra.mxu1 %v4550_v22  ;;  %v6326_v33 = vpop.permute.xlu1 %2888  ;;  %v2811_v0 = vsel %vm2808_vm8, %v6009_v55, %v2810_v16  ;;  %v2853_v45 = vsel %vm6876_vm6, %v6031_v30, %v2852_v49  ;;  %v2867_v22 = vld [vmem:[#allocation2 + $0xc] sm:$0xff]  ;;  %vm6878_vm6 = vcmask 965632  }
 0x335   : > { %v2937_v43 = vrot.slane %v6324_v23, 4  ;;  %v2896_v25 = vrot.slane %v6326_v33, 4  ;;  %v4558_v19 = vcombine.low %v2769_v7, %v2811_v0  ;;  %v4559_v31 = vcombine.high %v2769_v7, %v2811_v0 }
 0x336   : > { %3305 = vrot.lane.b32.xlu0 %v6309_v53, %s4764_s15  ;;  %3266 = vrot.lane.b32.xlu1 %v3252_v1, %s4728_s12  ;;  %v4567_v30 = vcombine.high %v2853_v45, %v2867_v22  ;;  %s4642_s12 = sshll.u32 %s6935_s22, 5 }
 0x337   : > { %v2943_v55 = vsel %vm288_vm1, %v2936_v26, %v2937_v43  ;;  %v2901_v37 = vsel %vm288_vm1, %v2895_v6, %v2896_v25  ;;  %4152 = vmatprep.subr.bf16.mxu1 %v4559_v31  ;;  %v4566_v6 = vcombine.low %v2853_v45, %v2867_v22  ;;  %v3335_v31 = vld [vmem:[#allocation2 + $0x24] sm:$0xf]  ;;  %s6672_s20 = scalar_lea.vmem %s6687_s6, %s4642_s12 }
 0x338   : > { %v6349_v49 = vpop.permute.xlu0 %3012  ;;  %4153 = vmatpush1.bf16.msra.mxu1 %v4558_v19  ;;  %v6351_v16 = vpop.permute.xlu1 %2971  ;;  %v2902_v1 = vsel %vm290_vm2, %v6029_v60, %v2901_v37  ;;  %v2944_v26 = vsel %vm6877_vm4, %v6049_v44, %v2943_v55  ;;  %vm6879_vm4 = vcmask 957440  }
 0x339   : > { %v6789_v7 = vrot.slane %v6349_v49, 4  ;;  %v6790_v0 = vrot.slane %v6351_v16, 4  ;;  %4154 = vmatprep.subr.bf16.mxu1 %v4567_v30  ;;  %v4575_v19 = vcombine.high %v2902_v1, %v2944_v26 }
 0x33a   : > { %3347 = vrot.lane.b32.xlu0 %v6309_v53, %s6798_s27  ;;  %3307 = vrot.lane.b32.xlu1 %v3293_v63, %s4764_s15  ;;  %v4574_v63 = vcombine.low %v2902_v1, %v2944_v26  ;;  %v3522_v1 = vld [vmem:[%s6684_s3] sm:$0xff] }
 0x33b   : > { %v3025_v60 = vsel %vm288_vm1, %v3019_v4, %v6789_v7  ;;  %v2984_v44 = vsel %vm288_vm1, %v2978_v52, %v6790_v0  ;;  %v6880_v52 = vrot.slane %v6067_v27, 4  ;;  %v3376_v26 = vld [vmem:[#allocation2 + $0x24] sm:$0xf] }
 0x33c   : > { %v6372_v45 = vpop.permute.xlu0 %3095  ;;  %4155 = vmatpush1.bf16.msra.mxu1 %v4566_v6  ;;  %v6374_v22 = vpop.permute.xlu1 %3053  ;;  %v2985_v55 = vsel %vm6878_vm6, %v6047_v41, %v2984_v44  ;;  %v3026_v37 = vsel %vm6879_vm4, %v6069_v34, %v3025_v60  ;;  %vm6881_vm6 = vcmask 310272   ;;  %vm6884_vm4 = vcmask 302080  }
 0x33d   : > { %v6780_v4 = vrot.slane %v6372_v45, 4  ;;  %v6781_v30 = vrot.slane %v6374_v22, 4  ;;  %4156 = vmatprep.subr.bf16.mxu1 %v4575_v19  ;;  %v4583_v6 = vcombine.high %v2985_v55, %v3026_v37 }
 0x33e   : > { %3388 = vrot.lane.b32.xlu0 %v6309_v53, %s6799_s7  ;;  %3349 = vrot.lane.b32.xlu1 %v3335_v31, %s6798_s27 }
 0x33f   : > { %v3109_v41 = vsel %vm288_vm1, %v3102_v59, %v6780_v4  ;;  %v3067_v34 = vsel %vm288_vm1, %v6880_v52, %v6781_v30  ;;  %v4582_v4 = vcombine.low %v2985_v55, %v3026_v37 }
 0x340   : > { %v6398_v60 = vpop.permute.xlu0 %3179  ;;  %4157 = vmatpush1.bf16.msra.mxu1 %v4574_v63  ;;  %v6400_v44 = vpop.permute.xlu1 %3137  ;;  %v3068_v59 = vsel %vm3065_vm7, %v6067_v27, %v3067_v34  ;;  %v3110_v19 = vsel %vm6881_vm6, %v6089_v28, %v3109_v41  ;;  %v6882_v63 = vrot.slane %v6109_v13, 4  ;;  %v6883_v27 = vrot.slane %v6087_v18, 4 }
 0x341   : > { %v6782_v31 = vrot.slane %v6398_v60, 4  ;;  %v6787_v52 = vrot.slane %v6400_v44, 4  ;;  %4158 = vmatprep.subr.bf16.mxu1 %v4583_v6  ;;  %v4591_v41 = vcombine.high %v3068_v59, %v3110_v19  ;;  %vm6885_vm6 = vcmask 236544  }
 0x342   : > { %3525 = vperm.xlu0 %4706, %v3522_v1   ;;  %3390 = vrot.lane.b32.xlu1 %v3376_v26, %s6799_s7 }
 0x343   : > { %v3193_v30 = vsel %vm288_vm1, %v6882_v63, %v6782_v31  ;;  %v3151_v28 = vsel %vm288_vm1, %v6883_v27, %v6787_v52  ;;  %v4590_v63 = vcombine.low %v3068_v59, %v3110_v19  ;;  %v6886_v27 = vrot.slane %v6129_v32, 4 }
 0x344   : > { %v6419_v34 = vpop.permute.xlu0 %3262  ;;  %4159 = vmatpush1.bf16.msra.mxu1 %v4582_v4  ;;  %v6421_v55 = vpop.permute.xlu1 %3221  ;;  %v3152_v37 = vsel %vm6884_vm4, %v6087_v18, %v3151_v28  ;;  %v3194_v6 = vsel %vm6885_vm6, %v6109_v13, %v3193_v30  ;;  %v6887_v31 = vrot.slane %v6107_v24, 4  ;;  %vm6888_vm4 = vcmask 228352  }
 0x345   : > { %v6783_v1 = vrot.slane %v6419_v34, 4  ;;  %v6786_v26 = vrot.slane %v6421_v55, 4  ;;  %4160 = vmatprep.subr.bf16.mxu1 %v4591_v41  ;;  %v4599_v28 = vcombine.high %v3152_v37, %v3194_v6  ;;  %vm6889_vm6 = vcmask 220160  }
 0x347   : > { %v3275_v4 = vsel %vm288_vm1, %v6886_v27, %v6783_v1  ;;  %v3234_v18 = vsel %vm288_vm1, %v6887_v31, %v6786_v26  ;;  %v4598_v1 = vcombine.low %v3152_v37, %v3194_v6 }
 0x348   : > { %v6439_v13 = vpop.permute.xlu0 %3345  ;;  %4161 = vmatpush1.bf16.msra.mxu1 %v4590_v63  ;;  %v6441_v30 = vpop.permute.xlu1 %3303  ;;  %v3235_v59 = vsel %vm6888_vm4, %v6107_v24, %v3234_v18  ;;  %v3276_v19 = vsel %vm6889_vm6, %v6129_v32, %v3275_v4  ;;  %v6890_v63 = vrot.slane %v6127_v38, 4  ;;  %vm6891_vm4 = vcmask 146432  }
 0x349   : > { %v6784_v41 = vrot.slane %v6439_v13, 4  ;;  %v6785_v27 = vrot.slane %v6441_v30, 4  ;;  %4162 = vmatprep.subr.bf16.mxu1 %v4599_v28  ;;  %v4607_v18 = vcombine.high %v3235_v59, %v3276_v19  ;;  %vm6892_vm6 = vcmask 138240  }
 0x34b   : > { %v3358_v31 = vsel %vm288_vm1, %v3352_v20, %v6784_v41  ;;  %v3317_v24 = vsel %vm288_vm1, %v6890_v63, %v6785_v27  ;;  %v4606_v41 = vcombine.low %v3235_v59, %v3276_v19  ;;  %v6894_v19 = vrot.slane %v6181_v3, 4 }
 0x34c   : > { %v2337_v32 = vpop.permute.xlu0 %2336  ;;  %4163 = vmatpush1.bf16.msra.mxu1 %v4598_v1  ;;  %v6459_v4 = vpop.permute.xlu1 %3386  ;;  %v3318_v37 = vsel %vm3315_vm5, %v6127_v38, %v3317_v24  ;;  %v3359_v6 = vsel %vm6891_vm4, %v6149_v14, %v3358_v31  ;;  %v6893_v14 = vrot.slane %v6163_v40, 4  ;;  %vm6907_vm4 = vcmask 965632  }
 0x34d   : > { %v2343_v28 = vrot.slane %v2337_v32, 4  ;;  %v6788_v20 = vrot.slane %v6459_v4, 4  ;;  %4164 = vmatprep.subr.bf16.mxu1 %v4607_v18  ;;  %v4615_v1 = vcombine.high %v3318_v37, %v3359_v6  ;;  %v4614_v59 = vcombine.low %v3318_v37, %v3359_v6 }
 0x34f   : > { %v3399_v63 = vsel %vm288_vm1, %v3393_v61, %v6788_v20  ;;  %v2350_v31 = vsel %vm288_vm1, %v6893_v14, %v2343_v28 }
 0x350   : > { %v2379_v27 = vpop.permute.xlu0 %2378  ;;  %4165 = vmatpush1.bf16.msra.mxu1 %v4606_v41  ;;  %v2339_v26 = vpop.permute.xlu1 %2338  ;;  %v3400_v38 = vsel %vm6892_vm6, %v6147_v12, %v3399_v63  ;;  %v2351_v12 = vsel %vm2346_vm10, %v6163_v40, %v2350_v31  ;;  %vm6910_vm6 = vmmov %vm6907_vm4 }
 0x351   : > { %v2385_v24 = vrot.slane %v2379_v27, 4  ;;  %v2344_v18 = vrot.slane %v2339_v26, 4  ;;  %4166 = vmatprep.subr.bf16.mxu1 %v4615_v1  ;;  %v4623_v61 = vcombine.high %v3400_v38, %v3400_v38  ;;  %v4622_v20 = vcombine.low %v3400_v38, %v3400_v38 }
 0x353   : > { %v2392_v52 = vsel %vm288_vm1, %v6894_v19, %v2385_v24  ;;  %v2352_v41 = vsel %vm288_vm1, %v2343_v28, %v2344_v18  ;;  %v4084_v28 = vsel %vm288_vm1, %v4622_v20, 0 }
 0x354   : > { %v2421_v7 = vpop.permute.xlu0 %2420  ;;  %4167 = vmatpush1.bf16.msra.mxu1 %v4614_v59  ;;  %v2381_v0 = vpop.permute.xlu1 %2380  ;;  %v2393_v63 = vsel %vm2388_vm11, %v6181_v3, %v2392_v52  ;;  %v2353_v3 = vsel %vm2346_vm10, %v2337_v32, %v2352_v41 }
 0x355   : > { %v2427_v26 = vrot.slane %v2421_v7, 4  ;;  %v2386_v1 = vrot.slane %v2381_v0, 4  ;;  %4630 = vmatprep.subr.msk.bf16.mxu1 %vm288_vm1, %v4623_v61  ;;  %v4520_v37 = vcombine.low %v2351_v12, %v2393_v63  ;;  %v4521_v6 = vcombine.high %v2351_v12, %v2393_v63 }
 0x357   : > { %v2394_v14 = vsel %vm288_vm1, %v2385_v24, %v2386_v1  ;;  %4183 = vmatprep.subr.bf16.mxu0 %v4521_v6  ;;  %v2434_v38 = vsel %vm288_vm1, %v2426_v54, %v2427_v26 }
 0x358   : > { %v2463_v18 = vpop.permute.xlu0 %2462  ;;  %4169 = vmatpush1.bf16.msra.mxu1 %v4084_v28  ;;  %4184 = vmatpush1.bf16.msra.mxu0 %v4520_v37  ;;  %v2423_v40 = vpop.permute.xlu1 %2422  ;;  %v2395_v0 = vsel %vm2388_vm11, %v2379_v27, %v2394_v14  ;;  %v2435_v32 = vsel %vm2430_vm12, %v6179_v2, %v2434_v38  ;;  %vm6897_vm11 = vcmask 728064  }
 0x359   : > { %v2469_v52 = vrot.slane %v2463_v18, 4  ;;  %v2428_v31 = vrot.slane %v2423_v40, 4  ;;  %v4522_v59 = vcombine.low %v2353_v3, %v2395_v0  ;;  %v4523_v19 = vcombine.high %v2353_v3, %v2395_v0 }
 0x35b   : > { %v2476_v20 = vsel %vm288_vm1, %v2468_v42, %v2469_v52  ;;  %4175 = vmatmul.mubr.bf16.vlgmr.msra.gmra.mrb[8].mxu1 %v6197_v9  ;;  %4224 = vmatprep.subr.bf16.mxu1 %v4523_v19  ;;  %v2436_v54 = vsel %vm288_vm1, %v2427_v26, %v2428_v31 }
 0x35c   : > { %v2505_v24 = vpop.permute.xlu0 %2504  ;;  %4225 = vmatpush1.bf16.msra.mxu1 %v4522_v59  ;;  %v2465_v61 = vpop.permute.xlu1 %2464  ;;  %v2477_v27 = vsel %vm2472_vm13, %v6206_v29, %v2476_v20  ;;  %4635 = vmatprep.mubr.msk.bf16.mxu1 %vm2017_vm0, %v5888_v51  ;;  %v2437_v6 = vsel %vm2430_vm12, %v2421_v7, %v2436_v54  ;;  %vm6895_vm0 = vcmask 736256   ;;  %vm6898_vm12 = vcmask 89088  }
 0x35d   : > { %v2511_v41 = vrot.slane %v2505_v24, 4  ;;  %v2470_v12 = vrot.slane %v2465_v61, 4  ;;  %v4528_v42 = vcombine.low %v2435_v32, %v2477_v27  ;;  %v4529_v63 = vcombine.high %v2435_v32, %v2477_v27  ;;  %vm6896_vm10 = vmmov %vm6895_vm0 }
 0x35f   : > { %v2478_v1 = vsel %vm288_vm1, %v2469_v52, %v2470_v12  ;;  %4185 = vmatprep.subr.bf16.mxu0 %v4529_v63  ;;  %v2518_v26 = vsel %vm288_vm1, %v2510_v11, %v2511_v41 }
 0x360   : > { %v2547_v37 = vpop.permute.xlu0 %2546  ;;  %4186 = vmatpush1.bf16.msra.mxu0 %v4528_v42  ;;  %v2507_v2 = vpop.permute.xlu1 %2506  ;;  %v2479_v29 = vsel %vm2472_vm13, %v2463_v18, %v2478_v1  ;;  %v2519_v52 = vsel %vm2514_vm14, %v6204_v15, %v2518_v26  ;;  %vm6899_vm13 = vmmov %vm6897_vm11 }
 0x361   : > { %v2553_v14 = vrot.slane %v2547_v37, 4  ;;  %v2512_v51 = vrot.slane %v2507_v2, 4  ;;  %v4530_v28 = vcombine.low %v2437_v6, %v2479_v29  ;;  %v4531_v38 = vcombine.high %v2437_v6, %v2479_v29 }
 0x363   : > { %v2560_v40 = vsel %vm288_vm1, %v2552_v56, %v2553_v14  ;;  %4226 = vmatprep.subr.bf16.mxu1 %v4531_v38  ;;  %v2520_v3 = vsel %vm288_vm1, %v2511_v41, %v2512_v51 }
 0x364   : > { %v2589_v0 = vpop.permute.xlu0 %2588  ;;  %4227 = vmatpush1.bf16.msra.mxu1 %v4530_v28  ;;  %v2549_v11 = vpop.permute.xlu1 %2548  ;;  %v2561_v7 = vsel %vm2556_vm15, %v6230_v57, %v2560_v40  ;;  %v2521_v32 = vsel %vm2514_vm14, %v2505_v24, %v2520_v3  ;;  %vm6900_vm14 = vmmov %vm6898_vm12 }
 0x365   : > { %v2595_v18 = vrot.slane %v2589_v0, 4  ;;  %v2554_v31 = vrot.slane %v2549_v11, 4  ;;  %v4536_v59 = vcombine.low %v2519_v52, %v2561_v7  ;;  %v4537_v19 = vcombine.high %v2519_v52, %v2561_v7 }
 0x367   : > { %v2562_v20 = vsel %vm288_vm1, %v2553_v14, %v2554_v31  ;;  %4187 = vmatprep.subr.bf16.mxu0 %v4537_v19  ;;  %v2602_v56 = vsel %vm288_vm1, %v2594_v58, %v2595_v18 }
 0x368   : > { %v2631_v54 = vpop.permute.xlu0 %2630  ;;  %4188 = vmatpush1.bf16.msra.mxu0 %v4536_v59  ;;  %v2591_v61 = vpop.permute.xlu1 %2590  ;;  %v2563_v15 = vsel %vm2556_vm15, %v2547_v37, %v2562_v20  ;;  %v2603_v26 = vsel %vm2598_vm3, %v6228_v35, %v2602_v56  ;;  %vm6901_vm15 = vcmask 7168  }
 0x369   : > { %v2637_v27 = vrot.slane %v2631_v54, 4  ;;  %v2596_v57 = vrot.slane %v2591_v61, 4  ;;  %v4538_v41 = vcombine.low %v2521_v32, %v2563_v15  ;;  %v4539_v12 = vcombine.high %v2521_v32, %v2563_v15 }
 0x36b   : > { %v2644_v42 = vsel %vm288_vm1, %v2636_v10, %v2637_v27  ;;  %4228 = vmatprep.subr.bf16.mxu1 %v4539_v12  ;;  %v2604_v63 = vsel %vm288_vm1, %v2595_v18, %v2596_v57 }
 0x36c   : > { %v2673_v1 = vpop.permute.xlu0 %2672  ;;  %4229 = vmatpush1.bf16.msra.mxu1 %v4538_v41  ;;  %v2633_v58 = vpop.permute.xlu1 %2632  ;;  %v2645_v24 = vsel %vm6895_vm0, %v6255_v47, %v2644_v42  ;;  %v2605_v38 = vsel %vm2598_vm3, %v2589_v0, %v2604_v63  ;;  %vm6902_vm3 = vmmov %vm6901_vm15 }
 0x36d   : > { %v2679_v37 = vrot.slane %v2673_v1, 4  ;;  %v2638_v2 = vrot.slane %v2633_v58, 4  ;;  %v4544_v6 = vcombine.low %v2603_v26, %v2645_v24  ;;  %v4545_v29 = vcombine.high %v2603_v26, %v2645_v24 }
 0x36f   : > { %v2646_v14 = vsel %vm288_vm1, %v2637_v27, %v2638_v2  ;;  %4189 = vmatprep.subr.bf16.mxu0 %v4545_v29  ;;  %v2686_v10 = vsel %vm288_vm1, %v2678_v5, %v2679_v37 }
 0x370   : > { %v2715_v51 = vpop.permute.xlu0 %2714  ;;  %4190 = vmatpush1.bf16.msra.mxu0 %v4544_v6  ;;  %v2675_v28 = vpop.permute.xlu1 %2674  ;;  %v2647_v35 = vsel %vm6896_vm10, %v2631_v54, %v2646_v14  ;;  %v2687_v31 = vsel %vm6897_vm11, %v6253_v48, %v2686_v10  ;;  %v2868_v10 = vld [vmem:[#allocation2 + $0x14] sm:$0xff]  ;;  %vm6913_vm10 = vcmask 310272  }
 0x371   : > { %v2721_v40 = vrot.slane %v2715_v51, 4  ;;  %v2680_v47 = vrot.slane %v2675_v28, 4  ;;  %v4546_v3 = vcombine.low %v2605_v38, %v2647_v35  ;;  %v4547_v11 = vcombine.high %v2605_v38, %v2647_v35  ;;  %vm6915_vm11 = vmmov %vm6913_vm10 }
 0x373   : > { %v2728_v52 = vsel %vm288_vm1, %v2720_v21, %v2721_v40  ;;  %4230 = vmatprep.subr.bf16.mxu1 %v4547_v11  ;;  %v2688_v7 = vsel %vm288_vm1, %v2679_v37, %v2680_v47 }
 0x374   : > { %v2757_v18 = vpop.permute.xlu0 %2756  ;;  %4231 = vmatpush1.bf16.msra.mxu1 %v4546_v3  ;;  %v2717_v5 = vpop.permute.xlu1 %2716  ;;  %v2729_v0 = vsel %vm6898_vm12, %v6278_v36, %v2728_v52  ;;  %v2689_v15 = vsel %vm6899_vm13, %v2673_v1, %v2688_v7  ;;  %vm6917_vm12 = vcmask 302080  }
 0x375   : > { %v2763_v59 = vrot.slane %v2757_v18, 4  ;;  %v2722_v19 = vrot.slane %v2717_v5, 4  ;;  %v4552_v20 = vcombine.low %v2687_v31, %v2729_v0  ;;  %v4553_v56 = vcombine.high %v2687_v31, %v2729_v0  ;;  %vm6920_vm13 = vmmov %vm6917_vm12 }
 0x377   : > { %v2730_v54 = vsel %vm288_vm1, %v2721_v40, %v2722_v19  ;;  %4191 = vmatprep.subr.bf16.mxu0 %v4553_v56  ;;  %v2770_v21 = vsel %vm288_vm1, %v2762_v39, %v2763_v59 }
 0x378   : > { %v2799_v61 = vpop.permute.xlu0 %2798  ;;  %4192 = vmatpush1.bf16.msra.mxu0 %v4552_v20  ;;  %v2759_v32 = vpop.permute.xlu1 %2758  ;;  %v2731_v48 = vsel %vm6900_vm14, %v2715_v51, %v2730_v54  ;;  %v2771_v58 = vsel %vm2766_vm9, %v6276_v46, %v2770_v21 }
 0x379   : > { %v2805_v27 = vrot.slane %v2799_v61, 4  ;;  %v2764_v36 = vrot.slane %v2759_v32, 4  ;;  %v4554_v57 = vcombine.low %v2689_v15, %v2731_v48  ;;  %v4555_v41 = vcombine.high %v2689_v15, %v2731_v48 }
 0x37b   : > { %v2812_v12 = vsel %vm288_vm1, %v2804_v62, %v2805_v27  ;;  %4232 = vmatprep.subr.bf16.mxu1 %v4555_v41  ;;  %v2772_v42 = vsel %vm288_vm1, %v2763_v59, %v2764_v36 }
 0x37c   : > { %v2841_v63 = vpop.permute.xlu0 %2840  ;;  %4233 = vmatpush1.bf16.msra.mxu1 %v4554_v57  ;;  %v2801_v39 = vpop.permute.xlu1 %2800  ;;  %v2813_v1 = vsel %vm2808_vm8, %v6301_v50, %v2812_v12  ;;  %v2773_v50 = vsel %vm2766_vm9, %v2757_v18, %v2772_v42 }
 0x37d   : > { %v2847_v26 = vrot.slane %v2841_v63, 4  ;;  %v2806_v24 = vrot.slane %v2801_v39, 4  ;;  %v4560_v37 = vcombine.low %v2771_v58, %v2813_v1  ;;  %v4561_v2 = vcombine.high %v2771_v58, %v2813_v1 }
 0x37f   : > { %v2854_v62 = vsel %vm288_vm1, %v2846_v8, %v2847_v26  ;;  %v2814_v6 = vsel %vm288_vm1, %v2805_v27, %v2806_v24  ;;  %4193 = vmatprep.subr.bf16.mxu0 %v4561_v2 }
 0x380   : > { %v2891_v29 = vpop.permute.xlu0 %2890  ;;  %4194 = vmatpush1.bf16.msra.mxu0 %v4560_v37  ;;  %v2843_v14 = vpop.permute.xlu1 %2842  ;;  %v2855_v46 = vsel %vm6901_vm15, %v6299_v17, %v2854_v62  ;;  %v2815_v51 = vsel %vm2808_vm8, %v2799_v61, %v2814_v6  ;;  %vm6903_vm8 = vcmask 973824   ;;  %vm6923_vm15 = vcmask 228352  }
 0x381   : > { %v2897_v28 = vrot.slane %v2891_v29, 4  ;;  %v2848_v38 = vrot.slane %v2843_v14, 4  ;;  %v4568_v35 = vcombine.low %v2855_v46, %v2868_v10  ;;  %v4569_v40 = vcombine.high %v2855_v46, %v2868_v10  ;;  %vm6905_vm9 = vmmov %vm6903_vm8 }
 0x382   : > { %v4562_v47 = vcombine.low %v2773_v50, %v2815_v51  ;;  %v4563_v8 = vcombine.high %v2773_v50, %v2815_v51  ;;  %v6909_v46 = vrot.slane %v6374_v22, 4 }
 0x383   : > { %v2856_v3 = vsel %vm288_vm1, %v2847_v26, %v2848_v38  ;;  %4195 = vmatprep.subr.bf16.mxu0 %v4569_v40  ;;  %v2903_v11 = vsel %vm288_vm1, %v2896_v25, %v2897_v28 }
 0x384   : > { %4234 = vmatprep.subr.bf16.mxu1 %v4563_v8  ;;  %v2932_v17 = vpop.permute.xlu0 %2931  ;;  %4196 = vmatpush1.bf16.msra.mxu0 %v4568_v35  ;;  %v2893_v52 = vpop.permute.xlu1 %2892  ;;  %v2857_v7 = vsel %vm6902_vm3, %v2841_v63, %v2856_v3  ;;  %v2904_v56 = vsel %vm290_vm2, %v6326_v33, %v2903_v11  ;;  %v6906_v63 = vrot.slane %v6349_v49, 4  ;;  %vm6924_vm3 = vcmask 220160  }
 0x385   : > { %v2938_v18 = vrot.slane %v2932_v17, 4  ;;  %4235 = vmatpush1.bf16.msra.mxu1 %v4562_v47  ;;  %v2898_v5 = vrot.slane %v2893_v52, 4  ;;  %v4570_v31 = vcombine.low %v2857_v7, %v6309_v53  ;;  %v4571_v0 = vcombine.high %v2857_v7, %v6309_v53 }
 0x386   : > { %v6912_v47 = vrot.slane %v6372_v45, 4 }
 0x387   : > { %v2945_v59 = vsel %vm288_vm1, %v2937_v43, %v2938_v18  ;;  %4236 = vmatprep.subr.bf16.mxu1 %v4571_v0  ;;  %v2905_v25 = vsel %vm288_vm1, %v2897_v28, %v2898_v5  ;;  %v6904_v43 = vrot.slane %v6351_v16, 4 }
 0x388   : > { %v2974_v19 = vpop.permute.xlu0 %2973  ;;  %v2934_v20 = vpop.permute.xlu1 %2933  ;;  %v2946_v54 = vsel %vm6903_vm8, %v6324_v23, %v2945_v59  ;;  %v2906_v33 = vsel %vm290_vm2, %v2891_v29, %v2905_v25  ;;  %vm6908_vm2 = vcmask 957440   ;;  %v6914_v25 = vrot.slane %v6400_v44, 4  ;;  %vm6926_vm8 = vmmov %vm6923_vm15 }
 0x389   : > { %v2980_v21 = vrot.slane %v2974_v19, 4  ;;  %4237 = vmatpush1.bf16.msra.mxu1 %v4570_v31  ;;  %v2939_v61 = vrot.slane %v2934_v20, 4  ;;  %v4576_v32 = vcombine.low %v2904_v56, %v2946_v54  ;;  %v4577_v53 = vcombine.high %v2904_v56, %v2946_v54  ;;  %vm6911_vm0 = vmmov %vm6908_vm2 }
 0x38b   : > { %v2947_v15 = vsel %vm288_vm1, %v2938_v18, %v2939_v61  ;;  %4197 = vmatprep.subr.bf16.mxu0 %v4577_v53  ;;  %v2986_v48 = vsel %vm288_vm1, %v6904_v43, %v2980_v21  ;;  %v6916_v53 = vrot.slane %v6398_v60, 4 }
 0x38c   : > { %v3015_v27 = vpop.permute.xlu0 %3014  ;;  %4198 = vmatpush1.bf16.msra.mxu0 %v4576_v32  ;;  %v2976_v36 = vpop.permute.xlu1 %2975  ;;  %v2948_v57 = vsel %vm6905_vm9, %v2932_v17, %v2947_v15  ;;  %v2987_v24 = vsel %vm6907_vm4, %v6351_v16, %v2986_v48  ;;  %vm6927_vm9 = vmmov %vm6924_vm3  ;;  %vm6929_vm4 = vcmask 146432  }
 0x38d   : > { %v3021_v23 = vrot.slane %v3015_v27, 4  ;;  %v2981_v41 = vrot.slane %v2976_v36, 4  ;;  %v4578_v12 = vcombine.low %v2906_v33, %v2948_v57  ;;  %v4579_v42 = vcombine.high %v2906_v33, %v2948_v57 }
 0x38f   : > { %v3027_v39 = vsel %vm288_vm1, %v6906_v63, %v3021_v23  ;;  %4238 = vmatprep.subr.bf16.mxu1 %v4579_v42  ;;  %v2988_v58 = vsel %vm288_vm1, %v2980_v21, %v2981_v41  ;;  %v6919_v63 = vrot.slane %v6421_v55, 4 }
 0x390   : > { %v3056_v1 = vpop.permute.xlu0 %3055  ;;  %4239 = vmatpush1.bf16.msra.mxu1 %v4578_v12  ;;  %v3017_v26 = vpop.permute.xlu1 %3016  ;;  %v3028_v37 = vsel %vm6908_vm2, %v6349_v49, %v3027_v39  ;;  %v2989_v28 = vsel %vm6910_vm6, %v2974_v19, %v2988_v58  ;;  %vm6931_vm2 = vcmask 138240   ;;  %vm6932_vm6 = vmmov %vm6929_vm4 }
 0x391   : > { %v3062_v2 = vrot.slane %v3056_v1, 4  ;;  %v3022_v62 = vrot.slane %v3017_v26, 4  ;;  %v4584_v6 = vcombine.low %v2987_v24, %v3028_v37  ;;  %v4585_v29 = vcombine.high %v2987_v24, %v3028_v37 }
 0x393   : > { %v3029_v14 = vsel %vm288_vm1, %v3021_v23, %v3022_v62  ;;  %4199 = vmatprep.subr.bf16.mxu0 %v4585_v29  ;;  %v3069_v10 = vsel %vm288_vm1, %v6909_v46, %v3062_v2  ;;  %v6922_v62 = vrot.slane %v6419_v34, 4 }
 0x394   : > { %v3098_v50 = vpop.permute.xlu0 %3097  ;;  %4200 = vmatpush1.bf16.msra.mxu0 %v4584_v6  ;;  %v3058_v51 = vpop.permute.xlu1 %3057  ;;  %v3030_v16 = vsel %vm6911_vm0, %v3015_v27, %v3029_v14  ;;  %v3070_v52 = vsel %vm3065_vm7, %v6374_v22, %v3069_v10  ;;  %vm6933_vm0 = vmmov %vm6931_vm2 }
 0x395   : > { %v3104_v38 = vrot.slane %v3098_v50, 4  ;;  %v3063_v49 = vrot.slane %v3058_v51, 4  ;;  %v4586_v35 = vcombine.low %v2989_v28, %v3030_v16  ;;  %v4587_v40 = vcombine.high %v2989_v28, %v3030_v16 }
 0x397   : > { %v3111_v8 = vsel %vm288_vm1, %v6912_v47, %v3104_v38  ;;  %4240 = vmatprep.subr.bf16.mxu1 %v4587_v40  ;;  %v3071_v3 = vsel %vm288_vm1, %v3062_v2, %v3063_v49 }
 0x398   : > { %v3140_v11 = vpop.permute.xlu0 %3139  ;;  %4241 = vmatpush1.bf16.msra.mxu1 %v4586_v35  ;;  %v3100_v17 = vpop.permute.xlu1 %3099  ;;  %v3112_v7 = vsel %vm6913_vm10, %v6372_v45, %v3111_v8  ;;  %v3072_v54 = vsel %vm3065_vm7, %v3056_v1, %v3071_v3  ;;  %vm6918_vm7 = vcmask 236544   ;;  %v6925_v35 = vrot.slane %v6441_v30, 4 }
 0x399   : > { %v3146_v18 = vrot.slane %v3140_v11, 4  ;;  %v3105_v5 = vrot.slane %v3100_v17, 4  ;;  %v4592_v31 = vcombine.low %v3070_v52, %v3112_v7  ;;  %v4593_v0 = vcombine.high %v3070_v52, %v3112_v7  ;;  %vm6921_vm14 = vmmov %vm6918_vm7 }
 0x39a   : > { %v6928_v7 = vrot.slane %v6439_v13, 4 }
 0x39b   : > { %v3113_v59 = vsel %vm288_vm1, %v3104_v38, %v3105_v5  ;;  %4201 = vmatprep.subr.bf16.mxu0 %v4593_v0  ;;  %v3153_v19 = vsel %vm288_vm1, %v6914_v25, %v3146_v18 }
 0x39c   : > { %v3182_v20 = vpop.permute.xlu0 %3181  ;;  %4202 = vmatpush1.bf16.msra.mxu0 %v4592_v31  ;;  %v3142_v56 = vpop.permute.xlu1 %3141  ;;  %v3114_v22 = vsel %vm6915_vm11, %v3098_v50, %v3113_v59  ;;  %v3154_v36 = vsel %vm6917_vm12, %v6400_v44, %v3153_v19 }
 0x39d   : > { %v3188_v21 = vrot.slane %v3182_v20, 4  ;;  %v3147_v45 = vrot.slane %v3142_v56, 4  ;;  %v4594_v61 = vcombine.low %v3072_v54, %v3114_v22  ;;  %v4595_v32 = vcombine.high %v3072_v54, %v3114_v22 }
 0x39e   : > { %v6930_v22 = vrot.slane %v6459_v4, 4 }
 0x39f   : > { %v3195_v15 = vsel %vm288_vm1, %v6916_v53, %v3188_v21  ;;  %4242 = vmatprep.subr.bf16.mxu1 %v4595_v32  ;;  %v3155_v43 = vsel %vm288_vm1, %v3146_v18, %v3147_v45 }
 0x3a0   : > { %v3224_v48 = vpop.permute.xlu0 %3223  ;;  %4243 = vmatpush1.bf16.msra.mxu1 %v4594_v61  ;;  %v3184_v27 = vpop.permute.xlu1 %3183  ;;  %v3196_v33 = vsel %vm6918_vm7, %v6398_v60, %v3195_v15  ;;  %v3156_v26 = vsel %vm6920_vm13, %v3140_v11, %v3155_v43 }
 0x3a1   : > { %v3230_v57 = vrot.slane %v3224_v48, 4  ;;  %v3189_v23 = vrot.slane %v3184_v27, 4  ;;  %v4600_v41 = vcombine.low %v3154_v36, %v3196_v33  ;;  %v4601_v12 = vcombine.high %v3154_v36, %v3196_v33 }
 0x3a3   : > { %v3197_v42 = vsel %vm288_vm1, %v3188_v21, %v3189_v23  ;;  %4203 = vmatprep.subr.bf16.mxu0 %v4601_v12  ;;  %v3236_v39 = vsel %vm288_vm1, %v6919_v63, %v3230_v57 }
 0x3a4   : > { %v3265_v58 = vpop.permute.xlu0 %3264  ;;  %4204 = vmatpush1.bf16.msra.mxu0 %v4600_v41  ;;  %v3226_v1 = vpop.permute.xlu1 %3225  ;;  %v3198_v44 = vsel %vm6921_vm14, %v3182_v20, %v3197_v42  ;;  %v3237_v10 = vsel %vm6923_vm15, %v6421_v55, %v3236_v39 }
 0x3a5   : > { %v3271_v24 = vrot.slane %v3265_v58, 4  ;;  %v3231_v60 = vrot.slane %v3226_v1, 4  ;;  %v4602_v37 = vcombine.low %v3156_v26, %v3198_v44  ;;  %v4603_v2 = vcombine.high %v3156_v26, %v3198_v44 }
 0x3a7   : > { %v3277_v6 = vsel %vm288_vm1, %v6922_v62, %v3271_v24  ;;  %4244 = vmatprep.subr.bf16.mxu1 %v4603_v2  ;;  %v3238_v29 = vsel %vm288_vm1, %v3230_v57, %v3231_v60 }
 0x3a8   : > { %v3306_v14 = vpop.permute.xlu0 %3305  ;;  %4245 = vmatpush1.bf16.msra.mxu1 %v4602_v37  ;;  %v3267_v46 = vpop.permute.xlu1 %3266  ;;  %v3278_v50 = vsel %vm6924_vm3, %v6419_v34, %v3277_v6  ;;  %v3239_v3 = vsel %vm6926_vm8, %v3224_v48, %v3238_v29 }
 0x3a9   : > { %v3312_v51 = vrot.slane %v3306_v14, 4  ;;  %v3272_v28 = vrot.slane %v3267_v46, 4  ;;  %v4608_v16 = vcombine.low %v3237_v10, %v3278_v50  ;;  %v4609_v38 = vcombine.high %v3237_v10, %v3278_v50 }
 0x3ab   : > { %v3279_v49 = vsel %vm288_vm1, %v3271_v24, %v3272_v28  ;;  %4205 = vmatprep.subr.bf16.mxu0 %v4609_v38  ;;  %v3319_v40 = vsel %vm288_vm1, %v6925_v35, %v3312_v51 }
 0x3ac   : > { %v3348_v47 = vpop.permute.xlu0 %3347  ;;  %4206 = vmatpush1.bf16.msra.mxu0 %v4608_v16  ;;  %v3308_v8 = vpop.permute.xlu1 %3307  ;;  %v3280_v55 = vsel %vm6927_vm9, %v3265_v58, %v3279_v49  ;;  %v3320_v59 = vsel %vm3315_vm5, %v6441_v30, %v3319_v40 }
 0x3ad   : > { %v3354_v11 = vrot.slane %v3348_v47, 4  ;;  %v3313_v34 = vrot.slane %v3308_v8, 4  ;;  %v4610_v17 = vcombine.low %v3239_v3, %v3280_v55  ;;  %v4611_v52 = vcombine.high %v3239_v3, %v3280_v55 }
 0x3af   : > { %v3360_v18 = vsel %vm288_vm1, %v6928_v7, %v3354_v11  ;;  %4246 = vmatprep.subr.bf16.mxu1 %v4611_v52  ;;  %v3321_v5 = vsel %vm288_vm1, %v3312_v51, %v3313_v34 }
 0x3b0   : > { %v3389_v31 = vpop.permute.xlu0 %3388  ;;  %4247 = vmatpush1.bf16.msra.mxu1 %v4610_v17  ;;  %v3350_v0 = vpop.permute.xlu1 %3349  ;;  %v3361_v25 = vsel %vm6929_vm4, %v6439_v13, %v3360_v18  ;;  %v3322_v30 = vsel %vm3315_vm5, %v3306_v14, %v3321_v5 }
 0x3b1   : > { %v3395_v19 = vrot.slane %v3389_v31, 4  ;;  %v3355_v20 = vrot.slane %v3350_v0, 4  ;;  %v4616_v56 = vcombine.low %v3320_v59, %v3361_v25  ;;  %v4617_v54 = vcombine.high %v3320_v59, %v3361_v25 }
 0x3b3   : > { %v3401_v21 = vsel %vm288_vm1, %v6930_v22, %v3395_v19  ;;  %v3362_v45 = vsel %vm288_vm1, %v3354_v11, %v3355_v20  ;;  %4207 = vmatprep.subr.bf16.mxu0 %v4617_v54 }
 0x3b4   : > { %4208 = vmatpush1.bf16.msra.mxu0 %v4616_v56  ;;  %v3391_v61 = vpop.permute.xlu1 %3390  ;;  %v3402_v32 = vsel %vm6931_vm2, %v6459_v4, %v3401_v21  ;;  %v3363_v13 = vsel %vm6932_vm6, %v3348_v47, %v3362_v45 }
 0x3b5   : > { %v3396_v53 = vrot.slane %v3391_v61, 4  ;;  %v4625_v15 = vcombine.high %v3402_v32, %v3402_v32  ;;  %v4618_v43 = vcombine.low %v3322_v30, %v3363_v13  ;;  %v4619_v48 = vcombine.high %v3322_v30, %v3363_v13 }
 0x3b6   : > { %v4624_v27 = vcombine.low %v3402_v32, %v3402_v32 }
 0x3b7   : > { %v3403_v36 = vsel %vm288_vm1, %v3395_v19, %v3396_v53  ;;  %4632 = vmatprep.subr.msk.bf16.mxu0 %vm288_vm1, %v4625_v15  ;;  %4248 = vmatprep.subr.bf16.mxu1 %v4619_v48 }
 0x3b8   : > { %v3404_v33 = vsel %vm6933_vm0, %v3389_v31, %v3403_v36  ;;  %v4090_v57 = vsel %vm288_vm1, %v4624_v27, 0  ;;  %4249 = vmatpush1.bf16.msra.mxu1 %v4618_v43 }
 0x3b9   : > { %4210 = vmatpush1.bf16.msra.mxu0 %v4090_v57  ;;  %v4627_v4 = vcombine.high %v3404_v33, %v3404_v33  ;;  %v4626_v23 = vcombine.low %v3404_v33, %v3404_v33 }
 0x3bb   : > { %4634 = vmatprep.subr.msk.bf16.mxu1 %vm288_vm1, %v4627_v4  ;;  %v4096_v41 = vsel %vm288_vm1, %v4626_v23, 0 }
 0x3bc   : > { %4216 = vmatmul.mubr.bf16.vlgmr.msra.gmra.mrb[12].mxu0 %v6197_v9  ;;  %4251 = vmatpush1.bf16.msra.mxu1 %v4096_v41 }
 0x3bf   : > { %4257 = vmatmul.mubr.bf16.vlgmr.msra.gmra.mrb[12].mxu1 %v6197_v9 }
 0x3c1   : > { %v3526_v12 = vpop.permute.xlu0 %3525 }
 0x3f6   : > { %v4135_v42 = vpop.f32.mrb[8].mxu0 }
 0x3f7   : > { %v4136_v63 = vadd.f32 %v4135_v42, %v3526_v12  ;;  %v4137_v39 = vpop.f32.mrb[9].mxu0 }
 0x3f8   : > { %v4138_v58 = vadd.f32 %v4137_v39, %v3526_v12  ;;  %v4139_v1 = vpop.f32.mrb[10].mxu0 }
 0x3f9   : > { %vm4265_vm5 = vcmp.gt.f32.partialorder %v4136_v63, 0.0  ;;  %v4273_v26 = vmul.f32 0.1, %v4136_v63  ;;  %v4140_v44 = vpop.f32.mrb[11].mxu0 }
 0x3fa   : > { %vm4266_vm10 = vcmp.gt.f32.partialorder %v4138_v58, 0.0  ;;  %v4274_v24 = vmul.f32 0.1, %v4138_v58 }
 0x3fb   : > { %v4281_v60 = vsel %vm4265_vm5, %v4136_v63, %v4273_v26 }
 0x3fc   : > { %v4282_v9 = vsel %vm4266_vm10, %v4138_v58, %v4274_v24 }
 0x3fd   : > { %v4647_v37 = vpack.c.bf16 %v4282_v9, %v4281_v60 }
 0x3ff   : > { %4321 = vst [vmem:[%s6672_s20] sm:$0xff] %v4647_v37 }
 0x42e   : > { %v4176_v2 = vpop.f32.mrb[8].mxu1 }
 0x42f   : > { %v4177_v62 = vadd.f32 %v4176_v2, %v3526_v12  ;;  %v4178_v6 = vpop.f32.mrb[9].mxu1 }
 0x430   : > { %v4179_v29 = vadd.f32 %v4178_v6, %v3526_v12  ;;  %v4180_v14 = vpop.f32.mrb[10].mxu1 }
 0x431   : > { %vm4267_vm1 = vcmp.gt.f32.partialorder %v4177_v62, 0.0  ;;  %v4275_v46 = vmul.f32 0.1, %v4177_v62  ;;  %v4181_v10 = vpop.f32.mrb[11].mxu1 }
 0x432   : > { %vm4268_vm11 = vcmp.gt.f32.partialorder %v4179_v29, 0.0  ;;  %v4276_v50 = vmul.f32 0.1, %v4179_v29 }
 0x433   : > { %v4283_v51 = vsel %vm4267_vm1, %v4177_v62, %v4275_v46 }
 0x434   : > { %v4284_v28 = vsel %vm4268_vm11, %v4179_v29, %v4276_v50 }
 0x435   : > { %v4648_v16 = vpack.c.bf16 %v4284_v28, %v4283_v51 }
 0x437   : > { %4322 = vst [vmem:[%s6672_s20 + $0x8] sm:$0xff] %v4648_v16 }
 0x48f   : > { %v4217_v38 = vpop.f32.mrb[12].mxu0 }
 0x490   : > { %v4218_v49 = vadd.f32 %v4217_v38, %v3526_v12  ;;  %v4219_v35 = vpop.f32.mrb[13].mxu0 }
 0x491   : > { %v4220_v40 = vadd.f32 %v4219_v35, %v3526_v12  ;;  %v4221_v47 = vpop.f32.mrb[14].mxu0 }
 0x492   : > { %vm4269_vm12 = vcmp.gt.f32.partialorder %v4218_v49, 0.0  ;;  %v4277_v8 = vmul.f32 0.1, %v4218_v49  ;;  %v4222_v3 = vpop.f32.mrb[15].mxu0  ;;  %v4258_v55 = vpop.f32.mrb[12].mxu1 }
 0x493   : > { %vm4270_vm7 = vcmp.gt.f32.partialorder %v4220_v40, 0.0  ;;  %v4278_v11 = vmul.f32 0.1, %v4220_v40  ;;  %v4259_v34 = vadd.f32 %v4258_v55, %v3526_v12  ;;  %v4260_v17 = vpop.f32.mrb[13].mxu1 }
 0x494   : > { %v4285_v52 = vsel %vm4269_vm12, %v4218_v49, %v4277_v8  ;;  %v4261_v7 = vadd.f32 %v4260_v17, %v3526_v12  ;;  %v4262_v18 = vpop.f32.mrb[14].mxu1 }
 0x495   : > { %v4286_v5 = vsel %vm4270_vm7, %v4220_v40, %v4278_v11  ;;  %vm4271_vm13 = vcmp.gt.f32.partialorder %v4259_v34, 0.0  ;;  %v4279_v31 = vmul.f32 0.1, %v4259_v34  ;;  %v4263_v0 = vpop.f32.mrb[15].mxu1 }
 0x496   : > { %v4649_v59 = vpack.c.bf16 %v4286_v5, %v4285_v52  ;;  %vm4272_vm14 = vcmp.gt.f32.partialorder %v4261_v7, 0.0  ;;  %v4280_v25 = vmul.f32 0.1, %v4261_v7 }
 0x497   : > { %v4287_v19 = vsel %vm4271_vm13, %v4259_v34, %v4279_v31 }
 0x498   : > { %4323 = vst [vmem:[%s6672_s20 + $0x10] sm:$0xff] %v4649_v59  ;;  %v4288_v20 = vsel %vm4272_vm14, %v4261_v7, %v4280_v25 }
 0x499   : > { %v4650_v56 = vpack.c.bf16 %v4288_v20, %v4287_v19 }
 0x49b   : > { %4324 = vst [vmem:[%s6672_s20 + $0x18] sm:$0xff] %v4650_v56 }
 0x49c PF: > { %s16_s21 = sadd.s32 1, %s4717_s21  }
 0x49d   : > { %p13_p4 = scmp.ge.s32.totalorder %s16_s21, 4  }
 0x49f   :  { %15 = sbr.rel (!%p13_p4) target bundleno = 1 (0x1), region = 74 }

</bundles_post_ra>
